<compile_context>
chip_gen: v7x
topology: tpu7x:2x2x1
jax: 0.10.0
libtpu: 0.0.40
codegen_flags: <defaults>
</compile_context>

<pallas_src>
import jax
import jax.numpy as jnp
from jax import lax
from jax.experimental import pallas as pl
from jax.experimental.pallas import tpu as pltpu

NEG_SLOPE = 0.01   # nn.LeakyReLU default negative_slope
GC = 32            # growth channels of the dense block


def _round_up(v, m):
    return ((v + m - 1) // m) * m


def _make_kernel(H, W, cin_pad):
    HW = H * W
    LP = _round_up(W + 1, 128)              # lane halo (aligned interior stores)
    c_scr = max(GC, cin_pad)                # scratch / mask row count
    chunk_sizes = [cin_pad, GC, GC, GC, GC]
    offsets = [sum(chunk_sizes[:i]) for i in range(len(chunk_sizes))]

    def _lrelu(v):
        return jnp.where(v >= 0, v, NEG_SLOPE * v)

    def kernel(x_ref, w1_ref, b1_ref, w2_ref, b2_ref, w3_ref, b3_ref,
               w4_ref, b4_ref, wf1t_ref, wf2t_ref, w5t_ref, b5_ref,
               out_ref, xp_ref):
        # 0/1 boundary masks along the lane (pixel) axis, built once at full
        # width so per-tap multiplies never re-broadcast.
        col = lax.broadcasted_iota(jnp.int32, (c_scr, HW), 1) % W
        m_left = (col != 0).astype(jnp.bfloat16)         # kill dw=-1 taps at col 0
        m_right = (col != (W - 1)).astype(jnp.bfloat16)  # kill dw=+1 taps at col W-1

        # Zero the lane halos of the padded activation scratch once; the
        # interior is overwritten by every conv.
        xp_ref[:, 0:LP] = jnp.zeros((c_scr, LP), jnp.bfloat16)
        xp_ref[:, LP + HW:] = jnp.zeros((c_scr, LP), jnp.bfloat16)

        def conv3x3_t(act_bf, w_ref, b_ref):
            # act_bf: (C, HW) bf16; w_ref: (GC, 9*C) bf16; b_ref: (GC, 1) f32.
            C = act_bf.shape[0]
            xp_ref[0:C, LP:LP + HW] = act_bf
            taps = []
            for k in range(9):                 # k = (dh+1)*3 + (dw+1)
                dh, dw = k // 3 - 1, k % 3 - 1
                start = LP + dh * W + dw
                patch = xp_ref[0:C, start:start + HW]   # static shifted slice
                if dw == -1:
                    patch = patch * m_left[0:C]
                elif dw == 1:
                    patch = patch * m_right[0:C]
                taps.append(patch)
            # Sublane (K-axis) stack -> (9*C, HW); lane-dense MXU matmul.
            patches = jnp.concatenate(taps, axis=0)
            y = jnp.dot(w_ref[...], patches, preferred_element_type=jnp.float32)
            return y + b_ref[...]              # (GC, HW) f32

        def pooled(v_f32):                     # f32 stats before bf16 downcast
            return jnp.concatenate(
                [jnp.mean(v_f32, axis=1, keepdims=True),
                 jnp.max(v_f32, axis=1, keepdims=True)], axis=1)   # (C, 2)

        def block(prev_bf, w_ref, b_ref):
            v = _lrelu(conv3x3_t(prev_bf, w_ref, b_ref))           # (GC, HW) f32
            return v.astype(jnp.bfloat16), pooled(v)

        # Dense block with dense connectivity; retained chunks are bf16.
        x_f32 = x_ref[0]                       # (cin_pad, HW) f32
        x0 = x_f32.astype(jnp.bfloat16)
        s0 = pooled(x_f32)
        x1, s1 = block(x0, w1_ref, b1_ref)
        x2, s2 = block(x1, w2_ref, b2_ref)
        x3, s3 = block(x2, w3_ref, b3_ref)
        x4, s4 = block(x3, w4_ref, b4_ref)
        chunks = [x0, x1, x2, x3, x4]          # logical x5, never concatenated

        # ChannelAttention: shared MLP run once on the stacked (Ccat, 2)
        # avg/max stats, sigmoid of the summed heads.  (kept in f32)
        stats = jnp.concatenate([s0, s1, s2, s3, s4], axis=0)      # (Ccat_pad, 2)
        h = jnp.maximum(
            jnp.dot(wf1t_ref[...], stats, preferred_element_type=jnp.float32), 0.0)
        y = jnp.dot(wf2t_ref[...], h, preferred_element_type=jnp.float32)
        att = 1.0 / (1.0 + jnp.exp(-(y[:, 0:1] + y[:, 1:2])))      # (Ccat_pad, 1)

        # conv5 (1x1) in bf16 on attention-scaled chunks; output stays
        # lane-dense (Cout, HW) and reshapes straight to NCHW.
        cout = out_ref.shape[1]
        out_t = jnp.zeros((cout, HW), jnp.float32)
        for cnk, off, cs in zip(chunks, offsets, chunk_sizes):
            a = att[off:off + cs].astype(jnp.bfloat16)              # (Cc, 1)
            out_t = out_t + jnp.dot(w5t_ref[:, off:off + cs], cnk * a,
                                    preferred_element_type=jnp.float32)
        out_ref[0] = (out_t + b5_ref[...]).astype(out_ref.dtype)

    return kernel


def residual_dense_block_out(x_nchw, params):
    """Forward pass of ResidualDenseBlock_out. x_nchw: (N, Cin, H, W) f32."""
    (w1, b1, w2, b2, w3, b3, w4, b4, wf1, wf2, w5, b5) = params
    N, Cin, H, W = x_nchw.shape
    HW = H * W
    Cout = w5.shape[-1]
    cin_pad = _round_up(Cin, 16)          # full bf16 sublane packs for the x chunk
    Ccat = wf1.shape[0]                   # 4*GC + Cin

    # glue: NCHW -> (N, Cin, HW) is a FREE reshape (no transpose); zero-pad the
    # channel axis so every scratch store/read and conv1's K axis are full-tile.
    x3d = x_nchw.reshape(N, Cin, HW).astype(jnp.float32)
    if cin_pad > Cin:
        x3d = jnp.pad(x3d, ((0, 0), (0, cin_pad - Cin), (0, 0)))

    def k9_t(w, ci_pad):
        # HWIO (3,3,ci,co) -> transposed im2col weight (co, 9*ci_pad) bf16,
        # columns ordered (tap-major, channel-minor); zero rows for padded ci.
        _, _, ci, co = w.shape
        wr = w.reshape(9, ci, co)
        if ci_pad > ci:
            wr = jnp.pad(wr, ((0, 0), (0, ci_pad - ci), (0, 0)))
        return jnp.transpose(wr, (2, 0, 1)).reshape(co, 9 * ci_pad).astype(jnp.bfloat16)

    def as_col(b):
        return b.reshape(-1, 1).astype(jnp.float32)

    def pad_rows(m):
        # Insert zero rows for the padded input channels: (Ccat, X) -> (Ccat_pad, X).
        if cin_pad == Cin:
            return m
        return jnp.concatenate(
            [m[:Cin], jnp.zeros((cin_pad - Cin, m.shape[1]), m.dtype), m[Cin:]],
            axis=0)

    wf1_p = pad_rows(wf1.astype(jnp.float32))                     # (Ccat_pad, Cmid)
    wf2t_p = pad_rows(jnp.transpose(wf2).astype(jnp.float32))     # (Ccat_pad, Cmid)
    w5_p = pad_rows(w5.astype(jnp.float32))                       # (Ccat_pad, Cout)

    weights = [
        k9_t(w1, cin_pad), as_col(b1),
        k9_t(w2, GC), as_col(b2),
        k9_t(w3, GC), as_col(b3),
        k9_t(w4, GC), as_col(b4),
        jnp.transpose(wf1_p),                        # wf1_t: (Cmid, Ccat_pad) f32
        wf2t_p,                                      # wf2_t: (Ccat_pad, Cmid) f32
        jnp.transpose(w5_p).astype(jnp.bfloat16),    # w5_t:  (Cout, Ccat_pad) bf16
        as_col(b5),                                  # (Cout, 1) f32
    ]

    def full_spec(a):
        return pl.BlockSpec(a.shape, lambda b, _nd=a.ndim: (0,) * _nd)

    in_specs = ([pl.BlockSpec((1, cin_pad, HW), lambda b: (b, 0, 0))]
                + [full_spec(w) for w in weights])

    LP = _round_up(W + 1, 128)
    c_scr = max(GC, cin_pad)
    kernel = _make_kernel(H, W, cin_pad)

    out_t = pl.pallas_call(
        kernel,
        out_shape=jax.ShapeDtypeStruct((N, Cout, HW), jnp.float32),
        grid=(N,),
        in_specs=in_specs,
        out_specs=pl.BlockSpec((1, Cout, HW), lambda b: (b, 0, 0)),
        scratch_shapes=[pltpu.VMEM((c_scr, HW + 2 * LP), jnp.bfloat16)],
        compiler_params=pltpu.CompilerParams(
            dimension_semantics=("parallel",),
            vmem_limit_bytes=48 * 1024 * 1024),
    )(x3d, *weights)

    # (N, Cout, HW) is already NCHW order — a free reshape finishes the job.
    return out_t.reshape(N, Cout, H, W)


def reference_forward(x_nchw, params):
    """Pure-JAX reference (XLA convs, f32 HIGHEST) matching the PyTorch forward."""
    (w1, b1, w2, b2, w3, b3, w4, b4, wf1, wf2, w5, b5) = params
    x = jnp.transpose(x_nchw, (0, 2, 3, 1))
    dn = ('NHWC', 'HWIO', 'NHWC')

    def conv(v, w, b):
        return lax.conv_general_dilated(
            v, w, (1, 1), 'SAME', dimension_numbers=dn,
            precision=lax.Precision.HIGHEST) + b

    def lrelu(v):
        return jnp.where(v >= 0, v, NEG_SLOPE * v)

    x1 = lrelu(conv(x, w1, b1))
    x2 = lrelu(conv(x1, w2, b2))
    x3 = lrelu(conv(x2, w3, b3))
    x4 = lrelu(conv(x3, w4, b4))
    x5 = jnp.concatenate([x, x1, x2, x3, x4], axis=-1)

    avg = jnp.mean(x5, axis=(1, 2), keepdims=True)
    mx = jnp.max(x5, axis=(1, 2), keepdims=True)

    def mlp(v):
        h = jnp.maximum(
            jnp.einsum('nhwc,cd->nhwd', v, wf1,
                       precision=lax.Precision.HIGHEST), 0.0)
        return jnp.einsum('nhwd,dc->nhwc', h, wf2,
                          precision=lax.Precision.HIGHEST)

    att = jax.nn.sigmoid(mlp(avg) + mlp(mx))
    x6 = att * x5
    out = jnp.einsum('nhwc,cd->nhwd', x6, w5,
                     precision=lax.Precision.HIGHEST) + b5
    return jnp.transpose(out, (0, 3, 1, 2))


if __name__ == "__main__":
    # Small shapes consistent with the module: input=4 channels, output=4.
    N, Cin, H, W = 2, 4, 16, 16
    Cout = 4
    Ccat = GC * 4 + Cin          # 132 channels into attention / conv5
    Cmid = Ccat // 16            # 8   (ChannelAttention ratio=16)

    key = jax.random.PRNGKey(0)
    keys = jax.random.split(key, 13)
    s = 0.1
    w1 = jax.random.normal(keys[0], (3, 3, Cin, GC), jnp.float32) * s
    b1 = jax.random.normal(keys[1], (GC,), jnp.float32) * s
    w2 = jax.random.normal(keys[2], (3, 3, GC, GC), jnp.float32) * s
    b2 = jax.random.normal(keys[3], (GC,), jnp.float32) * s
    w3 = jax.random.normal(keys[4], (3, 3, GC, GC), jnp.float32) * s
    b3 = jax.random.normal(keys[5], (GC,), jnp.float32) * s
    w4 = jax.random.normal(keys[6], (3, 3, GC, GC), jnp.float32) * s
    b4 = jax.random.normal(keys[7], (GC,), jnp.float32) * s
    wf1 = jax.random.normal(keys[8], (Ccat, Cmid), jnp.float32) * s   # fc1 (no bias)
    wf2 = jax.random.normal(keys[9], (Cmid, Ccat), jnp.float32) * s   # fc2 (no bias)
    # NOTE: the PyTorch module zero-initializes conv5; nonzero deterministic
    # weights are used here so the full compute path is exercised.
    w5 = jax.random.normal(keys[10], (Ccat, Cout), jnp.float32) * s
    b5 = jax.random.normal(keys[11], (Cout,), jnp.float32) * s

    x = jax.random.normal(keys[12], (N, Cin, H, W), jnp.float32)
    params = (w1, b1, w2, b2, w3, b3, w4, b4, wf1, wf2, w5, b5)

    out = residual_dense_block_out(x, params)
    out = jax.block_until_ready(out)

    ref = reference_forward(x, params)
    err = float(jnp.max(jnp.abs(out - ref)))
    assert out.shape == (N, Cout, H, W), out.shape
    # bf16 MXU operands chained through five matmuls (convs 1-4 + conv5) with
    # f32 accumulation, compared against an all-f32 HIGHEST reference.
    assert err < 8e-2, f"max abs error too large: {err}"
    print("KERNEL_OK")
</pallas_src>

<mosaic_0001>
module attributes {stable_mosaic.version = 11 : i64} {
  func.func @kernel(%arg0: i32, %arg1: memref<1x16x256xf32, #tpu.memory_space<vmem>>, %arg2: memref<32x144xbf16, #tpu.memory_space<vmem>>, %arg3: memref<32x1xf32, #tpu.memory_space<vmem>>, %arg4: memref<32x288xbf16, #tpu.memory_space<vmem>>, %arg5: memref<32x1xf32, #tpu.memory_space<vmem>>, %arg6: memref<32x288xbf16, #tpu.memory_space<vmem>>, %arg7: memref<32x1xf32, #tpu.memory_space<vmem>>, %arg8: memref<32x288xbf16, #tpu.memory_space<vmem>>, %arg9: memref<32x1xf32, #tpu.memory_space<vmem>>, %arg10: memref<8x144xf32, #tpu.memory_space<vmem>>, %arg11: memref<144x8xf32, #tpu.memory_space<vmem>>, %arg12: memref<4x144xbf16, #tpu.memory_space<vmem>>, %arg13: memref<4x1xf32, #tpu.memory_space<vmem>>, %arg14: memref<1x4x256xf32, #tpu.memory_space<vmem>>, %arg15: memref<32x512xbf16, #tpu.memory_space<vmem>>) attributes {dimension_semantics = [#tpu.dimension_semantics<parallel>], iteration_bounds = array<i64: 2>, scalar_prefetch = 0 : i64, scratch_operands = 1 : i64, tpu.core_type = #tpu.core_type<tc>, window_params = [{transform_indices = @transform_0, window_bounds = array<i64: 1, 16, 256>}, {pipeline_mode = #tpu.pipeline_mode<synchronous>, transform_indices = @transform_1, window_bounds = array<i64: 32, 144>}, {pipeline_mode = #tpu.pipeline_mode<synchronous>, transform_indices = @transform_2, window_bounds = array<i64: 32, 1>}, {pipeline_mode = #tpu.pipeline_mode<synchronous>, transform_indices = @transform_3, window_bounds = array<i64: 32, 288>}, {pipeline_mode = #tpu.pipeline_mode<synchronous>, transform_indices = @transform_4, window_bounds = array<i64: 32, 1>}, {pipeline_mode = #tpu.pipeline_mode<synchronous>, transform_indices = @transform_5, window_bounds = array<i64: 32, 288>}, {pipeline_mode = #tpu.pipeline_mode<synchronous>, transform_indices = @transform_6, window_bounds = array<i64: 32, 1>}, {pipeline_mode = #tpu.pipeline_mode<synchronous>, transform_indices = @transform_7, window_bounds = array<i64: 32, 288>}, {pipeline_mode = #tpu.pipeline_mode<synchronous>, transform_indices = @transform_8, window_bounds = array<i64: 32, 1>}, {pipeline_mode = #tpu.pipeline_mode<synchronous>, transform_indices = @transform_9, window_bounds = array<i64: 8, 144>}, {pipeline_mode = #tpu.pipeline_mode<synchronous>, transform_indices = @transform_10, window_bounds = array<i64: 144, 8>}, {pipeline_mode = #tpu.pipeline_mode<synchronous>, transform_indices = @transform_11, window_bounds = array<i64: 4, 144>}, {pipeline_mode = #tpu.pipeline_mode<synchronous>, transform_indices = @transform_12, window_bounds = array<i64: 4, 1>}, {transform_indices = @transform_13, window_bounds = array<i64: 1, 4, 256>}]} {
    %0 = tpu.iota {dimensions = array<i32: 1>} : vector<32x256xi32>
    %c16_i32 = arith.constant 16 : i32
    %c0_i32 = arith.constant 0 : i32
    %1 = arith.cmpi eq, %c16_i32, %c0_i32 : i32
    %c1_i32 = arith.constant 1 : i32
    %2 = arith.select %1, %c1_i32, %c16_i32 : i32
    %3 = vector.broadcast %2 : i32 to vector<32x256xi32>
    %4 = arith.remsi %0, %3 : vector<32x256xi32>
    %c0_i32_0 = arith.constant 0 : i32
    %5 = vector.broadcast %c0_i32_0 : i32 to vector<32x256xi32>
    %6 = arith.cmpi ne, %4, %5 : vector<32x256xi32>
    %c0_i32_1 = arith.constant 0 : i32
    %7 = vector.broadcast %c0_i32_1 : i32 to vector<32x256xi32>
    %8 = arith.cmpi slt, %4, %7 : vector<32x256xi32>
    %c0_i32_2 = arith.constant 0 : i32
    %9 = arith.cmpi slt, %2, %c0_i32_2 : i32
    %10 = vector.broadcast %9 : i1 to vector<32x256xi1>
    %11 = vector.broadcast %10 : vector<32x256xi1> to vector<32x256xi1>
    %12 = arith.xori %8, %11 : vector<32x256xi1>
    %13 = arith.andi %12, %6 : vector<32x256xi1>
    %14 = vector.broadcast %2 : i32 to vector<32x256xi32>
    %15 = arith.addi %4, %14 : vector<32x256xi32>
    %16 = arith.select %13, %15, %4 : vector<32x256xi1>, vector<32x256xi32>
    %c0_i32_3 = arith.constant 0 : i32
    %17 = vector.broadcast %c0_i32_3 : i32 to vector<32x256xi32>
    %18 = arith.cmpi ne, %16, %17 : vector<32x256xi32>
    %19 = arith.extui %18 : vector<32x256xi1> to vector<32x256xi32>
    %20 = arith.sitofp %19 : vector<32x256xi32> to vector<32x256xf32>
    %21 = arith.truncf %20 : vector<32x256xf32> to vector<32x256xbf16>
    %c15_i32 = arith.constant 15 : i32
    %22 = vector.broadcast %c15_i32 : i32 to vector<32x256xi32>
    %23 = arith.cmpi ne, %16, %22 : vector<32x256xi32>
    %24 = arith.extui %23 : vector<32x256xi1> to vector<32x256xi32>
    %25 = arith.sitofp %24 : vector<32x256xi32> to vector<32x256xf32>
    %26 = arith.truncf %25 : vector<32x256xf32> to vector<32x256xbf16>
    %cst = arith.constant 0.000000e+00 : bf16
    %27 = vector.broadcast %cst : bf16 to vector<32x128xbf16>
    %c0 = arith.constant 0 : index
    %c0_4 = arith.constant 0 : index
    %28 = vector.load %arg15[%c0, %c0_4] : memref<32x512xbf16, #tpu.memory_space<vmem>>, vector<32x128xbf16>
    tpu.vector_store %arg15[%c0, %c0_4], %27 {strides = array<i32>} : memref<32x512xbf16, #tpu.memory_space<vmem>>, vector<32x128xbf16>,
    %cst_5 = arith.constant 0.000000e+00 : bf16
    %29 = vector.broadcast %cst_5 : bf16 to vector<32x128xbf16>
    %c0_6 = arith.constant 0 : index
    %c384 = arith.constant 384 : index
    %30 = vector.load %arg15[%c0_6, %c384] : memref<32x512xbf16, #tpu.memory_space<vmem>>, vector<32x128xbf16>
    tpu.vector_store %arg15[%c0_6, %c384], %29 {strides = array<i32>} : memref<32x512xbf16, #tpu.memory_space<vmem>>, vector<32x128xbf16>,
    %c0_7 = arith.constant 0 : index
    %c0_8 = arith.constant 0 : index
    %c0_9 = arith.constant 0 : index
    %31 = vector.load %arg1[%c0_7, %c0_8, %c0_9] : memref<1x16x256xf32, #tpu.memory_space<vmem>>, vector<1x16x256xf32>
    %32 = vector.shape_cast %31 : vector<1x16x256xf32> to vector<16x256xf32>
    %33 = arith.truncf %32 : vector<16x256xf32> to vector<16x256xbf16>
    %cst_10 = arith.constant dense<0.000000e+00> : vector<16xf32>
    %34 = vector.multi_reduction <add>, %32, %cst_10 [1] : vector<16x256xf32> to vector<16xf32>
    %35 = vector.shape_cast %34 : vector<16xf32> to vector<16x1xf32>
    %cst_11 = arith.constant 2.560000e+02 : f32
    %36 = vector.broadcast %cst_11 : f32 to vector<16x1xf32>
    %37 = arith.divf %35, %36 : vector<16x1xf32>
    %cst_12 = arith.constant dense<0xFF800000> : vector<16xf32>
    %38 = vector.multi_reduction <maximumf>, %32, %cst_12 [1] : vector<16x256xf32> to vector<16xf32>
    %39 = vector.shape_cast %38 : vector<16xf32> to vector<16x1xf32>
    %40 = tpu.concatenate %37, %39 in 1 : vector<16x1xf32>, vector<16x1xf32> -> vector<16x2xf32>
    %c0_13 = arith.constant 0 : index
    %c128 = arith.constant 128 : index
    %41 = vector.load %arg15[%c0_13, %c128] : memref<32x512xbf16, #tpu.memory_space<vmem>>, vector<16x256xbf16>
    tpu.vector_store %arg15[%c0_13, %c128], %33 {strides = array<i32>} : memref<32x512xbf16, #tpu.memory_space<vmem>>, vector<16x256xbf16>,
    %c0_14 = arith.constant 0 : index
    %c111 = arith.constant 111 : index
    %42 = vector.load %arg15[%c0_14, %c111] : memref<32x512xbf16, #tpu.memory_space<vmem>>, vector<16x256xbf16>
    %43 = vector.extract_strided_slice %21 {offsets = [0, 0], sizes = [16, 256], strides = [1, 1]} : vector<32x256xbf16> to vector<16x256xbf16>
    %44 = arith.mulf %42, %43 : vector<16x256xbf16>
    %c0_15 = arith.constant 0 : index
    %c112 = arith.constant 112 : index
    %45 = vector.load %arg15[%c0_15, %c112] : memref<32x512xbf16, #tpu.memory_space<vmem>>, vector<16x256xbf16>
    %c0_16 = arith.constant 0 : index
    %c113 = arith.constant 113 : index
    %46 = vector.load %arg15[%c0_16, %c113] : memref<32x512xbf16, #tpu.memory_space<vmem>>, vector<16x256xbf16>
    %47 = vector.extract_strided_slice %26 {offsets = [0, 0], sizes = [16, 256], strides = [1, 1]} : vector<32x256xbf16> to vector<16x256xbf16>
    %48 = arith.mulf %46, %47 : vector<16x256xbf16>
    %c0_17 = arith.constant 0 : index
    %c127 = arith.constant 127 : index
    %49 = vector.load %arg15[%c0_17, %c127] : memref<32x512xbf16, #tpu.memory_space<vmem>>, vector<16x256xbf16>
    %50 = vector.extract_strided_slice %21 {offsets = [0, 0], sizes = [16, 256], strides = [1, 1]} : vector<32x256xbf16> to vector<16x256xbf16>
    %51 = arith.mulf %49, %50 : vector<16x256xbf16>
    %c0_18 = arith.constant 0 : index
    %c128_19 = arith.constant 128 : index
    %52 = vector.load %arg15[%c0_18, %c128_19] : memref<32x512xbf16, #tpu.memory_space<vmem>>, vector<16x256xbf16>
    %c0_20 = arith.constant 0 : index
    %c129 = arith.constant 129 : index
    %53 = vector.load %arg15[%c0_20, %c129] : memref<32x512xbf16, #tpu.memory_space<vmem>>, vector<16x256xbf16>
    %54 = vector.extract_strided_slice %26 {offsets = [0, 0], sizes = [16, 256], strides = [1, 1]} : vector<32x256xbf16> to vector<16x256xbf16>
    %55 = arith.mulf %53, %54 : vector<16x256xbf16>
    %c0_21 = arith.constant 0 : index
    %c143 = arith.constant 143 : index
    %56 = vector.load %arg15[%c0_21, %c143] : memref<32x512xbf16, #tpu.memory_space<vmem>>, vector<16x256xbf16>
    %57 = vector.extract_strided_slice %21 {offsets = [0, 0], sizes = [16, 256], strides = [1, 1]} : vector<32x256xbf16> to vector<16x256xbf16>
    %58 = arith.mulf %56, %57 : vector<16x256xbf16>
    %c0_22 = arith.constant 0 : index
    %c144 = arith.constant 144 : index
    %59 = vector.load %arg15[%c0_22, %c144] : memref<32x512xbf16, #tpu.memory_space<vmem>>, vector<16x256xbf16>
    %c0_23 = arith.constant 0 : index
    %c145 = arith.constant 145 : index
    %60 = vector.load %arg15[%c0_23, %c145] : memref<32x512xbf16, #tpu.memory_space<vmem>>, vector<16x256xbf16>
    %61 = vector.extract_strided_slice %26 {offsets = [0, 0], sizes = [16, 256], strides = [1, 1]} : vector<32x256xbf16> to vector<16x256xbf16>
    %62 = arith.mulf %60, %61 : vector<16x256xbf16>
    %63 = tpu.concatenate %44, %45, %48, %51, %52, %55, %58, %59, %62 in 0 : vector<16x256xbf16>, vector<16x256xbf16>, vector<16x256xbf16>, vector<16x256xbf16>, vector<16x256xbf16>, vector<16x256xbf16>, vector<16x256xbf16>, vector<16x256xbf16>, vector<16x256xbf16> -> vector<144x256xbf16>
    %c0_24 = arith.constant 0 : index
    %c0_25 = arith.constant 0 : index
    %64 = vector.load %arg2[%c0_24, %c0_25] : memref<32x144xbf16, #tpu.memory_space<vmem>>, vector<32x144xbf16>
    %cst_26 = arith.constant dense<0.000000e+00> : vector<32x256xf32>
    %65 = tpu.matmul %64, %63, %cst_26 {dimension_numbers = #tpu.dot_dimension_numbers<[1], [0], [0], [1], [0, 0, 1, 1], [], []>} : vector<32x144xbf16>, vector<144x256xbf16>, vector<32x256xf32> -> vector<32x256xf32>
    %c0_27 = arith.constant 0 : index
    %c0_28 = arith.constant 0 : index
    %66 = vector.load %arg3[%c0_27, %c0_28] : memref<32x1xf32, #tpu.memory_space<vmem>>, vector<32x1xf32>
    %67 = vector.broadcast %66 : vector<32x1xf32> to vector<32x256xf32>
    %68 = arith.addf %65, %67 : vector<32x256xf32>
    %cst_29 = arith.constant 0.000000e+00 : f32
    %69 = vector.broadcast %cst_29 : f32 to vector<32x256xf32>
    %70 = arith.cmpf oge, %68, %69 : vector<32x256xf32>
    %cst_30 = arith.constant 0.00999999977 : f32
    %71 = vector.broadcast %cst_30 : f32 to vector<32x256xf32>
    %72 = arith.mulf %71, %68 : vector<32x256xf32>
    %73 = arith.select %70, %68, %72 : vector<32x256xi1>, vector<32x256xf32>
    %74 = arith.truncf %73 : vector<32x256xf32> to vector<32x256xbf16>
    %cst_31 = arith.constant dense<0.000000e+00> : vector<32xf32>
    %75 = vector.multi_reduction <add>, %73, %cst_31 [1] : vector<32x256xf32> to vector<32xf32>
    %76 = vector.shape_cast %75 : vector<32xf32> to vector<32x1xf32>
    %cst_32 = arith.constant 2.560000e+02 : f32
    %77 = vector.broadcast %cst_32 : f32 to vector<32x1xf32>
    %78 = arith.divf %76, %77 : vector<32x1xf32>
    %cst_33 = arith.constant dense<0xFF800000> : vector<32xf32>
    %79 = vector.multi_reduction <maximumf>, %73, %cst_33 [1] : vector<32x256xf32> to vector<32xf32>
    %80 = vector.shape_cast %79 : vector<32xf32> to vector<32x1xf32>
    %81 = tpu.concatenate %78, %80 in 1 : vector<32x1xf32>, vector<32x1xf32> -> vector<32x2xf32>
    %c0_34 = arith.constant 0 : index
    %c128_35 = arith.constant 128 : index
    %82 = vector.load %arg15[%c0_34, %c128_35] : memref<32x512xbf16, #tpu.memory_space<vmem>>, vector<32x256xbf16>
    tpu.vector_store %arg15[%c0_34, %c128_35], %74 {strides = array<i32>} : memref<32x512xbf16, #tpu.memory_space<vmem>>, vector<32x256xbf16>,
    %c0_36 = arith.constant 0 : index
    %c111_37 = arith.constant 111 : index
    %83 = vector.load %arg15[%c0_36, %c111_37] : memref<32x512xbf16, #tpu.memory_space<vmem>>, vector<32x256xbf16>
    %84 = arith.mulf %83, %21 : vector<32x256xbf16>
    %c0_38 = arith.constant 0 : index
    %c112_39 = arith.constant 112 : index
    %85 = vector.load %arg15[%c0_38, %c112_39] : memref<32x512xbf16, #tpu.memory_space<vmem>>, vector<32x256xbf16>
    %c0_40 = arith.constant 0 : index
    %c113_41 = arith.constant 113 : index
    %86 = vector.load %arg15[%c0_40, %c113_41] : memref<32x512xbf16, #tpu.memory_space<vmem>>, vector<32x256xbf16>
    %87 = arith.mulf %86, %26 : vector<32x256xbf16>
    %c0_42 = arith.constant 0 : index
    %c127_43 = arith.constant 127 : index
    %88 = vector.load %arg15[%c0_42, %c127_43] : memref<32x512xbf16, #tpu.memory_space<vmem>>, vector<32x256xbf16>
    %89 = arith.mulf %88, %21 : vector<32x256xbf16>
    %c0_44 = arith.constant 0 : index
    %c128_45 = arith.constant 128 : index
    %90 = vector.load %arg15[%c0_44, %c128_45] : memref<32x512xbf16, #tpu.memory_space<vmem>>, vector<32x256xbf16>
    %c0_46 = arith.constant 0 : index
    %c129_47 = arith.constant 129 : index
    %91 = vector.load %arg15[%c0_46, %c129_47] : memref<32x512xbf16, #tpu.memory_space<vmem>>, vector<32x256xbf16>
    %92 = arith.mulf %91, %26 : vector<32x256xbf16>
    %c0_48 = arith.constant 0 : index
    %c143_49 = arith.constant 143 : index
    %93 = vector.load %arg15[%c0_48, %c143_49] : memref<32x512xbf16, #tpu.memory_space<vmem>>, vector<32x256xbf16>
    %94 = arith.mulf %93, %21 : vector<32x256xbf16>
    %c0_50 = arith.constant 0 : index
    %c144_51 = arith.constant 144 : index
    %95 = vector.load %arg15[%c0_50, %c144_51] : memref<32x512xbf16, #tpu.memory_space<vmem>>, vector<32x256xbf16>
    %c0_52 = arith.constant 0 : index
    %c145_53 = arith.constant 145 : index
    %96 = vector.load %arg15[%c0_52, %c145_53] : memref<32x512xbf16, #tpu.memory_space<vmem>>, vector<32x256xbf16>
    %97 = arith.mulf %96, %26 : vector<32x256xbf16>
    %98 = tpu.concatenate %84, %85, %87, %89, %90, %92, %94, %95, %97 in 0 : vector<32x256xbf16>, vector<32x256xbf16>, vector<32x256xbf16>, vector<32x256xbf16>, vector<32x256xbf16>, vector<32x256xbf16>, vector<32x256xbf16>, vector<32x256xbf16>, vector<32x256xbf16> -> vector<288x256xbf16>
    %c0_54 = arith.constant 0 : index
    %c0_55 = arith.constant 0 : index
    %99 = vector.load %arg4[%c0_54, %c0_55] : memref<32x288xbf16, #tpu.memory_space<vmem>>, vector<32x288xbf16>
    %cst_56 = arith.constant dense<0.000000e+00> : vector<32x256xf32>
    %100 = tpu.matmul %99, %98, %cst_56 {dimension_numbers = #tpu.dot_dimension_numbers<[1], [0], [0], [1], [0, 0, 1, 1], [], []>} : vector<32x288xbf16>, vector<288x256xbf16>, vector<32x256xf32> -> vector<32x256xf32>
    %c0_57 = arith.constant 0 : index
    %c0_58 = arith.constant 0 : index
    %101 = vector.load %arg5[%c0_57, %c0_58] : memref<32x1xf32, #tpu.memory_space<vmem>>, vector<32x1xf32>
    %102 = vector.broadcast %101 : vector<32x1xf32> to vector<32x256xf32>
    %103 = arith.addf %100, %102 : vector<32x256xf32>
    %cst_59 = arith.constant 0.000000e+00 : f32
    %104 = vector.broadcast %cst_59 : f32 to vector<32x256xf32>
    %105 = arith.cmpf oge, %103, %104 : vector<32x256xf32>
    %cst_60 = arith.constant 0.00999999977 : f32
    %106 = vector.broadcast %cst_60 : f32 to vector<32x256xf32>
    %107 = arith.mulf %106, %103 : vector<32x256xf32>
    %108 = arith.select %105, %103, %107 : vector<32x256xi1>, vector<32x256xf32>
    %109 = arith.truncf %108 : vector<32x256xf32> to vector<32x256xbf16>
    %cst_61 = arith.constant dense<0.000000e+00> : vector<32xf32>
    %110 = vector.multi_reduction <add>, %108, %cst_61 [1] : vector<32x256xf32> to vector<32xf32>
    %111 = vector.shape_cast %110 : vector<32xf32> to vector<32x1xf32>
    %cst_62 = arith.constant 2.560000e+02 : f32
    %112 = vector.broadcast %cst_62 : f32 to vector<32x1xf32>
    %113 = arith.divf %111, %112 : vector<32x1xf32>
    %cst_63 = arith.constant dense<0xFF800000> : vector<32xf32>
    %114 = vector.multi_reduction <maximumf>, %108, %cst_63 [1] : vector<32x256xf32> to vector<32xf32>
    %115 = vector.shape_cast %114 : vector<32xf32> to vector<32x1xf32>
    %116 = tpu.concatenate %113, %115 in 1 : vector<32x1xf32>, vector<32x1xf32> -> vector<32x2xf32>
    %c0_64 = arith.constant 0 : index
    %c128_65 = arith.constant 128 : index
    %117 = vector.load %arg15[%c0_64, %c128_65] : memref<32x512xbf16, #tpu.memory_space<vmem>>, vector<32x256xbf16>
    tpu.vector_store %arg15[%c0_64, %c128_65], %109 {strides = array<i32>} : memref<32x512xbf16, #tpu.memory_space<vmem>>, vector<32x256xbf16>,
    %c0_66 = arith.constant 0 : index
    %c111_67 = arith.constant 111 : index
    %118 = vector.load %arg15[%c0_66, %c111_67] : memref<32x512xbf16, #tpu.memory_space<vmem>>, vector<32x256xbf16>
    %119 = arith.mulf %118, %21 : vector<32x256xbf16>
    %c0_68 = arith.constant 0 : index
    %c112_69 = arith.constant 112 : index
    %120 = vector.load %arg15[%c0_68, %c112_69] : memref<32x512xbf16, #tpu.memory_space<vmem>>, vector<32x256xbf16>
    %c0_70 = arith.constant 0 : index
    %c113_71 = arith.constant 113 : index
    %121 = vector.load %arg15[%c0_70, %c113_71] : memref<32x512xbf16, #tpu.memory_space<vmem>>, vector<32x256xbf16>
    %122 = arith.mulf %121, %26 : vector<32x256xbf16>
    %c0_72 = arith.constant 0 : index
    %c127_73 = arith.constant 127 : index
    %123 = vector.load %arg15[%c0_72, %c127_73] : memref<32x512xbf16, #tpu.memory_space<vmem>>, vector<32x256xbf16>
    %124 = arith.mulf %123, %21 : vector<32x256xbf16>
    %c0_74 = arith.constant 0 : index
    %c128_75 = arith.constant 128 : index
    %125 = vector.load %arg15[%c0_74, %c128_75] : memref<32x512xbf16, #tpu.memory_space<vmem>>, vector<32x256xbf16>
    %c0_76 = arith.constant 0 : index
    %c129_77 = arith.constant 129 : index
    %126 = vector.load %arg15[%c0_76, %c129_77] : memref<32x512xbf16, #tpu.memory_space<vmem>>, vector<32x256xbf16>
    %127 = arith.mulf %126, %26 : vector<32x256xbf16>
    %c0_78 = arith.constant 0 : index
    %c143_79 = arith.constant 143 : index
    %128 = vector.load %arg15[%c0_78, %c143_79] : memref<32x512xbf16, #tpu.memory_space<vmem>>, vector<32x256xbf16>
    %129 = arith.mulf %128, %21 : vector<32x256xbf16>
    %c0_80 = arith.constant 0 : index
    %c144_81 = arith.constant 144 : index
    %130 = vector.load %arg15[%c0_80, %c144_81] : memref<32x512xbf16, #tpu.memory_space<vmem>>, vector<32x256xbf16>
    %c0_82 = arith.constant 0 : index
    %c145_83 = arith.constant 145 : index
    %131 = vector.load %arg15[%c0_82, %c145_83] : memref<32x512xbf16, #tpu.memory_space<vmem>>, vector<32x256xbf16>
    %132 = arith.mulf %131, %26 : vector<32x256xbf16>
    %133 = tpu.concatenate %119, %120, %122, %124, %125, %127, %129, %130, %132 in 0 : vector<32x256xbf16>, vector<32x256xbf16>, vector<32x256xbf16>, vector<32x256xbf16>, vector<32x256xbf16>, vector<32x256xbf16>, vector<32x256xbf16>, vector<32x256xbf16>, vector<32x256xbf16> -> vector<288x256xbf16>
    %c0_84 = arith.constant 0 : index
    %c0_85 = arith.constant 0 : index
    %134 = vector.load %arg6[%c0_84, %c0_85] : memref<32x288xbf16, #tpu.memory_space<vmem>>, vector<32x288xbf16>
    %cst_86 = arith.constant dense<0.000000e+00> : vector<32x256xf32>
    %135 = tpu.matmul %134, %133, %cst_86 {dimension_numbers = #tpu.dot_dimension_numbers<[1], [0], [0], [1], [0, 0, 1, 1], [], []>} : vector<32x288xbf16>, vector<288x256xbf16>, vector<32x256xf32> -> vector<32x256xf32>
    %c0_87 = arith.constant 0 : index
    %c0_88 = arith.constant 0 : index
    %136 = vector.load %arg7[%c0_87, %c0_88] : memref<32x1xf32, #tpu.memory_space<vmem>>, vector<32x1xf32>
    %137 = vector.broadcast %136 : vector<32x1xf32> to vector<32x256xf32>
    %138 = arith.addf %135, %137 : vector<32x256xf32>
    %cst_89 = arith.constant 0.000000e+00 : f32
    %139 = vector.broadcast %cst_89 : f32 to vector<32x256xf32>
    %140 = arith.cmpf oge, %138, %139 : vector<32x256xf32>
    %cst_90 = arith.constant 0.00999999977 : f32
    %141 = vector.broadcast %cst_90 : f32 to vector<32x256xf32>
    %142 = arith.mulf %141, %138 : vector<32x256xf32>
    %143 = arith.select %140, %138, %142 : vector<32x256xi1>, vector<32x256xf32>
    %144 = arith.truncf %143 : vector<32x256xf32> to vector<32x256xbf16>
    %cst_91 = arith.constant dense<0.000000e+00> : vector<32xf32>
    %145 = vector.multi_reduction <add>, %143, %cst_91 [1] : vector<32x256xf32> to vector<32xf32>
    %146 = vector.shape_cast %145 : vector<32xf32> to vector<32x1xf32>
    %cst_92 = arith.constant 2.560000e+02 : f32
    %147 = vector.broadcast %cst_92 : f32 to vector<32x1xf32>
    %148 = arith.divf %146, %147 : vector<32x1xf32>
    %cst_93 = arith.constant dense<0xFF800000> : vector<32xf32>
    %149 = vector.multi_reduction <maximumf>, %143, %cst_93 [1] : vector<32x256xf32> to vector<32xf32>
    %150 = vector.shape_cast %149 : vector<32xf32> to vector<32x1xf32>
    %151 = tpu.concatenate %148, %150 in 1 : vector<32x1xf32>, vector<32x1xf32> -> vector<32x2xf32>
    %c0_94 = arith.constant 0 : index
    %c128_95 = arith.constant 128 : index
    %152 = vector.load %arg15[%c0_94, %c128_95] : memref<32x512xbf16, #tpu.memory_space<vmem>>, vector<32x256xbf16>
    tpu.vector_store %arg15[%c0_94, %c128_95], %144 {strides = array<i32>} : memref<32x512xbf16, #tpu.memory_space<vmem>>, vector<32x256xbf16>,
    %c0_96 = arith.constant 0 : index
    %c111_97 = arith.constant 111 : index
    %153 = vector.load %arg15[%c0_96, %c111_97] : memref<32x512xbf16, #tpu.memory_space<vmem>>, vector<32x256xbf16>
    %154 = arith.mulf %153, %21 : vector<32x256xbf16>
    %c0_98 = arith.constant 0 : index
    %c112_99 = arith.constant 112 : index
    %155 = vector.load %arg15[%c0_98, %c112_99] : memref<32x512xbf16, #tpu.memory_space<vmem>>, vector<32x256xbf16>
    %c0_100 = arith.constant 0 : index
    %c113_101 = arith.constant 113 : index
    %156 = vector.load %arg15[%c0_100, %c113_101] : memref<32x512xbf16, #tpu.memory_space<vmem>>, vector<32x256xbf16>
    %157 = arith.mulf %156, %26 : vector<32x256xbf16>
    %c0_102 = arith.constant 0 : index
    %c127_103 = arith.constant 127 : index
    %158 = vector.load %arg15[%c0_102, %c127_103] : memref<32x512xbf16, #tpu.memory_space<vmem>>, vector<32x256xbf16>
    %159 = arith.mulf %158, %21 : vector<32x256xbf16>
    %c0_104 = arith.constant 0 : index
    %c128_105 = arith.constant 128 : index
    %160 = vector.load %arg15[%c0_104, %c128_105] : memref<32x512xbf16, #tpu.memory_space<vmem>>, vector<32x256xbf16>
    %c0_106 = arith.constant 0 : index
    %c129_107 = arith.constant 129 : index
    %161 = vector.load %arg15[%c0_106, %c129_107] : memref<32x512xbf16, #tpu.memory_space<vmem>>, vector<32x256xbf16>
    %162 = arith.mulf %161, %26 : vector<32x256xbf16>
    %c0_108 = arith.constant 0 : index
    %c143_109 = arith.constant 143 : index
    %163 = vector.load %arg15[%c0_108, %c143_109] : memref<32x512xbf16, #tpu.memory_space<vmem>>, vector<32x256xbf16>
    %164 = arith.mulf %163, %21 : vector<32x256xbf16>
    %c0_110 = arith.constant 0 : index
    %c144_111 = arith.constant 144 : index
    %165 = vector.load %arg15[%c0_110, %c144_111] : memref<32x512xbf16, #tpu.memory_space<vmem>>, vector<32x256xbf16>
    %c0_112 = arith.constant 0 : index
    %c145_113 = arith.constant 145 : index
    %166 = vector.load %arg15[%c0_112, %c145_113] : memref<32x512xbf16, #tpu.memory_space<vmem>>, vector<32x256xbf16>
    %167 = arith.mulf %166, %26 : vector<32x256xbf16>
    %168 = tpu.concatenate %154, %155, %157, %159, %160, %162, %164, %165, %167 in 0 : vector<32x256xbf16>, vector<32x256xbf16>, vector<32x256xbf16>, vector<32x256xbf16>, vector<32x256xbf16>, vector<32x256xbf16>, vector<32x256xbf16>, vector<32x256xbf16>, vector<32x256xbf16> -> vector<288x256xbf16>
    %c0_114 = arith.constant 0 : index
    %c0_115 = arith.constant 0 : index
    %169 = vector.load %arg8[%c0_114, %c0_115] : memref<32x288xbf16, #tpu.memory_space<vmem>>, vector<32x288xbf16>
    %cst_116 = arith.constant dense<0.000000e+00> : vector<32x256xf32>
    %170 = tpu.matmul %169, %168, %cst_116 {dimension_numbers = #tpu.dot_dimension_numbers<[1], [0], [0], [1], [0, 0, 1, 1], [], []>} : vector<32x288xbf16>, vector<288x256xbf16>, vector<32x256xf32> -> vector<32x256xf32>
    %c0_117 = arith.constant 0 : index
    %c0_118 = arith.constant 0 : index
    %171 = vector.load %arg9[%c0_117, %c0_118] : memref<32x1xf32, #tpu.memory_space<vmem>>, vector<32x1xf32>
    %172 = vector.broadcast %171 : vector<32x1xf32> to vector<32x256xf32>
    %173 = arith.addf %170, %172 : vector<32x256xf32>
    %cst_119 = arith.constant 0.000000e+00 : f32
    %174 = vector.broadcast %cst_119 : f32 to vector<32x256xf32>
    %175 = arith.cmpf oge, %173, %174 : vector<32x256xf32>
    %cst_120 = arith.constant 0.00999999977 : f32
    %176 = vector.broadcast %cst_120 : f32 to vector<32x256xf32>
    %177 = arith.mulf %176, %173 : vector<32x256xf32>
    %178 = arith.select %175, %173, %177 : vector<32x256xi1>, vector<32x256xf32>
    %179 = arith.truncf %178 : vector<32x256xf32> to vector<32x256xbf16>
    %cst_121 = arith.constant dense<0.000000e+00> : vector<32xf32>
    %180 = vector.multi_reduction <add>, %178, %cst_121 [1] : vector<32x256xf32> to vector<32xf32>
    %181 = vector.shape_cast %180 : vector<32xf32> to vector<32x1xf32>
    %cst_122 = arith.constant 2.560000e+02 : f32
    %182 = vector.broadcast %cst_122 : f32 to vector<32x1xf32>
    %183 = arith.divf %181, %182 : vector<32x1xf32>
    %cst_123 = arith.constant dense<0xFF800000> : vector<32xf32>
    %184 = vector.multi_reduction <maximumf>, %178, %cst_123 [1] : vector<32x256xf32> to vector<32xf32>
    %185 = vector.shape_cast %184 : vector<32xf32> to vector<32x1xf32>
    %186 = tpu.concatenate %183, %185 in 1 : vector<32x1xf32>, vector<32x1xf32> -> vector<32x2xf32>
    %187 = tpu.concatenate %40, %81, %116, %151, %186 in 0 : vector<16x2xf32>, vector<32x2xf32>, vector<32x2xf32>, vector<32x2xf32>, vector<32x2xf32> -> vector<144x2xf32>
    %c0_124 = arith.constant 0 : index
    %c0_125 = arith.constant 0 : index
    %188 = vector.load %arg10[%c0_124, %c0_125] : memref<8x144xf32, #tpu.memory_space<vmem>>, vector<8x144xf32>
    %cst_126 = arith.constant dense<0.000000e+00> : vector<8x2xf32>
    %189 = tpu.matmul %188, %187, %cst_126 {dimension_numbers = #tpu.dot_dimension_numbers<[1], [0], [0], [1], [0, 0, 1, 1], [], []>} : vector<8x144xf32>, vector<144x2xf32>, vector<8x2xf32> -> vector<8x2xf32>
    %cst_127 = arith.constant 0.000000e+00 : f32
    %190 = vector.broadcast %cst_127 : f32 to vector<8x2xf32>
    %191 = arith.maximumf %189, %190 : vector<8x2xf32>
    %c0_128 = arith.constant 0 : index
    %c0_129 = arith.constant 0 : index
    %192 = vector.load %arg11[%c0_128, %c0_129] : memref<144x8xf32, #tpu.memory_space<vmem>>, vector<144x8xf32>
    %cst_130 = arith.constant dense<0.000000e+00> : vector<144x2xf32>
    %193 = tpu.matmul %192, %191, %cst_130 {dimension_numbers = #tpu.dot_dimension_numbers<[1], [0], [0], [1], [0, 0, 1, 1], [], []>} : vector<144x8xf32>, vector<8x2xf32>, vector<144x2xf32> -> vector<144x2xf32>
    %194 = vector.extract_strided_slice %193 {offsets = [0, 0], sizes = [144, 1], strides = [1, 1]} : vector<144x2xf32> to vector<144x1xf32>
    %195 = vector.extract_strided_slice %193 {offsets = [0, 1], sizes = [144, 1], strides = [1, 1]} : vector<144x2xf32> to vector<144x1xf32>
    %196 = arith.addf %194, %195 : vector<144x1xf32>
    %cst_131 = arith.constant 0.000000e+00 : f32
    %197 = vector.broadcast %cst_131 : f32 to vector<144x1xf32>
    %198 = arith.subf %197, %196 : vector<144x1xf32>
    %199 = math.exp %198 : vector<144x1xf32>
    %cst_132 = arith.constant 1.000000e+00 : f32
    %200 = vector.broadcast %cst_132 : f32 to vector<144x1xf32>
    %201 = arith.addf %200, %199 : vector<144x1xf32>
    %cst_133 = arith.constant 1.000000e+00 : f32
    %202 = vector.broadcast %cst_133 : f32 to vector<144x1xf32>
    %203 = arith.divf %202, %201 : vector<144x1xf32>
    %cst_134 = arith.constant 0.000000e+00 : f32
    %204 = vector.broadcast %cst_134 : f32 to vector<4x256xf32>
    %205 = vector.extract_strided_slice %203 {offsets = [0, 0], sizes = [16, 1], strides = [1, 1]} : vector<144x1xf32> to vector<16x1xf32>
    %206 = arith.truncf %205 : vector<16x1xf32> to vector<16x1xbf16>
    %c0_135 = arith.constant 0 : index
    %c0_136 = arith.constant 0 : index
    %207 = vector.load %arg12[%c0_135, %c0_136] : memref<4x144xbf16, #tpu.memory_space<vmem>>, vector<4x16xbf16>
    %208 = vector.broadcast %206 : vector<16x1xbf16> to vector<16x256xbf16>
    %209 = arith.mulf %33, %208 : vector<16x256xbf16>
    %cst_137 = arith.constant dense<0.000000e+00> : vector<4x256xf32>
    %210 = tpu.matmul %207, %209, %cst_137 {dimension_numbers = #tpu.dot_dimension_numbers<[1], [0], [0], [1], [0, 0, 1, 1], [], []>} : vector<4x16xbf16>, vector<16x256xbf16>, vector<4x256xf32> -> vector<4x256xf32>
    %211 = arith.addf %204, %210 : vector<4x256xf32>
    %212 = vector.extract_strided_slice %203 {offsets = [16, 0], sizes = [32, 1], strides = [1, 1]} : vector<144x1xf32> to vector<32x1xf32>
    %213 = arith.truncf %212 : vector<32x1xf32> to vector<32x1xbf16>
    %c0_138 = arith.constant 0 : index
    %c16 = arith.constant 16 : index
    %214 = vector.load %arg12[%c0_138, %c16] : memref<4x144xbf16, #tpu.memory_space<vmem>>, vector<4x32xbf16>
    %215 = vector.broadcast %213 : vector<32x1xbf16> to vector<32x256xbf16>
    %216 = arith.mulf %74, %215 : vector<32x256xbf16>
    %cst_139 = arith.constant dense<0.000000e+00> : vector<4x256xf32>
    %217 = tpu.matmul %214, %216, %cst_139 {dimension_numbers = #tpu.dot_dimension_numbers<[1], [0], [0], [1], [0, 0, 1, 1], [], []>} : vector<4x32xbf16>, vector<32x256xbf16>, vector<4x256xf32> -> vector<4x256xf32>
    %218 = arith.addf %211, %217 : vector<4x256xf32>
    %219 = vector.extract_strided_slice %203 {offsets = [48, 0], sizes = [32, 1], strides = [1, 1]} : vector<144x1xf32> to vector<32x1xf32>
    %220 = arith.truncf %219 : vector<32x1xf32> to vector<32x1xbf16>
    %c0_140 = arith.constant 0 : index
    %c48 = arith.constant 48 : index
    %221 = vector.load %arg12[%c0_140, %c48] : memref<4x144xbf16, #tpu.memory_space<vmem>>, vector<4x32xbf16>
    %222 = vector.broadcast %220 : vector<32x1xbf16> to vector<32x256xbf16>
    %223 = arith.mulf %109, %222 : vector<32x256xbf16>
    %cst_141 = arith.constant dense<0.000000e+00> : vector<4x256xf32>
    %224 = tpu.matmul %221, %223, %cst_141 {dimension_numbers = #tpu.dot_dimension_numbers<[1], [0], [0], [1], [0, 0, 1, 1], [], []>} : vector<4x32xbf16>, vector<32x256xbf16>, vector<4x256xf32> -> vector<4x256xf32>
    %225 = arith.addf %218, %224 : vector<4x256xf32>
    %226 = vector.extract_strided_slice %203 {offsets = [80, 0], sizes = [32, 1], strides = [1, 1]} : vector<144x1xf32> to vector<32x1xf32>
    %227 = arith.truncf %226 : vector<32x1xf32> to vector<32x1xbf16>
    %c0_142 = arith.constant 0 : index
    %c80 = arith.constant 80 : index
    %228 = vector.load %arg12[%c0_142, %c80] : memref<4x144xbf16, #tpu.memory_space<vmem>>, vector<4x32xbf16>
    %229 = vector.broadcast %227 : vector<32x1xbf16> to vector<32x256xbf16>
    %230 = arith.mulf %144, %229 : vector<32x256xbf16>
    %cst_143 = arith.constant dense<0.000000e+00> : vector<4x256xf32>
    %231 = tpu.matmul %228, %230, %cst_143 {dimension_numbers = #tpu.dot_dimension_numbers<[1], [0], [0], [1], [0, 0, 1, 1], [], []>} : vector<4x32xbf16>, vector<32x256xbf16>, vector<4x256xf32> -> vector<4x256xf32>
    %232 = arith.addf %225, %231 : vector<4x256xf32>
    %233 = vector.extract_strided_slice %203 {offsets = [112, 0], sizes = [32, 1], strides = [1, 1]} : vector<144x1xf32> to vector<32x1xf32>
    %234 = arith.truncf %233 : vector<32x1xf32> to vector<32x1xbf16>
    %c0_144 = arith.constant 0 : index
    %c112_145 = arith.constant 112 : index
    %235 = vector.load %arg12[%c0_144, %c112_145] : memref<4x144xbf16, #tpu.memory_space<vmem>>, vector<4x32xbf16>
    %236 = vector.broadcast %234 : vector<32x1xbf16> to vector<32x256xbf16>
    %237 = arith.mulf %179, %236 : vector<32x256xbf16>
    %cst_146 = arith.constant dense<0.000000e+00> : vector<4x256xf32>
    %238 = tpu.matmul %235, %237, %cst_146 {dimension_numbers = #tpu.dot_dimension_numbers<[1], [0], [0], [1], [0, 0, 1, 1], [], []>} : vector<4x32xbf16>, vector<32x256xbf16>, vector<4x256xf32> -> vector<4x256xf32>
    %239 = arith.addf %232, %238 : vector<4x256xf32>
    %c0_147 = arith.constant 0 : index
    %c0_148 = arith.constant 0 : index
    %240 = vector.load %arg13[%c0_147, %c0_148] : memref<4x1xf32, #tpu.memory_space<vmem>>, vector<4x1xf32>
    %241 = vector.broadcast %240 : vector<4x1xf32> to vector<4x256xf32>
    %242 = arith.addf %239, %241 : vector<4x256xf32>
    %c0_149 = arith.constant 0 : index
    %c0_150 = arith.constant 0 : index
    %c0_151 = arith.constant 0 : index
    %243 = vector.load %arg14[%c0_149, %c0_150, %c0_151] : memref<1x4x256xf32, #tpu.memory_space<vmem>>, vector<1x4x256xf32>
    %244 = vector.shape_cast %243 : vector<1x4x256xf32> to vector<4x256xf32>
    %245 = vector.shape_cast %242 : vector<4x256xf32> to vector<1x4x256xf32>
    tpu.vector_store %arg14[%c0_149, %c0_150, %c0_151], %245 {strides = array<i32>} : memref<1x4x256xf32, #tpu.memory_space<vmem>>, vector<1x4x256xf32>,
    return
  }
  func.func @transform_0(%arg0: i32) -> (i32, i32, i32) {
    %c0_i32 = arith.constant 0 : i32
    %c0_i32_0 = arith.constant 0 : i32
    %c0_i32_1 = arith.constant 0 : i32
    return %arg0, %c0_i32, %c0_i32_0 : i32, i32, i32
  }
  func.func @transform_1(%arg0: i32) -> (i32, i32) {
    %c0_i32 = arith.constant 0 : i32
    %c0_i32_0 = arith.constant 0 : i32
    %c0_i32_1 = arith.constant 0 : i32
    return %c0_i32, %c0_i32_0 : i32, i32
  }
  func.func @transform_2(%arg0: i32) -> (i32, i32) {
    %c0_i32 = arith.constant 0 : i32
    %c0_i32_0 = arith.constant 0 : i32
    %c0_i32_1 = arith.constant 0 : i32
    return %c0_i32, %c0_i32_0 : i32, i32
  }
  func.func @transform_3(%arg0: i32) -> (i32, i32) {
    %c0_i32 = arith.constant 0 : i32
    %c0_i32_0 = arith.constant 0 : i32
    %c0_i32_1 = arith.constant 0 : i32
    return %c0_i32, %c0_i32_0 : i32, i32
  }
  func.func @transform_4(%arg0: i32) -> (i32, i32) {
    %c0_i32 = arith.constant 0 : i32
    %c0_i32_0 = arith.constant 0 : i32
    %c0_i32_1 = arith.constant 0 : i32
    return %c0_i32, %c0_i32_0 : i32, i32
  }
  func.func @transform_5(%arg0: i32) -> (i32, i32) {
    %c0_i32 = arith.constant 0 : i32
    %c0_i32_0 = arith.constant 0 : i32
    %c0_i32_1 = arith.constant 0 : i32
    return %c0_i32, %c0_i32_0 : i32, i32
  }
  func.func @transform_6(%arg0: i32) -> (i32, i32) {
    %c0_i32 = arith.constant 0 : i32
    %c0_i32_0 = arith.constant 0 : i32
    %c0_i32_1 = arith.constant 0 : i32
    return %c0_i32, %c0_i32_0 : i32, i32
  }
  func.func @transform_7(%arg0: i32) -> (i32, i32) {
    %c0_i32 = arith.constant 0 : i32
    %c0_i32_0 = arith.constant 0 : i32
    %c0_i32_1 = arith.constant 0 : i32
    return %c0_i32, %c0_i32_0 : i32, i32
  }
  func.func @transform_8(%arg0: i32) -> (i32, i32) {
    %c0_i32 = arith.constant 0 : i32
    %c0_i32_0 = arith.constant 0 : i32
    %c0_i32_1 = arith.constant 0 : i32
    return %c0_i32, %c0_i32_0 : i32, i32
  }
  func.func @transform_9(%arg0: i32) -> (i32, i32) {
    %c0_i32 = arith.constant 0 : i32
    %c0_i32_0 = arith.constant 0 : i32
    %c0_i32_1 = arith.constant 0 : i32
    return %c0_i32, %c0_i32_0 : i32, i32
  }
  func.func @transform_10(%arg0: i32) -> (i32, i32) {
    %c0_i32 = arith.constant 0 : i32
    %c0_i32_0 = arith.constant 0 : i32
    %c0_i32_1 = arith.constant 0 : i32
    return %c0_i32, %c0_i32_0 : i32, i32
  }
  func.func @transform_11(%arg0: i32) -> (i32, i32) {
    %c0_i32 = arith.constant 0 : i32
    %c0_i32_0 = arith.constant 0 : i32
    %c0_i32_1 = arith.constant 0 : i32
    return %c0_i32, %c0_i32_0 : i32, i32
  }
  func.func @transform_12(%arg0: i32) -> (i32, i32) {
    %c0_i32 = arith.constant 0 : i32
    %c0_i32_0 = arith.constant 0 : i32
    %c0_i32_1 = arith.constant 0 : i32
    return %c0_i32, %c0_i32_0 : i32, i32
  }
  func.func @transform_13(%arg0: i32) -> (i32, i32, i32) {
    %c0_i32 = arith.constant 0 : i32
    %c0_i32_0 = arith.constant 0 : i32
    %c0_i32_1 = arith.constant 0 : i32
    return %arg0, %c0_i32, %c0_i32_0 : i32, i32, i32
  }
}

</mosaic_0001>

<bundles_post_ra>
// kernel: tpu_custom_call.1
= control target key start
LH: loop header
LB: loop body
LE: loop exit
PB: predicated region body
PF: predicated region fallthrough
CT: control target
= control target key end

     0   :  { %s6161_s0 = inlined_call_operand.vmem [shape: f32[2,16,256], index: 0, kind: input, shape index: {}]   ;;  %s6162_s1 = inlined_call_operand.vmem [shape: bf16[32,144], index: 1, kind: input, shape index: {}]   ;;  %s6163_s2 = inlined_call_operand.vmem [shape: f32[32,1], index: 2, kind: input, shape index: {}]   ;;  %s6164_s3 = inlined_call_operand.vmem [shape: bf16[32,288], index: 3, kind: input, shape index: {}]   ;;  %s6165_s4 = inlined_call_operand.vmem [shape: f32[32,1], index: 4, kind: input, shape index: {}]   ;;  %s6166_s5 = inlined_call_operand.vmem [shape: bf16[32,288], index: 5, kind: input, shape index: {}]   ;;  %s6167_s6 = inlined_call_operand.vmem [shape: f32[32,1], index: 6, kind: input, shape index: {}]   ;;  %s6168_s7 = inlined_call_operand.vmem [shape: bf16[32,288], index: 7, kind: input, shape index: {}]   ;;  %s6169_s8 = inlined_call_operand.vmem [shape: f32[32,1], index: 8, kind: input, shape index: {}]   ;;  %s6170_s9 = inlined_call_operand.vmem [shape: f32[8,144], index: 9, kind: input, shape index: {}]   ;;  %s6171_s10 = inlined_call_operand.vmem [shape: f32[144,8], index: 10, kind: input, shape index: {}]   ;;  %s6172_s11 = inlined_call_operand.vmem [shape: bf16[4,144], index: 11, kind: input, shape index: {}]   ;;  %s6173_s12 = inlined_call_operand.vmem [shape: f32[4,1], index: 12, kind: input, shape index: {}]   ;;  %s6174_s13 = inlined_call_operand.hbm [shape: f32[2,4,256], index: 13, kind: output, shape index: {}]  }
   0x1   :  { %6220 = sst [smem:[#allocation32_spill]] %s6161_s0 }
   0x2   :  { %6221 = sst [smem:[#allocation33_spill]] %s6162_s1 }
   0x3   :  { %6222 = sst [smem:[#allocation34_spill]] %s6163_s2 }
   0x4   :  { %18 = vsyncpa [#allocation4], 0 }
   0x5   :  { %20 = vsyncpa [#allocation4 + $0x1], 0  ;;  %s4331_s25 = smov 0   ;;  %s4333_s26 = smov 0  }
   0x6   :  { %s4335_s27 = smov 0   ;;  %s4337_s28 = smov 0  }
   0x7 LB: > { %6223 = sst [smem:[#allocation6_spill]] %s4227_s25  ;;  %s4352_s29 = sadd.s32 4294967295, %s4239_s28   ;;  %s4239_s28 = sphi %s4337_s28, %s6298_s28   ;;  %s4235_s27 = sphi %s4335_s27, %s6300_s27   ;;  %s4231_s26 = sphi %s4333_s26, %s6302_s26   ;;  %s4227_s25 = sphi %s4331_s25, %s6301_s25  }
   0x8   : > { %6224 = sst [smem:[#allocation7_spill]] %s4235_s27  ;;  %s3783_s30 = sadd.s32 4294967294, %s4239_s28  }
   0x9   : > { %6225 = sst [smem:[#allocation8_spill]] %s4239_s28  ;;  %s4356_s14 = sadd.s32 1, %s4239_s28  }
   0xa   : > { %6226 = sst [smem:[#allocation9_spill]] %s4356_s14  ;;  %s311_s15 = sadd.s32 1, %s4235_s27 }
   0xb   : > { %s308_s16 = ssub.s32 %s4239_s28, %s4356_s14  ;;  %p321_p0 = scmp.ne.s32.totalorder %s4235_s27, %s4231_s26 }
   0xc   : > { %p309_p1 = scmp.eq.s32.totalorder %s308_s16, 0  ;;  %p322_p2 = scmp.eq.s32.totalorder %s4352_s29, 1 }
   0xd   : > { %p327_p3 = scmp.ne.s32.totalorder %s4231_s26, %s4227_s25  ;;  %p328_p4 = scmp.eq.s32.totalorder %s3783_s30, 1 }
   0xe   : > { %s4367_s17 = scalar_select %p309_p1, %s4235_s27, %s311_s15  }
   0xf   : > { %p4369_p5 = por %p322_p2, %p321_p0  ;;  %p4373_p6 = por %p328_p4, %p327_p3 }
  0x10   : > { %6227 = sst [smem:[#allocation10_spill]] %s4367_s17  ;;  %p3786_p7 = scmp.ge.s32.totalorder %s4239_s28, 1 }
  0x11   : > { %s6229_s19 = scalar_select %p4373_p6, 1, 0 }
  0x12   : > { %p390_p8 = scmp.lt.s32.totalorder %s4239_s28, 3 }
  0x13   : > { %6230 = sst [smem:[#allocation11_spill]] %s6229_s19 }
  0x14   : > { %p391_p9 = pnand %p3786_p7, %p390_p8 }
  0x16   : > { %394 = sbr.rel (%p391_p9) target bundleno = 3515 (0xdbb), region = 72 }
  0x1d   : > { %v6196_v0 = vlaneseq  ;;  %v6197_v1 = vmov 0   ;;  %v4242_v6 = vmov 0.0   ;;  %s4243_s20 = smov 113   ;;  %s6191_s21 = smov 127   ;;  %vm536_vm4 = vcmask 924672  }
  0x1e   : > { %4040 = vset.pattern.permute.xlu1 %v6197_v1  ;;  %4039 = vset.pattern.permute.xlu0 %v6197_v1  ;;  %p434_p10 = scmp.lt.s32.totalorder %s4352_s29, 1  ;;  %s4245_s23 = smov 1   ;;  %vm548_vm5 = vcmask 1039360   ;;  %vm508_vm6 = vcmask 7168   ;;  %vm573_vm7 = vcmask 121856   ;;  %vm585_vm8 = vcmask 138240  }
  0x1f   : > { %v441_v2 = vand.u32 127, %v6196_v0  ;;  %s4246_s30 = smov 15   ;;  %s6231_s0 = sld [smem:[#allocation32_spill]]  ;;  %vm522_vm9 = vcmask 908288   ;;  %vm613_vm10 = vcmask 1031168   ;;  %vm625_vm11 = vcmask 916480  }
  0x20   : > { %s435_s22 = scalar_select %p434_p10, %s4352_s29, 1  ;;  %vm642_vm12 = vcmask 900096   ;;  %vm664_vm13 = vcmask 777216   ;;  %vm654_vm14 = vcmask 785408   ;;  %vm676_vm15 = vcmask 769024  }
  0x21   : > { %v447_v3 = vand.u32 15, %v441_v2  ;;  %v442_v4 = vadd.s32 128, %v441_v2  ;;  %s6183_s15 = smov 110   ;;  %s6179_s16 = smov 95  }
  0x22   : > { %s3856_s24 = sshll.u32 %s435_s22, 5  ;;  %s6175_s22 = smov 111  }
  0x23   : > { %vm475_vm0 = vcmp.ne.s32.totalorder %v447_v3, 15  ;;  %vm467_vm1 = vcmp.ne.s32.totalorder %v447_v3, 0  ;;  %v454_v5 = vand.u32 15, %v442_v4  ;;  %s6234_s1 = sld [smem:[#allocation33_spill]]  ;;  %s6235_s2 = sld [smem:[#allocation34_spill]] }
  0x24   : > { %v3792_v7 = vsel %vm475_vm0, 1.0, %v4242_v6  ;;  %v3790_v8 = vsel %vm467_vm1, 1.0, %v4242_v6  ;;  %vm818_vm0 = vcmask 130048   ;;  %s6248_s27 = smov 17   ;;  %s4259_s14 = smov 48  }
  0x25   : > { %v481_v9 = vpack.c.bf16 %v3792_v7, %v3792_v7  ;;  %v473_v10 = vpack.c.bf16 %v3790_v8, %v3790_v8  ;;  %vm476_vm2 = vcmp.ne.s32.totalorder %v454_v5, 15  ;;  %vm468_vm3 = vcmp.ne.s32.totalorder %v454_v5, 0  ;;  %s4389_s17 = scalar_lea.vmem %s6231_s0, %s3856_s24  ;;  %s6185_s24 = smov 112  }
  0x26   : > { %v3793_v11 = vsel %vm476_vm2, 1.0, %v4242_v6  ;;  %v3791_v12 = vsel %vm468_vm3, 1.0, %v4242_v6  ;;  %v487_v15 = vld [vmem:[%s4389_s17] sm:$0xff]  ;;  %v489_v16 = vld [vmem:[%s4389_s17 + $0x10] sm:$0xff]  ;;  %v488_v17 = vld [vmem:[%s4389_s17 + $0x8] sm:$0xff]  ;;  %s6244_s0 = smov 111  }
  0x27   : > { %532 = vrot.lane.b32.xlu0 %v481_v9, %s4243_s20  ;;  %544 = vrot.lane.b32.xlu1 %v473_v10, %s6191_s21  ;;  %v482_v13 = vpack.c.bf16 %v3793_v11, %v3793_v11  ;;  %v474_v14 = vpack.c.bf16 %v3791_v12, %v3791_v12  ;;  %v490_v18 = vld [vmem:[%s4389_s17 + $0x18] sm:$0xff]  ;;  %v4399_v19 = vpack.c.bf16 %v489_v16, %v487_v15 }
  0x28   : > { %v4401_v20 = vpack.c.bf16 %v490_v18, %v488_v17 }
  0x29   : > { %6232 = vst [vmem:[#allocation12_spill] sm:$0xff] %v4399_v19 }
  0x2a   : > { %6233 = vst [vmem:[#allocation13_spill] sm:$0xff] %v4401_v20 }
  0x2b   : > { %534 = vrot.lane.b32.xlu0 %v482_v13, %s4243_s20  ;;  %546 = vrot.lane.b32.xlu1 %v474_v14, %s6191_s21  ;;  %s6189_s20 = smov 17  }
  0x2f   : > { %557 = vrot.lane.b32.xlu0 %v481_v9, %s4245_s23  ;;  %559 = vrot.lane.b32.xlu1 %v482_v13, %s4245_s23  ;;  %s6187_s23 = smov 126  }
  0x33   : > { %569 = vrot.lane.b32.xlu0 %v473_v10, %s4246_s30  ;;  %571 = vrot.lane.b32.xlu1 %v474_v14, %s4246_s30  ;;  %s6181_s30 = smov 96  }
  0x37   : > { %581 = vrot.lane.b32.xlu0 %v481_v9, %s6189_s20  ;;  %583 = vrot.lane.b32.xlu1 %v482_v13, %s6189_s20 }
  0x3b   : > { %518 = vrot.lane.b32.xlu0 %v473_v10, %s6175_s22  ;;  %520 = vrot.lane.b32.xlu1 %v474_v14, %s6175_s22 }
  0x3f   : > { %598 = vrot.lane.b32.xlu0 %v4399_v19, %s6191_s21  ;;  %600 = vrot.lane.b32.xlu1 %v4401_v20, %s6191_s21 }
  0x43   : > { %596 = vrot.lane.b32.xlu0 %v6197_v1, %s6191_s21  ;;  %628 = vrot.lane.b32.xlu1 %v4399_v19, %s6175_s22 }
  0x47   : > { %630 = vrot.lane.b32.xlu0 %v4401_v20, %s6175_s22  ;;  %s6177_s22 = smov 94  }
  0x99   : > { %v533_v21 = vpop.permute.xlu0 %532  ;;  %v545_v22 = vpop.permute.xlu1 %544 }
  0x9a   : > { %v4413_v23 = vmul.bf16 0, %v533_v21  ;;  %v4415_v24 = vmul.bf16 0, %v545_v22 }
  0x9c   : > { %607 = vrot.lane.b32.xlu1 %v4413_v23, %s6187_s23  ;;  %619 = vrot.lane.b32.xlu0 %v4415_v24, %s6185_s24 }
  0x9d   : > { %v4421_v25 = vpop.permute.xlu0 %534  ;;  %v4423_v26 = vpop.permute.xlu1 %546 }
  0x9e   : > { %v555_v27 = vmul.bf16 %v4423_v26, %v4401_v20  ;;  %v543_v28 = vmul.bf16 %v4421_v25, %v4401_v20  ;;  %v4430_v29 = vsel %vm536_vm4, %v533_v21, %v4421_v25  ;;  %v4447_v36 = vsel %vm548_vm5, %v545_v22, %v4423_v26 }
  0x9f   : > { %v542_v31 = vmul.bf16 %v4430_v29, %v4399_v19  ;;  %v554_v38 = vmul.bf16 %v4447_v36, %v4399_v19 }
  0xa0   : > { %623 = vrot.lane.b32.xlu1 %v555_v27, %s6185_s24  ;;  %611 = vrot.lane.b32.xlu0 %v543_v28, %s6187_s23 }
  0xa1   : > { %v4434_v30 = vpop.permute.xlu0 %557  ;;  %v560_v32 = vpop.permute.xlu1 %559 }
  0xa2   : > { %v566_v35 = vmul.bf16 %v4434_v30, %v4399_v19  ;;  %v4449_v37 = vmul.bf16 0, %v560_v32  ;;  %v4464_v42 = vsel %vm508_vm6, %v4434_v30, %v560_v32 }
  0xa3   : > { %v567_v45 = vmul.bf16 %v4464_v42, %v4401_v20 }
  0xa4   : > { %609 = vrot.lane.b32.xlu1 %v542_v31, %s6187_s23  ;;  %s6236_s23 = smov 126  }
  0xa5   : > { %v4439_v33 = vpop.permute.xlu0 %569  ;;  %v572_v39 = vpop.permute.xlu1 %571 }
  0xa6   : > { %v578_v34 = vmul.bf16 %v4439_v33, %v4399_v19  ;;  %v4455_v40 = vmul.bf16 0, %v572_v39  ;;  %v4467_v43 = vsel %vm573_vm7, %v4439_v33, %v572_v39 }
  0xa7   : > { %v579_v46 = vmul.bf16 %v4467_v43, %v4401_v20 }
  0xa8   : > { %648 = vrot.lane.b32.xlu0 %v578_v34, %s6181_s30  ;;  %636 = vrot.lane.b32.xlu1 %v566_v35, %s6183_s15 }
  0xa9   : > { %v4460_v41 = vpop.permute.xlu0 %581  ;;  %v584_v47 = vpop.permute.xlu1 %583 }
  0xaa   : > { %v4481_v48 = vsel %vm585_vm8, %v4460_v41, %v584_v47  ;;  %v590_v51 = vmul.bf16 %v4460_v41, %v4399_v19  ;;  %v4493_v53 = vmul.bf16 0, %v584_v47 }
  0xab   : > { %v591_v52 = vmul.bf16 %v4481_v48, %v4401_v20 }
  0xac   : > { %621 = vrot.lane.b32.xlu0 %v554_v38, %s6185_s24  ;;  %640 = vrot.lane.b32.xlu1 %v4449_v37, %s6183_s15  ;;  %s6237_s24 = smov 112  }
  0xad   : > { %v519_v44 = vpop.permute.xlu0 %518  ;;  %v4483_v49 = vpop.permute.xlu1 %520 }
  0xae   : > { %v4497_v54 = vmul.bf16 0, %v519_v44  ;;  %v529_v57 = vmul.bf16 %v4483_v49, %v4401_v20  ;;  %v4513_v62 = vsel %vm522_vm9, %v519_v44, %v4483_v49 }
  0xaf   : > { %v528_v2 = vmul.bf16 %v4513_v62, %v4399_v19 }
  0xb0   : > { %652 = vrot.lane.b32.xlu0 %v4455_v40, %s6181_s30  ;;  %658 = vrot.lane.b32.xlu1 %v4399_v19, %s6179_s16 }
  0xb1   : > { %v599_v50 = vpop.permute.xlu0 %598  ;;  %v601_v55 = vpop.permute.xlu1 %600 }
  0xb2   : > { %v603_v61 = vsel %vm548_vm5, %v599_v50, %v601_v55 }
  0xb4   : > { %638 = vrot.lane.b32.xlu0 %v567_v45, %s6183_s15  ;;  %650 = vrot.lane.b32.xlu1 %v579_v46, %s6181_s30  ;;  %v4073_v45 = vld [vmem:[%s6234_s1 + $0x4] ss:$8 sps:$4 sm:$0xff]   ;;  %s6238_s15 = smov 110   ;;  %s6240_s30 = smov 95  }
  0xb5   : > { %v597_v56 = vpop.permute.xlu0 %596  ;;  %v629_v58 = vpop.permute.xlu1 %628  ;;  %3798 = vmatprep.mubr.msk.bf16.mxu0 %vm818_vm0, %v4073_v45 }
  0xb6   : > { %v602_v63 = vsel %vm548_vm5, %v597_v56, %v599_v50 }
  0xb8   : > { %660 = vrot.lane.b32.xlu0 %v4401_v20, %s6179_s16  ;;  %662 = vrot.lane.b32.xlu1 %v6197_v1, %s6179_s16  ;;  %s6239_s16 = smov 96  }
  0xb9   : > { %v631_v59 = vpop.permute.xlu0 %630 }
  0xba   : > { %v632_v60 = vsel %vm522_vm9, %v629_v58, %v631_v59 }
  0xbc   : > { %670 = vrot.lane.b32.xlu0 %v590_v51, %s6177_s22  ;;  %672 = vrot.lane.b32.xlu1 %v591_v52, %s6177_s22 }
  0xc0   : > { %674 = vrot.lane.b32.xlu0 %v4493_v53, %s6177_s22  ;;  %728 = vrot.lane.b32.xlu1 %v4497_v54, %s6189_s20  ;;  %s6241_s22 = smov 94  }
  0xc4   : > { %738 = vrot.lane.b32.xlu1 %v601_v55, %s6189_s20  ;;  %732 = vrot.lane.b32.xlu0 %v529_v57, %s6189_s20  ;;  %v684_v55 = vld [vmem:[%s6235_s2 + $0x8] sm:$0xff] }
  0xc8   : > { %754 = vrot.lane.b32.xlu1 %v632_v60, %s6189_s20  ;;  %736 = vrot.lane.b32.xlu0 %v603_v61, %s6189_s20 }
  0xcc   : > { %752 = vrot.lane.b32.xlu1 %v629_v58, %s6189_s20  ;;  %734 = vrot.lane.b32.xlu0 %v602_v63, %s6189_s20  ;;  %v683_v58 = vld [vmem:[%s6235_s2] sm:$0xff]  ;;  %v686_v63 = vld [vmem:[%s6235_s2 + $0x18] sm:$0xff] }
  0xd0   : > { %730 = vrot.lane.b32.xlu1 %v528_v2, %s6189_s20  ;;  %756 = vrot.lane.b32.xlu0 %v631_v59, %s6189_s20  ;;  %v685_v59 = vld [vmem:[%s6235_s2 + $0x10] sm:$0xff]  ;;  %s6245_s2 = smov 127  }
 0x10e   : > { %v608_v3 = vpop.permute.xlu1 %607  ;;  %v620_v4 = vpop.permute.xlu0 %619 }
 0x112   : > { %v624_v5 = vpop.permute.xlu1 %623  ;;  %v612_v6 = vpop.permute.xlu0 %611 }
 0x113   : > { %750 = vrot.lane.b32.xlu1 %v624_v5, %s6189_s20 }
 0x116   : > { %v610_v7 = vpop.permute.xlu1 %609 }
 0x117   : > { %v615_v8 = vsel %vm613_vm10, %v610_v7, %v612_v6  ;;  %v614_v11 = vsel %vm613_vm10, %v608_v3, %v610_v7 }
 0x118   : > { %742 = vrot.lane.b32.xlu1 %v615_v8, %s6189_s20 }
 0x11a   : > { %v649_v9 = vpop.permute.xlu0 %648  ;;  %v637_v10 = vpop.permute.xlu1 %636 }
 0x11b   : > { %758 = vrot.lane.b32.xlu0 %v637_v10, %s6189_s20 }
 0x11c   : > { %740 = vrot.lane.b32.xlu1 %v614_v11, %s6189_s20 }
 0x11e   : > { %v622_v12 = vpop.permute.xlu0 %621  ;;  %v641_v13 = vpop.permute.xlu1 %640 }
 0x11f   : > { %744 = vrot.lane.b32.xlu0 %v612_v6, %s6189_s20  ;;  %v627_v16 = vsel %vm625_vm11, %v622_v12, %v624_v5  ;;  %v626_v21 = vsel %vm625_vm11, %v620_v4, %v622_v12 }
 0x120   : > { %764 = vrot.lane.b32.xlu1 %v649_v9, %s6189_s20 }
 0x122   : > { %v653_v14 = vpop.permute.xlu0 %652  ;;  %v659_v15 = vpop.permute.xlu1 %658 }
 0x123   : > { %748 = vrot.lane.b32.xlu0 %v627_v16, %s6189_s20 }
 0x126   : > { %v639_v17 = vpop.permute.xlu0 %638  ;;  %v651_v18 = vpop.permute.xlu1 %650 }
 0x127   : > { %746 = vrot.lane.b32.xlu0 %v626_v21, %s6189_s20  ;;  %v644_v22 = vsel %vm642_vm12, %v639_v17, %v641_v13  ;;  %v655_v32 = vsel %vm654_vm14, %v649_v9, %v651_v18  ;;  %v643_v38 = vsel %vm642_vm12, %v637_v10, %v639_v17  ;;  %v656_v47 = vsel %vm654_vm14, %v651_v18, %v653_v14 }
 0x128   : > { %762 = vrot.lane.b32.xlu1 %v644_v22, %s6189_s20 }
 0x12a   : > { %v661_v27 = vpop.permute.xlu0 %660  ;;  %v663_v28 = vpop.permute.xlu1 %662 }
 0x12b   : > { %v665_v31 = vsel %vm664_vm13, %v659_v15, %v661_v27  ;;  %v666_v39 = vsel %vm664_vm13, %v661_v27, %v663_v28 }
 0x12c   : > { %772 = vrot.lane.b32.xlu0 %v665_v31, %s6189_s20  ;;  %766 = vrot.lane.b32.xlu1 %v655_v32, %s6189_s20 }
 0x12e   : > { %v671_v34 = vpop.permute.xlu0 %670  ;;  %v673_v35 = vpop.permute.xlu1 %672 }
 0x12f   : > { %v677_v44 = vsel %vm676_vm15, %v671_v34, %v673_v35 }
 0x130   : > { %760 = vrot.lane.b32.xlu0 %v643_v38, %s6189_s20  ;;  %774 = vrot.lane.b32.xlu1 %v666_v39, %s6189_s20 }
 0x132   : > { %v729_v46 = vpop.permute.xlu1 %728  ;;  %v675_v50 = vpop.permute.xlu0 %674 }
 0x133   : > { %v678_v57 = vsel %vm676_vm15, %v673_v35, %v675_v50 }
 0x134   : > { %768 = vrot.lane.b32.xlu0 %v656_v47, %s6189_s20  ;;  %778 = vrot.lane.b32.xlu1 %v677_v44, %s6189_s20 }
 0x136   : > { %v739_v51 = vpop.permute.xlu1 %738  ;;  %v733_v52 = vpop.permute.xlu0 %732 }
 0x138   : > { %770 = vrot.lane.b32.xlu0 %v659_v15, %s6189_s20  ;;  %776 = vrot.lane.b32.xlu1 %v671_v34, %s6189_s20 }
 0x13a   : > { %v755_v56 = vpop.permute.xlu1 %754  ;;  %v737_v61 = vpop.permute.xlu0 %736 }
 0x13b   : > { %v785_v6 = vsel %vm585_vm8, %v737_v61, %v739_v51 }
 0x13c   : > { %780 = vrot.lane.b32.xlu0 %v678_v57, %s6189_s20  ;;  %694 = vperm.xlu1 %4040, %v684_v55  }
 0x13e   : > { %v753_v60 = vpop.permute.xlu1 %752  ;;  %v735_v5 = vpop.permute.xlu0 %734 }
 0x13f   : > { %v784_v7 = vsel %vm585_vm8, %v735_v5, %v737_v61  ;;  %v790_v34 = vsel %vm585_vm8, %v753_v60, %v755_v56  ;;  %v4071_v60 = vld [vmem:[%s6234_s1] ss:$8 sps:$4 sm:$0xff]   ;;  %v4074_v61 = vld [vmem:[%s6234_s1 + $0x14] ss:$8 sps:$4 sm:$0xff]  }
 0x140   : > { %689 = vperm.xlu0 %4039, %v683_v58   ;;  %699 = vperm.xlu1 %4040, %v685_v59  }
 0x142   : > { %v731_v2 = vpop.permute.xlu1 %730  ;;  %v757_v9 = vpop.permute.xlu0 %756 }
 0x143   : > { %v783_v3 = vsel %vm585_vm8, %v731_v2, %v733_v52  ;;  %v782_v4 = vsel %vm585_vm8, %v729_v46, %v731_v2  ;;  %v791_v28 = vsel %vm585_vm8, %v755_v56, %v757_v9 }
 0x144   : > { %704 = vperm.xlu0 %4039, %v686_v63   ;;  %4042 = vrot.lane.b32.xlu1 %v6197_v1, %s6191_s21  ;;  %v4076_v63 = vld [vmem:[%s6234_s1 + $0x10] ss:$8 sps:$4 sm:$0xff]   ;;  %s431_s21 = sand.u32 1, %s4231_s26  }
 0x145   : > { %825 = vmatprep.subr.bf16.mxu0 %v783_v3 }
 0x146   : > { %826 = vmatpush1.bf16.msra.mxu0 %v782_v4 }
 0x147   : > { %827 = vmatprep.subr.bf16.mxu0 %v785_v6 }
 0x148   : > { %1018 = vrot.lane.b32.xlu0 %v4413_v23, %s6236_s23  ;;  %1024 = vrot.lane.b32.xlu1 %v4413_v23, %s6236_s23 }
 0x14a   : > { %828 = vmatpush1.bf16.msra.mxu0 %v784_v7 }
 0x14c   : > { %1040 = vrot.lane.b32.xlu0 %v4415_v24, %s6237_s24  ;;  %1046 = vrot.lane.b32.xlu1 %v4415_v24, %s6237_s24 }
 0x150   : > { %1076 = vrot.lane.b32.xlu0 %v4449_v37, %s6238_s15  ;;  %1082 = vrot.lane.b32.xlu1 %v4449_v37, %s6238_s15 }
 0x154   : > { %1098 = vrot.lane.b32.xlu0 %v4455_v40, %s6239_s16  ;;  %1104 = vrot.lane.b32.xlu1 %v4455_v40, %s6239_s16 }
 0x158   : > { %4047 = vrot.lane.b32.xlu0 %v6197_v1, %s6240_s30  ;;  %1222 = vrot.lane.b32.xlu1 %v4497_v54, %s6189_s20 }
 0x15c   : > { %1228 = vrot.lane.b32.xlu0 %v4497_v54, %s6189_s20 }
 0x160   : > { %1142 = vrot.lane.b32.xlu0 %v4493_v53, %s6241_s22 }
 0x185   : > { %v751_v8 = vpop.permute.xlu1 %750 }
 0x18a   : > { %v743_v10 = vpop.permute.xlu1 %742 }
 0x18d   : > { %v759_v11 = vpop.permute.xlu0 %758 }
 0x18e   : > { %v741_v12 = vpop.permute.xlu1 %740 }
 0x18f   : > { %v786_v15 = vsel %vm585_vm8, %v741_v12, %v743_v10 }
 0x191   : > { %v745_v13 = vpop.permute.xlu0 %744 }
 0x192   : > { %v787_v14 = vsel %vm585_vm8, %v743_v10, %v745_v13  ;;  %v765_v17 = vpop.permute.xlu1 %764 }
 0x193   : > { %829 = vmatprep.subr.bf16.mxu0 %v787_v14 }
 0x194   : > { %830 = vmatpush1.bf16.msra.mxu0 %v786_v15 }
 0x195   : > { %v749_v16 = vpop.permute.xlu0 %748 }
 0x196   : > { %v789_v18 = vsel %vm585_vm8, %v749_v16, %v751_v8 }
 0x197   : > { %831 = vmatprep.subr.bf16.mxu0 %v789_v18 }
 0x199   : > { %v747_v21 = vpop.permute.xlu0 %746 }
 0x19a   : > { %v763_v22 = vpop.permute.xlu1 %762  ;;  %v788_v27 = vsel %vm585_vm8, %v747_v21, %v749_v16 }
 0x19b   : > { %832 = vmatpush1.bf16.msra.mxu0 %v788_v27 }
 0x19c   : > { %833 = vmatprep.subr.bf16.mxu0 %v791_v28 }
 0x19e   : > { %v773_v31 = vpop.permute.xlu0 %772  ;;  %v767_v32 = vpop.permute.xlu1 %766 }
 0x19f   : > { %834 = vmatpush1.bf16.msra.mxu0 %v790_v34  ;;  %v794_v50 = vsel %vm585_vm8, %v765_v17, %v767_v32 }
 0x1a2   : > { %v761_v35 = vpop.permute.xlu0 %760  ;;  %v775_v38 = vpop.permute.xlu1 %774 }
 0x1a3   : > { %v793_v39 = vsel %vm585_vm8, %v761_v35, %v763_v22  ;;  %v792_v44 = vsel %vm585_vm8, %v759_v11, %v761_v35  ;;  %v797_v51 = vsel %vm585_vm8, %v773_v31, %v775_v38 }
 0x1a4   : > { %835 = vmatprep.subr.bf16.mxu0 %v793_v39 }
 0x1a5   : > { %836 = vmatpush1.bf16.msra.mxu0 %v792_v44 }
 0x1a6   : > { %v769_v45 = vpop.permute.xlu0 %768  ;;  %v779_v46 = vpop.permute.xlu1 %778 }
 0x1a7   : > { %v795_v47 = vsel %vm585_vm8, %v767_v32, %v769_v45 }
 0x1a8   : > { %837 = vmatprep.subr.bf16.mxu0 %v795_v47 }
 0x1a9   : > { %838 = vmatpush1.bf16.msra.mxu0 %v794_v50 }
 0x1aa   : > { %v771_v52 = vpop.permute.xlu0 %770  ;;  %839 = vmatprep.subr.bf16.mxu0 %v797_v51  ;;  %v777_v56 = vpop.permute.xlu1 %776 }
 0x1ab   : > { %v796_v55 = vsel %vm585_vm8, %v771_v52, %v773_v31  ;;  %v798_v59 = vsel %vm585_vm8, %v777_v56, %v779_v46 }
 0x1ad   : > { %840 = vmatpush1.bf16.msra.mxu0 %v796_v55 }
 0x1ae   : > { %v781_v57 = vpop.permute.xlu0 %780 }
 0x1af   : > { %v799_v58 = vsel %vm585_vm8, %v779_v46, %v781_v57 }
 0x1b0   : > { %841 = vmatprep.subr.bf16.mxu0 %v799_v58 }
 0x1b1   : > { %842 = vmatpush1.bf16.msra.mxu0 %v798_v59 }
 0x1b4   : > { %858 = vmatmul.mubr.bf16.vlgmr.msra.gmra.mrb[0].mxu0 %v4071_v60 }
 0x1b5   : > { %3799 = vmatprep.mubr.msk.bf16.mxu0 %vm818_vm0, %v4074_v61 }
 0x1bb   : > { %v695_v6 = vpop.permute.xlu1 %694 }
 0x1bc   : > { %868 = vmatmul.mubr.bf16.gmra.mrb[4].mxu0 %v4076_v63 }
 0x1bf   : > { %v690_v2 = vpop.permute.xlu0 %689  ;;  %v700_v27 = vpop.permute.xlu1 %699 }
 0x1c3   : > { %v705_v45 = vpop.permute.xlu0 %704 }
 0x287   : > { %v859_v3 = vpop.f32.mrb[0].mxu0 }
 0x288   : > { %v860_v4 = vadd.f32 %v859_v3, %v690_v2  ;;  %v861_v5 = vpop.f32.mrb[1].mxu0 }
 0x289   : > { %v862_v7 = vadd.f32 %v861_v5, %v690_v2  ;;  %v863_v8 = vpop.f32.mrb[2].mxu0 }
 0x28a   : > { %vm878_vm1 = vcmp.ge.f32.partialorder %v860_v4, 0.0  ;;  %v886_v9 = vmul.f32 0.01, %v860_v4  ;;  %v864_v10 = vadd.f32 %v863_v8, %v695_v6  ;;  %v865_v11 = vpop.f32.mrb[3].mxu0 }
 0x28b   : > { %vm879_vm2 = vcmp.ge.f32.partialorder %v862_v7, 0.0  ;;  %v887_v12 = vmul.f32 0.01, %v862_v7  ;;  %v866_v13 = vadd.f32 %v865_v11, %v695_v6 }
 0x28c   : > { %v4622_v14 = vsel %vm878_vm1, %v860_v4, %v886_v9  ;;  %vm880_vm3 = vcmp.ge.f32.partialorder %v864_v10, 0.0  ;;  %v888_v15 = vmul.f32 0.01, %v864_v10 }
 0x28d   : > { %v4624_v16 = vsel %vm879_vm2, %v862_v7, %v887_v12  ;;  %vm881_vm4 = vcmp.ge.f32.partialorder %v866_v13, 0.0  ;;  %v889_v17 = vmul.f32 0.01, %v866_v13 }
 0x28e   : > { %v4626_v18 = vsel %vm880_vm3, %v864_v10, %v888_v15  ;;  %v4630_v21 = vadd.f32 %v4624_v16, %v4622_v14 }
 0x28f   : > { %v4636_v28 = vpack.c.bf16 %v4626_v18, %v4622_v14  ;;  %v4638_v31 = vsel %vm881_vm4, %v866_v13, %v889_v17  ;;  %v869_v32 = vpop.f32.mrb[4].mxu0  ;;  %vm1402_vm4 = vcmask 261120  }
 0x290   : > { %v4642_v34 = vpack.c.bf16 %v4638_v31, %v4624_v16  ;;  %v870_v35 = vadd.f32 %v869_v32, %v700_v27  ;;  %v871_v38 = vpop.f32.mrb[5].mxu0  ;;  %v4646_v39 = vadd.f32 %v4638_v31, %v4626_v18 }
 0x291   : > { %6242 = vst [vmem:[#allocation14_spill] sm:$0xff] %v4636_v28  ;;  %v872_v46 = vadd.f32 %v871_v38, %v700_v27  ;;  %v873_v47 = vpop.f32.mrb[6].mxu0  ;;  %1056 = vrot.lane.b32.xlu0 %v4636_v28, %s6244_s0  ;;  %998 = vrot.lane.b32.xlu1 %v4636_v28, %s6245_s2  ;;  %v955_v6 = vmul.bf16 %v4636_v28, %v4430_v29 }
 0x292   : > { %6243 = vst [vmem:[#allocation15_spill] sm:$0xff] %v4642_v34  ;;  %vm882_vm7 = vcmp.ge.f32.partialorder %v870_v35, 0.0  ;;  %v890_v50 = vmul.f32 0.01, %v870_v35  ;;  %v874_v51 = vadd.f32 %v873_v47, %v705_v45  ;;  %v875_v52 = vpop.f32.mrb[7].mxu0  ;;  %v949_v7 = vmul.bf16 %v4636_v28, %v4513_v62 }
 0x293   : > { %vm883_vm1 = vcmp.ge.f32.partialorder %v872_v46, 0.0  ;;  %v891_v55 = vmul.f32 0.01, %v872_v46  ;;  %v876_v56 = vadd.f32 %v875_v52, %v705_v45  ;;  %v961_v10 = vmul.bf16 %v4636_v28, %v4447_v36 }
 0x294   : > { %vm884_vm2 = vcmp.ge.f32.partialorder %v874_v51, 0.0  ;;  %v892_v57 = vmul.f32 0.01, %v874_v51  ;;  %v4654_v58 = vsel %vm882_vm7, %v870_v35, %v890_v50  ;;  %v956_v11 = vmul.bf16 %v4642_v34, %v4421_v25 }
 0x295   : > { %v4656_v59 = vsel %vm883_vm1, %v872_v46, %v891_v55  ;;  %vm885_vm3 = vcmp.ge.f32.partialorder %v876_v56, 0.0  ;;  %v893_v60 = vmul.f32 0.01, %v876_v56  ;;  %1116 = vrot.lane.b32.xlu0 %v4636_v28, %s6240_s30  ;;  %1058 = vrot.lane.b32.xlu1 %v4642_v34, %s6244_s0  ;;  %v972_v12 = vmul.bf16 %v4636_v28, %v4434_v30 }
 0x296   : > { %v4662_v61 = vsel %vm884_vm2, %v874_v51, %v892_v57  ;;  %v4676_v4 = vadd.f32 %v4656_v59, %v4654_v58  ;;  %v962_v13 = vmul.bf16 %v4642_v34, %v4423_v26  ;;  %v978_v15 = vmul.bf16 %v4636_v28, %v4439_v33 }
 0x297   : > { %v4666_v63 = vpack.c.bf16 %v4662_v61, %v4654_v58  ;;  %v4668_v2 = vsel %vm885_vm3, %v876_v56, %v893_v60  ;;  %v973_v17 = vmul.bf16 %v4642_v34, %v4464_v42  ;;  %v984_v27 = vmul.bf16 %v4636_v28, %v4460_v41 }
 0x298   : > { %v4672_v3 = vpack.c.bf16 %v4668_v2, %v4656_v59  ;;  %v4680_v5 = vadd.f32 %v4668_v2, %v4662_v61  ;;  %v979_v32 = vmul.bf16 %v4642_v34, %v4467_v43  ;;  %v950_v35 = vmul.bf16 %v4642_v34, %v4483_v49 }
 0x299   : > { %6246 = vst [vmem:[#allocation16_spill] sm:$0xff] %v4666_v63  ;;  %1000 = vrot.lane.b32.xlu0 %v4642_v34, %s6245_s2  ;;  %1118 = vrot.lane.b32.xlu1 %v4642_v34, %s6240_s30  ;;  %v985_v38 = vmul.bf16 %v4642_v34, %v4481_v48  ;;  %v958_v45 = vmul.bf16 %v4666_v63, %v4430_v29 }
 0x29a   : > { %6247 = vst [vmem:[#allocation17_spill] sm:$0xff] %v4672_v3  ;;  %v952_v46 = vmul.bf16 %v4666_v63, %v4513_v62  ;;  %v964_v47 = vmul.bf16 %v4666_v63, %v4447_v36  ;;  %v959_v50 = vmul.bf16 %v4672_v3, %v4421_v25  ;;  %v975_v51 = vmul.bf16 %v4666_v63, %v4434_v30 }
 0x29b   : > { %v987_v52 = vmul.bf16 %v4666_v63, %v4460_v41  ;;  %v981_v55 = vmul.bf16 %v4666_v63, %v4439_v33  ;;  %v965_v56 = vmul.bf16 %v4672_v3, %v4423_v26  ;;  %v953_v57 = vmul.bf16 %v4672_v3, %v4483_v49 }
 0x29c   : > { %v988_v60 = vmul.bf16 %v4672_v3, %v4481_v48 }
 0x29d   : > { %1020 = vrot.lane.b32.xlu0 %v955_v6, %s6236_s23  ;;  %1224 = vrot.lane.b32.xlu1 %v949_v7, %s6248_s27  ;;  %v976_v6 = vmul.bf16 %v4672_v3, %v4464_v42  ;;  %v982_v7 = vmul.bf16 %v4672_v3, %v4467_v43 }
 0x2a1   : > { %1042 = vrot.lane.b32.xlu0 %v961_v10, %s6237_s24  ;;  %1022 = vrot.lane.b32.xlu1 %v956_v11, %s6236_s23  ;;  %v1019_v10 = vpop.permute.xlu0 %1018  ;;  %v4776_v11 = vpop.permute.xlu1 %4042 }
 0x2a5   : > { %1072 = vrot.lane.b32.xlu0 %v972_v12, %s6238_s15  ;;  %1044 = vrot.lane.b32.xlu1 %v962_v13, %s6237_s24  ;;  %v1041_v12 = vpop.permute.xlu0 %1040  ;;  %v4778_v13 = vpop.permute.xlu1 %1024 }
 0x2a9   : > { %1094 = vrot.lane.b32.xlu0 %v978_v15, %s6239_s16  ;;  %1074 = vrot.lane.b32.xlu1 %v973_v17, %s6238_s15  ;;  %v4780_v15 = vpop.permute.xlu0 %1076  ;;  %v4782_v17 = vpop.permute.xlu1 %1046 }
 0x2ad   : > { %1138 = vrot.lane.b32.xlu0 %v984_v27, %s6241_s22  ;;  %1096 = vrot.lane.b32.xlu1 %v979_v32, %s6239_s16  ;;  %v4784_v27 = vpop.permute.xlu0 %1098  ;;  %v4786_v32 = vpop.permute.xlu1 %1082 }
 0x2b1   : > { %1226 = vrot.lane.b32.xlu0 %v950_v35, %s6248_s27  ;;  %1140 = vrot.lane.b32.xlu1 %v985_v38, %s6241_s22  ;;  %v4788_v35 = vpop.permute.xlu0 %4047  ;;  %v4790_v38 = vpop.permute.xlu1 %1104 }
 0x2b5   : > { %1122 = vrot.lane.b32.xlu1 %v4666_v63, %s6240_s30  ;;  %1004 = vrot.lane.b32.xlu0 %v4666_v63, %s6245_s2 }
 0x2b9   : > { %1006 = vrot.lane.b32.xlu1 %v4672_v3, %s6245_s2  ;;  %1060 = vrot.lane.b32.xlu0 %v4666_v63, %s6244_s0 }
 0x2bd   : > { %1062 = vrot.lane.b32.xlu1 %v4672_v3, %s6244_s0  ;;  %1124 = vrot.lane.b32.xlu0 %v4672_v3, %s6240_s30 }
 0x2c1   : > { %1026 = vrot.lane.b32.xlu1 %v958_v45, %s6236_s23  ;;  %1230 = vrot.lane.b32.xlu0 %v952_v46, %s6248_s27  ;;  %v4792_v45 = vpop.permute.xlu0 %1228  ;;  %v1223_v46 = vpop.permute.xlu1 %1222 }
 0x2c5   : > { %1048 = vrot.lane.b32.xlu1 %v964_v47, %s6237_s24  ;;  %1028 = vrot.lane.b32.xlu0 %v959_v50, %s6236_s23  ;;  %v4794_v47 = vpop.permute.xlu0 %1142 }
 0x2c9   : > { %1078 = vrot.lane.b32.xlu1 %v975_v51, %s6238_s15  ;;  %1144 = vrot.lane.b32.xlu0 %v987_v52, %s6241_s22  ;;  %v4044_v52 = vunpack.i.l.bf16 %v4776_v11 }
 0x2cd   : > { %1100 = vrot.lane.b32.xlu1 %v981_v55, %s6239_s16  ;;  %1050 = vrot.lane.b32.xlu0 %v965_v56, %s6237_s24 }
 0x2d1   : > { %1232 = vrot.lane.b32.xlu1 %v953_v57, %s6248_s27  ;;  %1148 = vrot.lane.b32.xlu0 %v4493_v53, %s6241_s22 }
 0x2d5   : > { %1146 = vrot.lane.b32.xlu1 %v988_v60, %s6241_s22  ;;  %1080 = vrot.lane.b32.xlu0 %v976_v6, %s6238_s15 }
 0x2d9   : > { %1102 = vrot.lane.b32.xlu0 %v982_v7, %s6239_s16 }
 0x303   : > { %v1057_v50 = vpop.permute.xlu0 %1056  ;;  %v999_v51 = vpop.permute.xlu1 %998 }
 0x304   : > { %1270 = vrot.lane.b32.xlu1 %v1057_v50, %s6248_s27  ;;  %v1008_v57 = vsel %vm548_vm5, %v4044_v52, %v999_v51 }
 0x307   : > { %v4798_v55 = vpop.permute.xlu0 %1116  ;;  %v1059_v56 = vpop.permute.xlu1 %1058 }
 0x308   : > { %1234 = vrot.lane.b32.xlu1 %v1008_v57, %s6248_s27  ;;  %v1064_v8 = vsel %vm522_vm9, %v1057_v50, %v1059_v56 }
 0x30b   : > { %v1001_v60 = vpop.permute.xlu0 %1000  ;;  %v4802_v6 = vpop.permute.xlu1 %1118 }
 0x30c   : > { %1238 = vrot.lane.b32.xlu0 %v1001_v60, %s6248_s27  ;;  %v1009_v7 = vsel %vm548_vm5, %v999_v51, %v1001_v60 }
 0x30d   : > { %1236 = vrot.lane.b32.xlu1 %v1009_v7, %s6248_s27 }
 0x30f   : > { %v1021_v0 = vpop.permute.xlu0 %1020  ;;  %v1225_v9 = vpop.permute.xlu1 %1224 }
 0x310   : > { %1274 = vrot.lane.b32.xlu0 %v1059_v56, %s6248_s27  ;;  %v1030_v51 = vsel %vm613_vm10, %v1019_v10, %v1021_v0 }
 0x311   : > { %1272 = vrot.lane.b32.xlu1 %v1064_v8, %s6248_s27 }
 0x313   : > { %v1043_v52 = vpop.permute.xlu0 %1042  ;;  %v1023_v44 = vpop.permute.xlu1 %1022 }
 0x314   : > { %v1031_v1 = vsel %vm613_vm10, %v1021_v0, %v1023_v44  ;;  %v1052_v8 = vsel %vm625_vm11, %v1041_v12, %v1043_v52  ;;  %v1330_v0 = vsel %vm585_vm8, %v1223_v46, %v1225_v9 }
 0x315   : > { %1250 = vrot.lane.b32.xlu1 %v1023_v44, %s6248_s27 }
 0x317   : > { %v1073_v57 = vpop.permute.xlu0 %1072  ;;  %v1045_v22 = vpop.permute.xlu1 %1044 }
 0x318   : > { %1262 = vrot.lane.b32.xlu0 %v1045_v22, %s6248_s27  ;;  %v1053_v19 = vsel %vm625_vm11, %v1043_v52, %v1045_v22 }
 0x319   : > { %1246 = vrot.lane.b32.xlu1 %v1030_v51, %s6248_s27 }
 0x31b   : > { %v4814_v60 = vpop.permute.xlu0 %1094  ;;  %v1075_v7 = vpop.permute.xlu1 %1074 }
 0x31c   : > { %1248 = vrot.lane.b32.xlu0 %v1031_v1, %s6248_s27  ;;  %v1084_v3 = vsel %vm642_vm12, %v1073_v57, %v1075_v7 }
 0x31d   : > { %1258 = vrot.lane.b32.xlu1 %v1052_v8, %s6248_s27 }
 0x31f   : > { %v4820_v50 = vpop.permute.xlu0 %1138  ;;  %v1097_v56 = vpop.permute.xlu1 %1096 }
 0x321   : > { %1260 = vrot.lane.b32.xlu1 %v1053_v19, %s6248_s27  ;;  %v4045_v19 = vunpack.i.h.bf16 %v4776_v11 }
 0x323   : > { %v1227_v10 = vpop.permute.xlu0 %1226  ;;  %v4824_v51 = vpop.permute.xlu1 %1140 }
 0x324   : > { %v1331_v20 = vsel %vm585_vm8, %v1225_v9, %v1227_v10 }
 0x325   : > { %1409 = vmatprep.subr.bf16.mxu1 %v1331_v20 }
 0x326   : > { %1410 = vmatpush1.bf16.msra.mxu1 %v1330_v0 }
 0x327   : > { %v1005_v1 = vpop.permute.xlu0 %1004  ;;  %v4828_v44 = vpop.permute.xlu1 %1122 }
 0x328   : > { %v1010_v20 = vsel %vm548_vm5, %v4045_v19, %v1005_v1 }
 0x32b   : > { %v1061_v12 = vpop.permute.xlu0 %1060  ;;  %v1007_v8 = vpop.permute.xlu1 %1006 }
 0x32c   : > { %1244 = vrot.lane.b32.xlu1 %v1007_v8, %s6248_s27  ;;  %v1011_v22 = vsel %vm548_vm5, %v1005_v1, %v1007_v8 }
 0x32d   : > { %1242 = vrot.lane.b32.xlu0 %v1011_v22, %s6248_s27 }
 0x32f   : > { %v4834_v52 = vpop.permute.xlu0 %1124  ;;  %v1063_v10 = vpop.permute.xlu1 %1062 }
 0x330   : > { %1240 = vrot.lane.b32.xlu1 %v1010_v20, %s6248_s27  ;;  %v1065_v9 = vsel %vm522_vm9, %v1061_v12, %v1063_v10 }
 0x331   : > { %1278 = vrot.lane.b32.xlu0 %v1065_v9, %s6248_s27 }
 0x333   : > { %v1231_v46 = vpop.permute.xlu0 %1230  ;;  %v1027_v0 = vpop.permute.xlu1 %1026 }
 0x334   : > { %1280 = vrot.lane.b32.xlu1 %v1063_v10, %s6248_s27  ;;  %v1032_v11 = vsel %vm613_vm10, %v4778_v13, %v1027_v0 }
 0x335   : > { %1252 = vrot.lane.b32.xlu0 %v1032_v11, %s6248_s27 }
 0x337   : > { %v1029_v8 = vpop.permute.xlu0 %1028  ;;  %v1049_v22 = vpop.permute.xlu1 %1048 }
 0x338   : > { %1256 = vrot.lane.b32.xlu1 %v1029_v8, %s6248_s27  ;;  %v1054_v1 = vsel %vm625_vm11, %v4782_v17, %v1049_v22  ;;  %v1033_v9 = vsel %vm613_vm10, %v1027_v0, %v1029_v8  ;;  %v1332_v0 = vsel %vm585_vm8, %v4792_v45, %v1231_v46  ;;  %v1107_v45 = vsel %vm654_vm14, %v1097_v56, %v4784_v27 }
 0x339   : > { %1264 = vrot.lane.b32.xlu0 %v1054_v1, %s6248_s27 }
 0x33b   : > { %v4848_v19 = vpop.permute.xlu0 %1144  ;;  %v1079_v20 = vpop.permute.xlu1 %1078 }
 0x33d   : > { %1254 = vrot.lane.b32.xlu0 %v1033_v9, %s6248_s27 }
 0x33f   : > { %v1051_v10 = vpop.permute.xlu0 %1050  ;;  %v1101_v13 = vpop.permute.xlu1 %1100 }
 0x340   : > { %1268 = vrot.lane.b32.xlu1 %v1051_v10, %s6248_s27  ;;  %v1055_v17 = vsel %vm625_vm11, %v1049_v22, %v1051_v10  ;;  %v1130_v10 = vsel %vm664_vm13, %v4828_v44, %v4834_v52 }
 0x341   : > { %1276 = vrot.lane.b32.xlu0 %v1061_v12, %s6248_s27  ;;  %v1085_v12 = vsel %vm642_vm12, %v1075_v7, %v4780_v15  ;;  %v1128_v7 = vsel %vm664_vm13, %v4798_v55, %v4802_v6 }
 0x343   : > { %v1233_v11 = vpop.permute.xlu1 %1232  ;;  %v1149_v8 = vpop.permute.xlu0 %1148 }
 0x344   : > { %1284 = vrot.lane.b32.xlu1 %v1084_v3, %s6248_s27  ;;  %v1333_v1 = vsel %vm585_vm8, %v1231_v46, %v1233_v11  ;;  %v1106_v3 = vsel %vm654_vm14, %v4814_v60, %v1097_v56  ;;  %v4079_v56 = vld [vmem:[%s6164_s3 + $0x4] ss:$12 sps:$4 sm:$0xff]  }
 0x345   : > { %1266 = vrot.lane.b32.xlu0 %v1055_v17, %s6248_s27  ;;  %1411 = vmatprep.subr.bf16.mxu1 %v1333_v1  ;;  %v1165_v17 = vld [vmem:[%s6165_s4 + $0x18] sm:$0xff]  ;;  %v6249_v1 = vmov 0  }
 0x346   : > { %1412 = vmatpush1.bf16.msra.mxu1 %v1332_v0  ;;  %1441 = vmatprep.mubr.bf16.mxu1 %v4079_v56 }
 0x347   : > { %v1081_v22 = vpop.permute.xlu0 %1080 }
 0x348   : > { %1282 = vrot.lane.b32.xlu1 %v1073_v57, %s6248_s27  ;;  %v1087_v15 = vsel %vm642_vm12, %v1081_v22, %v4786_v32  ;;  %v1086_v57 = vsel %vm642_vm12, %v1079_v20, %v1081_v22 }
 0x349   : > { %1286 = vrot.lane.b32.xlu0 %v1085_v12, %s6248_s27 }
 0x34b   : > { %v1103_v46 = vpop.permute.xlu0 %1102 }
 0x34c   : > { %1296 = vrot.lane.b32.xlu1 %v1106_v3, %s6248_s27  ;;  %v1109_v27 = vsel %vm654_vm14, %v1103_v46, %v4790_v38  ;;  %v1108_v32 = vsel %vm654_vm14, %v1101_v13, %v1103_v46  ;;  %v4050_v38 = vunpack.i.h.bf16 %v4788_v35 }
 0x34d   : > { %1288 = vrot.lane.b32.xlu0 %v1079_v20, %s6248_s27 }
 0x34e   : > { %v1131_v9 = vsel %vm664_vm13, %v4834_v52, %v4050_v38 }
 0x350   : > { %1294 = vrot.lane.b32.xlu1 %v4814_v60, %s6248_s27  ;;  %v4049_v60 = vunpack.i.l.bf16 %v4788_v35  ;;  %v1147_v35 = vpop.permute.xlu1 %1146 }
 0x351   : > { %1298 = vrot.lane.b32.xlu0 %v1107_v45, %s6248_s27  ;;  %v1153_v52 = vsel %vm676_vm15, %v1147_v35, %v1149_v8 }
 0x352   : > { %v1129_v20 = vsel %vm664_vm13, %v4802_v6, %v4049_v60  ;;  %v1151_v6 = vsel %vm676_vm15, %v4824_v51, %v4794_v47  ;;  %v1164_v47 = vld [vmem:[%s6165_s4 + $0x10] sm:$0xff] }
 0x354   : > { %1292 = vrot.lane.b32.xlu1 %v1087_v15, %s6248_s27 }
 0x355   : > { %1290 = vrot.lane.b32.xlu0 %v1086_v57, %s6248_s27 }
 0x358   : > { %1308 = vrot.lane.b32.xlu1 %v1128_v7, %s6248_s27 }
 0x359   : > { %1300 = vrot.lane.b32.xlu0 %v1101_v13, %s6248_s27  ;;  %v1152_v13 = vsel %vm676_vm15, %v4848_v19, %v1147_v35 }
 0x35c   : > { %1304 = vrot.lane.b32.xlu1 %v1109_v27, %s6248_s27 }
 0x35d   : > { %1302 = vrot.lane.b32.xlu0 %v1108_v32, %s6248_s27 }
 0x360   : > { %1306 = vrot.lane.b32.xlu1 %v4798_v55, %s6248_s27  ;;  %v1150_v55 = vsel %vm676_vm15, %v4820_v50, %v4824_v51  ;;  %v1163_v51 = vld [vmem:[%s6165_s4 + $0x8] sm:$0xff] }
 0x361   : > { %1310 = vrot.lane.b32.xlu0 %v1129_v20, %s6248_s27 }
 0x364   : > { %1316 = vrot.lane.b32.xlu1 %v1131_v9, %s6248_s27 }
 0x365   : > { %1314 = vrot.lane.b32.xlu0 %v1130_v10, %s6248_s27 }
 0x368   : > { %1320 = vrot.lane.b32.xlu1 %v1150_v55, %s6248_s27 }
 0x369   : > { %1312 = vrot.lane.b32.xlu0 %v4828_v44, %s6248_s27  ;;  %v1162_v44 = vld [vmem:[%s6165_s4] sm:$0xff] }
 0x36c   : > { %1318 = vrot.lane.b32.xlu1 %v4820_v50, %s6248_s27 }
 0x36d   : > { %1322 = vrot.lane.b32.xlu0 %v1151_v6, %s6248_s27 }
 0x370   : > { %1328 = vrot.lane.b32.xlu1 %v1153_v52, %s6248_s27 }
 0x371   : > { %1326 = vrot.lane.b32.xlu0 %v1152_v13, %s6248_s27 }
 0x374   : > { %1168 = vperm.xlu1 %4040, %v1162_v44  }
 0x375   : > { %1324 = vrot.lane.b32.xlu0 %v4848_v19, %s6248_s27 }
 0x376   : > { %v4931_v50 = vpop.permute.xlu1 %1270 }
 0x378   : > { %1178 = vperm.xlu1 %4040, %v1164_v47  }
 0x379   : > { %1173 = vperm.xlu0 %4039, %v1163_v51  }
 0x37a   : > { %v1235_v11 = vpop.permute.xlu1 %1234 }
 0x37c   : > { %4052 = vrot.lane.b32.xlu1 %v6249_v1, %s6245_s2 }
 0x37d   : > { %1183 = vperm.xlu0 %4039, %v1165_v17  }
 0x37e   : > { %v1239_v19 = vpop.permute.xlu0 %1238 }
 0x37f   : > { %v1237_v0 = vpop.permute.xlu1 %1236 }
 0x380   : > { %1661 = vrot.lane.b32.xlu1 %v4413_v23, %s6236_s23  ;;  %v1335_v12 = vsel %vm585_vm8, %v1237_v0, %v1239_v19  ;;  %v1334_v8 = vsel %vm585_vm8, %v1235_v11, %v1237_v0 }
 0x381   : > { %1655 = vrot.lane.b32.xlu0 %v4413_v23, %s6236_s23  ;;  %1413 = vmatprep.subr.bf16.mxu1 %v1335_v12 }
 0x382   : > { %1414 = vmatpush1.bf16.msra.mxu1 %v1334_v8  ;;  %v1275_v15 = vpop.permute.xlu0 %1274 }
 0x383   : > { %v1273_v3 = vpop.permute.xlu1 %1272 }
 0x384   : > { %1683 = vrot.lane.b32.xlu1 %v4415_v24, %s6237_s24 }
 0x385   : > { %1677 = vrot.lane.b32.xlu0 %v4415_v24, %s6237_s24 }
 0x387   : > { %v1251_v22 = vpop.permute.xlu1 %1250 }
 0x388   : > { %1719 = vrot.lane.b32.xlu1 %v4449_v37, %s6238_s15 }
 0x389   : > { %1713 = vrot.lane.b32.xlu0 %v4449_v37, %s6238_s15 }
 0x38a   : > { %v1263_v7 = vpop.permute.xlu0 %1262 }
 0x38b   : > { %v1247_v45 = vpop.permute.xlu1 %1246 }
 0x38c   : > { %1741 = vrot.lane.b32.xlu1 %v4455_v40, %s6239_s16 }
 0x38d   : > { %1735 = vrot.lane.b32.xlu0 %v4455_v40, %s6239_s16 }
 0x38e   : > { %v1249_v27 = vpop.permute.xlu0 %1248 }
 0x38f   : > { %v1259_v57 = vpop.permute.xlu1 %1258  ;;  %v1339_v10 = vsel %vm585_vm8, %v1249_v27, %v1251_v22  ;;  %v1338_v35 = vsel %vm585_vm8, %v1247_v45, %v1249_v27 }
 0x390   : > { %1859 = vrot.lane.b32.xlu1 %v4497_v54, %s6248_s27 }
 0x391   : > { %4057 = vrot.lane.b32.xlu0 %v6249_v1, %s6240_s30 }
 0x393   : > { %v1261_v46 = vpop.permute.xlu1 %1260 }
 0x394   : > { %v1343_v17 = vsel %vm585_vm8, %v1261_v46, %v1263_v7  ;;  %v1342_v0 = vsel %vm585_vm8, %v1259_v57, %v1261_v46  ;;  %v1346_v7 = vsel %vm585_vm8, %v4931_v50, %v1273_v3 }
 0x395   : > { %1865 = vrot.lane.b32.xlu0 %v4497_v54, %s6248_s27 }
 0x399   : > { %1779 = vrot.lane.b32.xlu0 %v4493_v53, %s6241_s22 }
 0x39e   : > { %v1245_v32 = vpop.permute.xlu1 %1244 }
 0x39f   : > { %v1243_v60 = vpop.permute.xlu0 %1242 }
 0x3a0   : > { %v1337_v56 = vsel %vm585_vm8, %v1243_v60, %v1245_v32  ;;  %v1347_v32 = vsel %vm585_vm8, %v1273_v3, %v1275_v15 }
 0x3a1   : > { %1415 = vmatprep.subr.bf16.mxu1 %v1337_v56 }
 0x3a2   : > { %v1241_v20 = vpop.permute.xlu1 %1240 }
 0x3a3   : > { %v1279_v38 = vpop.permute.xlu0 %1278  ;;  %v1336_v9 = vsel %vm585_vm8, %v1241_v20, %v1243_v60 }
 0x3a4   : > { %1416 = vmatpush1.bf16.msra.mxu1 %v1336_v9 }
 0x3a5   : > { %1417 = vmatprep.subr.bf16.mxu1 %v1339_v10 }
 0x3a6   : > { %v1281_v6 = vpop.permute.xlu1 %1280 }
 0x3a7   : > { %v1253_v55 = vpop.permute.xlu0 %1252  ;;  %v1349_v57 = vsel %vm585_vm8, %v1279_v38, %v1281_v6 }
 0x3a8   : > { %1418 = vmatpush1.bf16.msra.mxu1 %v1338_v35 }
 0x3aa   : > { %v1257_v13 = vpop.permute.xlu1 %1256 }
 0x3ab   : > { %v1265_v52 = vpop.permute.xlu0 %1264 }
 0x3af   : > { %v1255_v44 = vpop.permute.xlu0 %1254 }
 0x3b0   : > { %v1341_v47 = vsel %vm585_vm8, %v1255_v44, %v1257_v13  ;;  %v1340_v51 = vsel %vm585_vm8, %v1253_v55, %v1255_v44 }
 0x3b1   : > { %1419 = vmatprep.subr.bf16.mxu1 %v1341_v47 }
 0x3b2   : > { %1420 = vmatpush1.bf16.msra.mxu1 %v1340_v51  ;;  %v1269_v11 = vpop.permute.xlu1 %1268 }
 0x3b3   : > { %v1277_v19 = vpop.permute.xlu0 %1276  ;;  %1421 = vmatprep.subr.bf16.mxu1 %v1343_v17 }
 0x3b4   : > { %v1348_v20 = vsel %vm585_vm8, %v1277_v19, %v1279_v38 }
 0x3b6   : > { %1422 = vmatpush1.bf16.msra.mxu1 %v1342_v0  ;;  %v1285_v12 = vpop.permute.xlu1 %1284 }
 0x3b7   : > { %v1267_v8 = vpop.permute.xlu0 %1266 }
 0x3b8   : > { %v1345_v22 = vsel %vm585_vm8, %v1267_v8, %v1269_v11  ;;  %v1344_v45 = vsel %vm585_vm8, %v1265_v52, %v1267_v8 }
 0x3b9   : > { %1423 = vmatprep.subr.bf16.mxu1 %v1345_v22 }
 0x3ba   : > { %1424 = vmatpush1.bf16.msra.mxu1 %v1344_v45  ;;  %v1283_v27 = vpop.permute.xlu1 %1282 }
 0x3bb   : > { %v1287_v60 = vpop.permute.xlu0 %1286  ;;  %1425 = vmatprep.subr.bf16.mxu1 %v1347_v32  ;;  %v1350_v15 = vsel %vm585_vm8, %v1283_v27, %v1285_v12 }
 0x3bc   : > { %v1351_v10 = vsel %vm585_vm8, %v1285_v12, %v1287_v60 }
 0x3be   : > { %1426 = vmatpush1.bf16.msra.mxu1 %v1346_v7  ;;  %v1297_v56 = vpop.permute.xlu1 %1296 }
 0x3bf   : > { %v1289_v46 = vpop.permute.xlu0 %1288  ;;  %1427 = vmatprep.subr.bf16.mxu1 %v1349_v57  ;;  %v4080_v57 = vld [vmem:[%s6164_s3 + $0x1c] ss:$12 sps:$4 sm:$0xff]  }
 0x3c2   : > { %1428 = vmatpush1.bf16.msra.mxu1 %v1348_v20  ;;  %v1295_v9 = vpop.permute.xlu1 %1294 }
 0x3c3   : > { %v1299_v55 = vpop.permute.xlu0 %1298  ;;  %1429 = vmatprep.subr.bf16.mxu1 %v1351_v10  ;;  %v1354_v44 = vsel %vm585_vm8, %v1295_v9, %v1297_v56 }
 0x3c4   : > { %v1355_v38 = vsel %vm585_vm8, %v1297_v56, %v1299_v55  ;;  %v4077_v56 = vld [vmem:[%s6164_s3] ss:$12 sps:$4 sm:$0xff]  }
 0x3c6   : > { %1430 = vmatpush1.bf16.msra.mxu1 %v1350_v15  ;;  %v1293_v35 = vpop.permute.xlu1 %1292 }
 0x3c7   : > { %v1291_v52 = vpop.permute.xlu0 %1290 }
 0x3c8   : > { %v1353_v50 = vsel %vm585_vm8, %v1291_v52, %v1293_v35  ;;  %v1352_v3 = vsel %vm585_vm8, %v1289_v46, %v1291_v52  ;;  %v4082_v52 = vld [vmem:[%s6164_s3 + $0x18] ss:$12 sps:$4 sm:$0xff]  }
 0x3c9   : > { %1431 = vmatprep.subr.bf16.mxu1 %v1353_v50 }
 0x3ca   : > { %1432 = vmatpush1.bf16.msra.mxu1 %v1352_v3  ;;  %v1309_v6 = vpop.permute.xlu1 %1308 }
 0x3cb   : > { %v1301_v13 = vpop.permute.xlu0 %1300  ;;  %1433 = vmatprep.subr.bf16.mxu1 %v1355_v38  ;;  %v4084_v38 = vld [vmem:[%s6164_s3 + $0x20] ss:$12 sps:$4 sm:$0xff]  }
 0x3ce   : > { %1434 = vmatpush1.bf16.msra.mxu1 %v1354_v44  ;;  %v1305_v47 = vpop.permute.xlu1 %1304 }
 0x3cf   : > { %v1303_v51 = vpop.permute.xlu0 %1302 }
 0x3d0   : > { %v1357_v11 = vsel %vm585_vm8, %v1303_v51, %v1305_v47  ;;  %v1356_v17 = vsel %vm585_vm8, %v1301_v13, %v1303_v51 }
 0x3d1   : > { %1435 = vmatprep.subr.bf16.mxu1 %v1357_v11 }
 0x3d2   : > { %1436 = vmatpush1.bf16.msra.mxu1 %v1356_v17  ;;  %v1307_v19 = vpop.permute.xlu1 %1306 }
 0x3d3   : > { %v1311_v0 = vpop.permute.xlu0 %1310  ;;  %v1358_v8 = vsel %vm585_vm8, %v1307_v19, %v1309_v6 }
 0x3d4   : > { %v1359_v12 = vsel %vm585_vm8, %v1309_v6, %v1311_v0  ;;  %v4083_v6 = vld [vmem:[%s6164_s3 + $0x8] ss:$12 sps:$4 sm:$0xff]  }
 0x3d5   : > { %1437 = vmatprep.subr.bf16.mxu1 %v1359_v12 }
 0x3d6   : > { %1438 = vmatpush1.bf16.msra.mxu1 %v1358_v8  ;;  %v1317_v22 = vpop.permute.xlu1 %1316 }
 0x3d7   : > { %v1315_v45 = vpop.permute.xlu0 %1314 }
 0x3d8   : > { %v1361_v27 = vsel %vm585_vm8, %v1315_v45, %v1317_v22 }
 0x3d9   : > { %1439 = vmatprep.subr.bf16.mxu1 %v1361_v27 }
 0x3da   : > { %v1321_v32 = vpop.permute.xlu1 %1320 }
 0x3db   : > { %v1313_v60 = vpop.permute.xlu0 %1312 }
 0x3dc   : > { %v1360_v7 = vsel %vm585_vm8, %v1313_v60, %v1315_v45 }
 0x3dd   : > { %1440 = vmatpush1.bf16.msra.mxu1 %v1360_v7 }
 0x3de   : > { %v1319_v46 = vpop.permute.xlu1 %1318 }
 0x3df   : > { %v1323_v20 = vpop.permute.xlu0 %1322  ;;  %v1362_v10 = vsel %vm585_vm8, %v1319_v46, %v1321_v32 }
 0x3e0   : > { %1442 = vmatmul.mubr.bf16.vlgmr.msra.gmra.mrb[0].mxu1 %v4077_v56  ;;  %v1363_v9 = vsel %vm585_vm8, %v1321_v32, %v1323_v20 }
 0x3e1   : > { %1462 = vmatprep.subr.bf16.mxu1 %v1363_v9  ;;  %1451 = vmatprep.mubr.bf16.mxu1 %v4080_v57 }
 0x3e2   : > { %1463 = vmatpush1.bf16.msra.mxu1 %v1362_v10  ;;  %v1329_v55 = vpop.permute.xlu1 %1328 }
 0x3e3   : > { %v1327_v15 = vpop.permute.xlu0 %1326 }
 0x3e4   : > { %v1365_v35 = vsel %vm585_vm8, %v1327_v15, %v1329_v55 }
 0x3e5   : > { %1464 = vmatprep.subr.bf16.mxu1 %v1365_v35 }
 0x3e7   : > { %v1325_v50 = vpop.permute.xlu0 %1324 }
 0x3e8   : > { %v1364_v3 = vsel %vm585_vm8, %v1325_v50, %v1327_v15  ;;  %1452 = vmatmul.mubr.bf16.gmra.mrb[4].mxu1 %v4082_v52 }
 0x3e9   : > { %1465 = vmatpush1.bf16.msra.mxu1 %v1364_v3  ;;  %1494 = vmatprep.mubr.bf16.mxu1 %v6249_v1 }
 0x3f0   : > { %3806 = vmatmul.mubr.msk.bf16.vlgmr.msra.gmra.mrb[0].mxu1 %vm1402_vm4, %v4083_v6 }
 0x3f1   : > { %1504 = vmatprep.mubr.bf16.mxu1 %v6249_v1 }
 0x3f3   : > { %v1169_v13 = vpop.permute.xlu1 %1168 }
 0x3f7   : > { %v1179_v20 = vpop.permute.xlu1 %1178 }
 0x3f8   : > { %3807 = vmatmul.mubr.msk.bf16.gmra.mrb[4].mxu1 %vm1402_vm4, %v4084_v38  ;;  %v1174_v11 = vpop.permute.xlu0 %1173 }
 0x3fc   : > { %v1184_v6 = vpop.permute.xlu0 %1183 }
 0x4c3   : > { %v1496_v44 = vpop.f32.mrb[0].mxu1 }
 0x4c4   : > { %v3933_v47 = vadd.f32 %v1496_v44, %v1169_v13  ;;  %v1498_v51 = vpop.f32.mrb[1].mxu1 }
 0x4c5   : > { %v3934_v17 = vadd.f32 %v1498_v51, %v1169_v13  ;;  %v1500_v19 = vpop.f32.mrb[2].mxu1 }
 0x4c6   : > { %vm1515_vm7 = vcmp.ge.f32.partialorder %v3933_v47, 0.0  ;;  %v1523_v0 = vmul.f32 0.01, %v3933_v47  ;;  %v3935_v12 = vadd.f32 %v1500_v19, %v1174_v11  ;;  %v1502_v8 = vpop.f32.mrb[3].mxu1 }
 0x4c7   : > { %vm1516_vm1 = vcmp.ge.f32.partialorder %v3934_v17, 0.0  ;;  %v1524_v22 = vmul.f32 0.01, %v3934_v17  ;;  %v3936_v45 = vadd.f32 %v1502_v8, %v1174_v11 }
 0x4c8   : > { %v5017_v27 = vsel %vm1515_vm7, %v3933_v47, %v1523_v0  ;;  %vm1517_vm2 = vcmp.ge.f32.partialorder %v3935_v12, 0.0  ;;  %v1525_v32 = vmul.f32 0.01, %v3935_v12 }
 0x4c9   : > { %6250 = vst [vmem:[#allocation18_spill] sm:$0xff] %v5017_v27  ;;  %v5019_v60 = vsel %vm1516_vm1, %v3934_v17, %v1524_v22  ;;  %vm1518_vm3 = vcmp.ge.f32.partialorder %v3936_v45, 0.0  ;;  %v1526_v7 = vmul.f32 0.01, %v3936_v45 }
 0x4ca   : > { %6251 = vst [vmem:[#allocation19_spill] sm:$0xff] %v5019_v60  ;;  %v5021_v56 = vsel %vm1517_vm2, %v3935_v12, %v1525_v32  ;;  %v5025_v57 = vadd.f32 %v5019_v60, %v5017_v27 }
 0x4cb   : > { %6252 = vst [vmem:[#allocation20_spill] sm:$0xff] %v5021_v56  ;;  %v5031_v9 = vpack.c.bf16 %v5021_v56, %v5017_v27  ;;  %v5033_v10 = vsel %vm1518_vm3, %v3936_v45, %v1526_v7  ;;  %v1506_v55 = vpop.f32.mrb[4].mxu1 }
 0x4cc   : > { %6254 = vst [vmem:[#allocation22_spill] sm:$0xff] %v5033_v10  ;;  %v5037_v15 = vpack.c.bf16 %v5033_v10, %v5019_v60  ;;  %v3937_v35 = vadd.f32 %v1506_v55, %v1179_v20  ;;  %v1508_v52 = vpop.f32.mrb[5].mxu1  ;;  %v5041_v50 = vadd.f32 %v5033_v10, %v5021_v56 }
 0x4cd   : > { %6253 = vst [vmem:[#allocation21_spill] sm:$0xff] %v5031_v9  ;;  %v3938_v38 = vadd.f32 %v1508_v52, %v1179_v20  ;;  %v1510_v13 = vpop.f32.mrb[6].mxu1  ;;  %1693 = vrot.lane.b32.xlu0 %v5031_v9, %s6244_s0  ;;  %1635 = vrot.lane.b32.xlu1 %v5031_v9, %s6245_s2  ;;  %v1586_v52 = vmul.bf16 %v5031_v9, %v4513_v62 }
 0x4ce   : > { %6255 = vst [vmem:[#allocation23_spill] sm:$0xff] %v5037_v15  ;;  %vm1519_vm7 = vcmp.ge.f32.partialorder %v3937_v35, 0.0  ;;  %v1527_v44 = vmul.f32 0.01, %v3937_v35  ;;  %v3939_v47 = vadd.f32 %v1510_v13, %v1184_v6  ;;  %v1512_v51 = vpop.f32.mrb[7].mxu1  ;;  %v1598_v13 = vmul.bf16 %v5031_v9, %v4447_v36 }
 0x4cf   : > { %vm1520_vm1 = vcmp.ge.f32.partialorder %v3938_v38, 0.0  ;;  %v1528_v11 = vmul.f32 0.01, %v3938_v38  ;;  %v3940_v17 = vadd.f32 %v1512_v51, %v1184_v6  ;;  %v1599_v51 = vmul.bf16 %v5037_v15, %v4423_v26 }
 0x4d0   : > { %vm1521_vm2 = vcmp.ge.f32.partialorder %v3939_v47, 0.0  ;;  %v1529_v19 = vmul.f32 0.01, %v3939_v47  ;;  %v5049_v0 = vsel %vm1519_vm7, %v3937_v35, %v1527_v44  ;;  %v1592_v35 = vmul.bf16 %v5031_v9, %v4430_v29 }
 0x4d1   : > { %6256 = vst [vmem:[#allocation24_spill] sm:$0xff] %v5049_v0  ;;  %v5051_v12 = vsel %vm1520_vm1, %v3938_v38, %v1528_v11  ;;  %vm1522_vm3 = vcmp.ge.f32.partialorder %v3940_v17, 0.0  ;;  %v1530_v8 = vmul.f32 0.01, %v3940_v17  ;;  %1753 = vrot.lane.b32.xlu0 %v5031_v9, %s6240_s30  ;;  %1695 = vrot.lane.b32.xlu1 %v5037_v15, %s6244_s0  ;;  %v1593_v44 = vmul.bf16 %v5037_v15, %v4421_v25 }
 0x4d2   : > { %6257 = vst [vmem:[#allocation25_spill] sm:$0xff] %v5051_v12  ;;  %v5057_v22 = vsel %vm1521_vm2, %v3939_v47, %v1529_v19  ;;  %v5071_v20 = vadd.f32 %v5051_v12, %v5049_v0  ;;  %v1609_v47 = vmul.bf16 %v5031_v9, %v4434_v30  ;;  %v1615_v11 = vmul.bf16 %v5031_v9, %v4439_v33 }
 0x4d3   : > { %6258 = vst [vmem:[#allocation26_spill] sm:$0xff] %v5057_v22  ;;  %v5061_v45 = vpack.c.bf16 %v5057_v22, %v5049_v0  ;;  %v5063_v32 = vsel %vm1522_vm3, %v3940_v17, %v1530_v8  ;;  %v1610_v17 = vmul.bf16 %v5037_v15, %v4464_v42  ;;  %v1621_v19 = vmul.bf16 %v5031_v9, %v4460_v41 }
 0x4d4   : > { %6260 = vst [vmem:[#allocation28_spill] sm:$0xff] %v5063_v32  ;;  %v5067_v7 = vpack.c.bf16 %v5063_v32, %v5051_v12  ;;  %6262 = vst [vmem:[#allocation30_spill] sm:$0xff] %v5071_v20  ;;  %v5075_v55 = vadd.f32 %v5063_v32, %v5057_v22  ;;  %v1616_v8 = vmul.bf16 %v5037_v15, %v4467_v43 }
 0x4d5   : > { %6259 = vst [vmem:[#allocation27_spill] sm:$0xff] %v5061_v45  ;;  %1637 = vrot.lane.b32.xlu0 %v5037_v15, %s6245_s2  ;;  %1755 = vrot.lane.b32.xlu1 %v5037_v15, %s6240_s30 }
 0x4d6   : > { %6261 = vst [vmem:[#allocation29_spill] sm:$0xff] %v5067_v7  ;;  %6263 = vst [vmem:[#allocation31_spill] sm:$0xff] %v5075_v55 }
 0x4d9   : > { %1657 = vrot.lane.b32.xlu0 %v1592_v35, %s6236_s23  ;;  %1861 = vrot.lane.b32.xlu1 %v1586_v52, %s6248_s27  ;;  %v1587_v35 = vmul.bf16 %v5037_v15, %v4483_v49  ;;  %v1622_v52 = vmul.bf16 %v5037_v15, %v4481_v48 }
 0x4dd   : > { %1679 = vrot.lane.b32.xlu0 %v1598_v13, %s6237_s24  ;;  %1659 = vrot.lane.b32.xlu1 %v1593_v44, %s6236_s23  ;;  %v1595_v13 = vmul.bf16 %v5061_v45, %v4430_v29  ;;  %v1589_v44 = vmul.bf16 %v5061_v45, %v4513_v62 }
 0x4e1   : > { %1709 = vrot.lane.b32.xlu0 %v1609_v47, %s6238_s15  ;;  %1681 = vrot.lane.b32.xlu1 %v1599_v51, %s6237_s24  ;;  %v1601_v47 = vmul.bf16 %v5061_v45, %v4447_v36  ;;  %v1596_v51 = vmul.bf16 %v5067_v7, %v4421_v25 }
 0x4e5   : > { %1731 = vrot.lane.b32.xlu0 %v1615_v11, %s6239_s16  ;;  %1711 = vrot.lane.b32.xlu1 %v1610_v17, %s6238_s15  ;;  %v1612_v11 = vmul.bf16 %v5061_v45, %v4434_v30  ;;  %v1624_v17 = vmul.bf16 %v5061_v45, %v4460_v41 }
 0x4e9   : > { %1775 = vrot.lane.b32.xlu0 %v1621_v19, %s6241_s22  ;;  %1733 = vrot.lane.b32.xlu1 %v1616_v8, %s6239_s16  ;;  %v1618_v19 = vmul.bf16 %v5061_v45, %v4439_v33  ;;  %v1602_v8 = vmul.bf16 %v5067_v7, %v4423_v26 }
 0x4ed   : > { %1863 = vrot.lane.b32.xlu0 %v1587_v35, %s6248_s27  ;;  %1777 = vrot.lane.b32.xlu1 %v1622_v52, %s6241_s22  ;;  %v1590_v35 = vmul.bf16 %v5067_v7, %v4483_v49  ;;  %v1625_v52 = vmul.bf16 %v5067_v7, %v4481_v48 }
 0x4f1   : > { %1759 = vrot.lane.b32.xlu1 %v5061_v45, %s6240_s30  ;;  %1641 = vrot.lane.b32.xlu0 %v5061_v45, %s6245_s2 }
 0x4f5   : > { %1643 = vrot.lane.b32.xlu1 %v5067_v7, %s6245_s2  ;;  %1697 = vrot.lane.b32.xlu0 %v5061_v45, %s6244_s0 }
 0x4f9   : > { %1699 = vrot.lane.b32.xlu1 %v5067_v7, %s6244_s0  ;;  %1761 = vrot.lane.b32.xlu0 %v5067_v7, %s6240_s30 }
 0x4fd   : > { %1663 = vrot.lane.b32.xlu1 %v1595_v13, %s6236_s23  ;;  %1867 = vrot.lane.b32.xlu0 %v1589_v44, %s6248_s27  ;;  %v1613_v13 = vmul.bf16 %v5067_v7, %v4464_v42  ;;  %v1619_v44 = vmul.bf16 %v5067_v7, %v4467_v43 }
 0x501   : > { %1685 = vrot.lane.b32.xlu1 %v1601_v47, %s6237_s24  ;;  %1665 = vrot.lane.b32.xlu0 %v1596_v51, %s6236_s23  ;;  %v1656_v47 = vpop.permute.xlu0 %1655  ;;  %v5171_v51 = vpop.permute.xlu1 %4052 }
 0x502   : > { %v4054_v45 = vunpack.i.l.bf16 %v5171_v51 }
 0x505   : > { %1715 = vrot.lane.b32.xlu1 %v1612_v11, %s6238_s15  ;;  %1781 = vrot.lane.b32.xlu0 %v1624_v17, %s6241_s22  ;;  %v1678_v11 = vpop.permute.xlu0 %1677  ;;  %v5173_v17 = vpop.permute.xlu1 %1661 }
 0x509   : > { %1737 = vrot.lane.b32.xlu1 %v1618_v19, %s6239_s16  ;;  %1687 = vrot.lane.b32.xlu0 %v1602_v8, %s6237_s24  ;;  %v5175_v19 = vpop.permute.xlu0 %1713  ;;  %v5177_v8 = vpop.permute.xlu1 %1683 }
 0x50d   : > { %1869 = vrot.lane.b32.xlu1 %v1590_v35, %s6248_s27  ;;  %1785 = vrot.lane.b32.xlu0 %v4493_v53, %s6241_s22  ;;  %v5179_v35 = vpop.permute.xlu0 %1735 }
 0x511   : > { %1783 = vrot.lane.b32.xlu1 %v1625_v52, %s6241_s22  ;;  %1717 = vrot.lane.b32.xlu0 %v1613_v13, %s6238_s15  ;;  %v5181_v52 = vpop.permute.xlu1 %1719  ;;  %v5183_v13 = vpop.permute.xlu0 %4057 }
 0x515   : > { %1739 = vrot.lane.b32.xlu0 %v1619_v44, %s6239_s16  ;;  %v5185_v38 = vpop.permute.xlu1 %1741  ;;  %v5187_v6 = vpop.permute.xlu0 %1865 }
 0x519   : > { %v1860_v44 = vpop.permute.xlu1 %1859  ;;  %v5189_v3 = vpop.permute.xlu0 %1779 }
 0x53f   : > { %v1694_v46 = vpop.permute.xlu0 %1693  ;;  %v1636_v7 = vpop.permute.xlu1 %1635 }
 0x540   : > { %1907 = vrot.lane.b32.xlu1 %v1694_v46, %s6248_s27  ;;  %v1645_v63 = vsel %vm548_vm5, %v4054_v45, %v1636_v7 }
 0x543   : > { %v5193_v15 = vpop.permute.xlu0 %1753  ;;  %v1696_v9 = vpop.permute.xlu1 %1695 }
 0x544   : > { %1871 = vrot.lane.b32.xlu1 %v1645_v63, %s6248_s27  ;;  %v1701_v0 = vsel %vm522_vm9, %v1694_v46, %v1696_v9 }
 0x547   : > { %v1638_v34 = vpop.permute.xlu0 %1637  ;;  %v5197_v28 = vpop.permute.xlu1 %1755 }
 0x548   : > { %1875 = vrot.lane.b32.xlu0 %v1638_v34, %s6248_s27  ;;  %v1646_v32 = vsel %vm548_vm5, %v1636_v7, %v1638_v34 }
 0x549   : > { %1873 = vrot.lane.b32.xlu1 %v1646_v32, %s6248_s27 }
 0x54b   : > { %v1658_v22 = vpop.permute.xlu0 %1657  ;;  %v1862_v12 = vpop.permute.xlu1 %1861 }
 0x54c   : > { %1911 = vrot.lane.b32.xlu0 %v1696_v9, %s6248_s27  ;;  %v1667_v34 = vsel %vm613_vm10, %v1656_v47, %v1658_v22 }
 0x54d   : > { %1909 = vrot.lane.b32.xlu1 %v1701_v0, %s6248_s27 }
 0x54f   : > { %v1680_v45 = vpop.permute.xlu0 %1679  ;;  %v1660_v55 = vpop.permute.xlu1 %1659 }
 0x550   : > { %v1668_v10 = vsel %vm613_vm10, %v1658_v22, %v1660_v55  ;;  %v1689_v46 = vsel %vm625_vm11, %v1678_v11, %v1680_v45  ;;  %v1967_v22 = vsel %vm585_vm8, %v1860_v44, %v1862_v12 }
 0x551   : > { %1887 = vrot.lane.b32.xlu1 %v1660_v55, %s6248_s27 }
 0x553   : > { %v1710_v63 = vpop.permute.xlu0 %1709  ;;  %v1682_v20 = vpop.permute.xlu1 %1681 }
 0x554   : > { %1899 = vrot.lane.b32.xlu0 %v1682_v20, %s6248_s27  ;;  %v1690_v56 = vsel %vm625_vm11, %v1680_v45, %v1682_v20 }
 0x555   : > { %1883 = vrot.lane.b32.xlu1 %v1667_v34, %s6248_s27 }
 0x557   : > { %v5209_v32 = vpop.permute.xlu0 %1731  ;;  %v1712_v7 = vpop.permute.xlu1 %1711 }
 0x558   : > { %1885 = vrot.lane.b32.xlu0 %v1668_v10, %s6248_s27  ;;  %v1721_v27 = vsel %vm642_vm12, %v1710_v63, %v1712_v7 }
 0x559   : > { %1895 = vrot.lane.b32.xlu1 %v1689_v46, %s6248_s27 }
 0x55b   : > { %v5215_v9 = vpop.permute.xlu0 %1775  ;;  %v1734_v0 = vpop.permute.xlu1 %1733 }
 0x55d   : > { %1897 = vrot.lane.b32.xlu1 %v1690_v56, %s6248_s27  ;;  %v4055_v56 = vunpack.i.h.bf16 %v5171_v51 }
 0x55f   : > { %v1864_v47 = vpop.permute.xlu0 %1863  ;;  %v5219_v34 = vpop.permute.xlu1 %1777 }
 0x560   : > { %v1968_v60 = vsel %vm585_vm8, %v1862_v12, %v1864_v47 }
 0x561   : > { %2045 = vmatprep.subr.bf16.mxu0 %v1968_v60 }
 0x562   : > { %2046 = vmatpush1.bf16.msra.mxu0 %v1967_v22 }
 0x563   : > { %v1642_v10 = vpop.permute.xlu0 %1641  ;;  %v5223_v55 = vpop.permute.xlu1 %1759 }
 0x564   : > { %v1647_v60 = vsel %vm548_vm5, %v4055_v56, %v1642_v10 }
 0x567   : > { %v1698_v11 = vpop.permute.xlu0 %1697  ;;  %v1644_v46 = vpop.permute.xlu1 %1643 }
 0x568   : > { %1881 = vrot.lane.b32.xlu1 %v1644_v46, %s6248_s27  ;;  %v1648_v20 = vsel %vm548_vm5, %v1642_v10, %v1644_v46 }
 0x569   : > { %1879 = vrot.lane.b32.xlu0 %v1648_v20, %s6248_s27 }
 0x56b   : > { %v5229_v45 = vpop.permute.xlu0 %1761  ;;  %v1700_v47 = vpop.permute.xlu1 %1699 }
 0x56c   : > { %1877 = vrot.lane.b32.xlu1 %v1647_v60, %s6248_s27  ;;  %v1702_v12 = vsel %vm522_vm9, %v1698_v11, %v1700_v47 }
 0x56d   : > { %1915 = vrot.lane.b32.xlu0 %v1702_v12, %s6248_s27 }
 0x56f   : > { %v1868_v44 = vpop.permute.xlu0 %1867  ;;  %v1664_v22 = vpop.permute.xlu1 %1663 }
 0x570   : > { %1917 = vrot.lane.b32.xlu1 %v1700_v47, %s6248_s27  ;;  %v1669_v51 = vsel %vm613_vm10, %v5173_v17, %v1664_v22 }
 0x571   : > { %1889 = vrot.lane.b32.xlu0 %v1669_v51, %s6248_s27 }
 0x573   : > { %v1666_v46 = vpop.permute.xlu0 %1665  ;;  %v1686_v20 = vpop.permute.xlu1 %1685 }
 0x574   : > { %1893 = vrot.lane.b32.xlu1 %v1666_v46, %s6248_s27  ;;  %v1691_v10 = vsel %vm625_vm11, %v5177_v8, %v1686_v20  ;;  %v1670_v12 = vsel %vm613_vm10, %v1664_v22, %v1666_v46  ;;  %v1969_v22 = vsel %vm585_vm8, %v5187_v6, %v1868_v44  ;;  %v1744_v6 = vsel %vm654_vm14, %v1734_v0, %v5179_v35 }
 0x575   : > { %1901 = vrot.lane.b32.xlu0 %v1691_v10, %s6248_s27 }
 0x577   : > { %v5243_v56 = vpop.permute.xlu0 %1781  ;;  %v1716_v60 = vpop.permute.xlu1 %1715 }
 0x579   : > { %1891 = vrot.lane.b32.xlu0 %v1670_v12, %s6248_s27 }
 0x57b   : > { %v1688_v47 = vpop.permute.xlu0 %1687  ;;  %v1738_v17 = vpop.permute.xlu1 %1737 }
 0x57c   : > { %1905 = vrot.lane.b32.xlu1 %v1688_v47, %s6248_s27  ;;  %v1692_v8 = vsel %vm625_vm11, %v1686_v20, %v1688_v47  ;;  %v1767_v47 = vsel %vm664_vm13, %v5223_v55, %v5229_v45 }
 0x57d   : > { %1913 = vrot.lane.b32.xlu0 %v1698_v11, %s6248_s27  ;;  %v1722_v11 = vsel %vm642_vm12, %v1712_v7, %v5175_v19  ;;  %v1765_v7 = vsel %vm664_vm13, %v5193_v15, %v5197_v28 }
 0x57f   : > { %v1870_v51 = vpop.permute.xlu1 %1869  ;;  %v1786_v46 = vpop.permute.xlu0 %1785 }
 0x580   : > { %1921 = vrot.lane.b32.xlu1 %v1721_v27, %s6248_s27  ;;  %v1970_v10 = vsel %vm585_vm8, %v1868_v44, %v1870_v51  ;;  %v1743_v27 = vsel %vm654_vm14, %v5209_v32, %v1734_v0  ;;  %v4087_v0 = vld [vmem:[%s6166_s5 + $0x4] ss:$12 sps:$4 sm:$0xff]  }
 0x581   : > { %1903 = vrot.lane.b32.xlu0 %v1692_v8, %s6248_s27  ;;  %2047 = vmatprep.subr.bf16.mxu0 %v1970_v10  ;;  %v1802_v8 = vld [vmem:[%s6167_s6 + $0x18] sm:$0xff] }
 0x582   : > { %2048 = vmatpush1.bf16.msra.mxu0 %v1969_v22  ;;  %2077 = vmatprep.mubr.bf16.mxu0 %v4087_v0 }
 0x583   : > { %v1718_v20 = vpop.permute.xlu0 %1717 }
 0x584   : > { %1919 = vrot.lane.b32.xlu1 %v1710_v63, %s6248_s27  ;;  %v1724_v19 = vsel %vm642_vm12, %v1718_v20, %v5181_v52  ;;  %v1723_v63 = vsel %vm642_vm12, %v1716_v60, %v1718_v20 }
 0x585   : > { %1923 = vrot.lane.b32.xlu0 %v1722_v11, %s6248_s27 }
 0x587   : > { %v1740_v44 = vpop.permute.xlu0 %1739 }
 0x588   : > { %1933 = vrot.lane.b32.xlu1 %v1743_v27, %s6248_s27  ;;  %v1746_v35 = vsel %vm654_vm14, %v1740_v44, %v5185_v38  ;;  %v1745_v52 = vsel %vm654_vm14, %v1738_v17, %v1740_v44  ;;  %v4060_v38 = vunpack.i.h.bf16 %v5183_v13 }
 0x589   : > { %1925 = vrot.lane.b32.xlu0 %v1716_v60, %s6248_s27 }
 0x58a   : > { %v1768_v12 = vsel %vm664_vm13, %v5229_v45, %v4060_v38 }
 0x58c   : > { %1931 = vrot.lane.b32.xlu1 %v5209_v32, %s6248_s27  ;;  %v4059_v32 = vunpack.i.l.bf16 %v5183_v13  ;;  %v1788_v13 = vsel %vm676_vm15, %v5219_v34, %v5189_v3  ;;  %v1801_v3 = vld [vmem:[%s6167_s6 + $0x10] sm:$0xff] }
 0x58d   : > { %1935 = vrot.lane.b32.xlu0 %v1744_v6, %s6248_s27 }
 0x58e   : > { %v1766_v60 = vsel %vm664_vm13, %v5197_v28, %v4059_v32  ;;  %v1787_v28 = vsel %vm676_vm15, %v5215_v9, %v5219_v34  ;;  %v1800_v34 = vld [vmem:[%s6167_s6 + $0x8] sm:$0xff] }
 0x590   : > { %1929 = vrot.lane.b32.xlu1 %v1724_v19, %s6248_s27 }
 0x591   : > { %1927 = vrot.lane.b32.xlu0 %v1723_v63, %s6248_s27 }
 0x594   : > { %1945 = vrot.lane.b32.xlu1 %v1765_v7, %s6248_s27 }
 0x595   : > { %1937 = vrot.lane.b32.xlu0 %v1738_v17, %s6248_s27 }
 0x598   : > { %1941 = vrot.lane.b32.xlu1 %v1746_v35, %s6248_s27 }
 0x599   : > { %1939 = vrot.lane.b32.xlu0 %v1745_v52, %s6248_s27 }
 0x59c   : > { %1943 = vrot.lane.b32.xlu1 %v5193_v15, %s6248_s27  ;;  %v1784_v15 = vpop.permute.xlu1 %1783 }
 0x59d   : > { %1947 = vrot.lane.b32.xlu0 %v1766_v60, %s6248_s27  ;;  %v1790_v45 = vsel %vm676_vm15, %v1784_v15, %v1786_v46  ;;  %v1789_v17 = vsel %vm676_vm15, %v5243_v56, %v1784_v15 }
 0x5a0   : > { %1953 = vrot.lane.b32.xlu1 %v1768_v12, %s6248_s27 }
 0x5a1   : > { %1951 = vrot.lane.b32.xlu0 %v1767_v47, %s6248_s27 }
 0x5a4   : > { %1957 = vrot.lane.b32.xlu1 %v1787_v28, %s6248_s27 }
 0x5a5   : > { %1949 = vrot.lane.b32.xlu0 %v5223_v55, %s6248_s27  ;;  %v1799_v55 = vld [vmem:[%s6167_s6] sm:$0xff] }
 0x5a8   : > { %1955 = vrot.lane.b32.xlu1 %v5215_v9, %s6248_s27 }
 0x5a9   : > { %1959 = vrot.lane.b32.xlu0 %v1788_v13, %s6248_s27 }
 0x5ac   : > { %1965 = vrot.lane.b32.xlu1 %v1790_v45, %s6248_s27 }
 0x5ad   : > { %1963 = vrot.lane.b32.xlu0 %v1789_v17, %s6248_s27 }
 0x5b0   : > { %1805 = vperm.xlu1 %4040, %v1799_v55  }
 0x5b1   : > { %1961 = vrot.lane.b32.xlu0 %v5243_v56, %s6248_s27 }
 0x5b2   : > { %v5326_v9 = vpop.permute.xlu1 %1907 }
 0x5b4   : > { %1815 = vperm.xlu1 %4040, %v1801_v3  }
 0x5b5   : > { %1810 = vperm.xlu0 %4039, %v1800_v34  }
 0x5b6   : > { %v1872_v51 = vpop.permute.xlu1 %1871 }
 0x5b8   : > { %4062 = vrot.lane.b32.xlu1 %v6249_v1, %s6245_s2 }
 0x5b9   : > { %1820 = vperm.xlu0 %4039, %v1802_v8  }
 0x5ba   : > { %v1876_v56 = vpop.permute.xlu0 %1875 }
 0x5bb   : > { %v1874_v10 = vpop.permute.xlu1 %1873 }
 0x5bc   : > { %2297 = vrot.lane.b32.xlu1 %v4413_v23, %s6236_s23  ;;  %v1972_v22 = vsel %vm585_vm8, %v1874_v10, %v1876_v56  ;;  %v1971_v11 = vsel %vm585_vm8, %v1872_v51, %v1874_v10 }
 0x5bd   : > { %2291 = vrot.lane.b32.xlu0 %v4413_v23, %s6236_s23  ;;  %2049 = vmatprep.subr.bf16.mxu0 %v1972_v22 }
 0x5be   : > { %2050 = vmatpush1.bf16.msra.mxu0 %v1971_v11  ;;  %v1912_v20 = vpop.permute.xlu0 %1911 }
 0x5bf   : > { %v1910_v46 = vpop.permute.xlu1 %1909 }
 0x5c0   : > { %2319 = vrot.lane.b32.xlu1 %v4415_v24, %s6237_s24  ;;  %v1984_v10 = vsel %vm585_vm8, %v1910_v46, %v1912_v20  ;;  %v1983_v11 = vsel %vm585_vm8, %v5326_v9, %v1910_v46 }
 0x5c1   : > { %2313 = vrot.lane.b32.xlu0 %v4415_v24, %s6237_s24 }
 0x5c3   : > { %v1888_v27 = vpop.permute.xlu1 %1887 }
 0x5c4   : > { %2355 = vrot.lane.b32.xlu1 %v4449_v37, %s6238_s15 }
 0x5c5   : > { %2349 = vrot.lane.b32.xlu0 %v4449_v37, %s6238_s15 }
 0x5c6   : > { %v1900_v6 = vpop.permute.xlu0 %1899 }
 0x5c7   : > { %v1884_v23 = vpop.permute.xlu1 %1883 }
 0x5c8   : > { %2377 = vrot.lane.b32.xlu1 %v4455_v40, %s6239_s16 }
 0x5c9   : > { %2371 = vrot.lane.b32.xlu0 %v4455_v40, %s6239_s16 }
 0x5ca   : > { %v1886_v19 = vpop.permute.xlu0 %1885 }
 0x5cb   : > { %v1896_v24 = vpop.permute.xlu1 %1895  ;;  %v1976_v32 = vsel %vm585_vm8, %v1886_v19, %v1888_v27 }
 0x5cc   : > { %2495 = vrot.lane.b32.xlu1 %v4497_v54, %s6248_s27 }
 0x5cd   : > { %4067 = vrot.lane.b32.xlu0 %v6249_v1, %s6240_s30 }
 0x5cf   : > { %v1898_v37 = vpop.permute.xlu1 %1897 }
 0x5d0   : > { %v1980_v45 = vsel %vm585_vm8, %v1898_v37, %v1900_v6  ;;  %v1979_v55 = vsel %vm585_vm8, %v1896_v24, %v1898_v37 }
 0x5d1   : > { %2501 = vrot.lane.b32.xlu0 %v4497_v54, %s6248_s27  ;;  %v1975_v54 = vsel %vm585_vm8, %v1884_v23, %v1886_v19 }
 0x5d5   : > { %2415 = vrot.lane.b32.xlu0 %v4493_v53, %s6241_s22 }
 0x5da   : > { %v1882_v63 = vpop.permute.xlu1 %1881 }
 0x5db   : > { %v1880_v40 = vpop.permute.xlu0 %1879 }
 0x5dc   : > { %v1974_v7 = vsel %vm585_vm8, %v1880_v40, %v1882_v63 }
 0x5dd   : > { %2051 = vmatprep.subr.bf16.mxu0 %v1974_v7 }
 0x5de   : > { %v1878_v44 = vpop.permute.xlu1 %1877 }
 0x5df   : > { %v1973_v35 = vsel %vm585_vm8, %v1878_v44, %v1880_v40  ;;  %v1916_v52 = vpop.permute.xlu0 %1915 }
 0x5e0   : > { %2052 = vmatpush1.bf16.msra.mxu0 %v1973_v35 }
 0x5e1   : > { %2053 = vmatprep.subr.bf16.mxu0 %v1976_v32 }
 0x5e2   : > { %v1918_v60 = vpop.permute.xlu1 %1917 }
 0x5e3   : > { %v1890_v0 = vpop.permute.xlu0 %1889  ;;  %v1986_v23 = vsel %vm585_vm8, %v1916_v52, %v1918_v60 }
 0x5e4   : > { %2054 = vmatpush1.bf16.msra.mxu0 %v1975_v54 }
 0x5e6   : > { %v1894_v12 = vpop.permute.xlu1 %1893 }
 0x5e7   : > { %v1902_v38 = vpop.permute.xlu0 %1901 }
 0x5eb   : > { %v1892_v47 = vpop.permute.xlu0 %1891 }
 0x5ec   : > { %v1978_v28 = vsel %vm585_vm8, %v1892_v47, %v1894_v12  ;;  %v1977_v15 = vsel %vm585_vm8, %v1890_v0, %v1892_v47 }
 0x5ed   : > { %2055 = vmatprep.subr.bf16.mxu0 %v1978_v28 }
 0x5ee   : > { %2056 = vmatpush1.bf16.msra.mxu0 %v1977_v15  ;;  %v1906_v13 = vpop.permute.xlu1 %1905 }
 0x5ef   : > { %v1914_v17 = vpop.permute.xlu0 %1913  ;;  %2057 = vmatprep.subr.bf16.mxu0 %v1980_v45 }
 0x5f0   : > { %v1985_v6 = vsel %vm585_vm8, %v1914_v17, %v1916_v52 }
 0x5f2   : > { %2058 = vmatpush1.bf16.msra.mxu0 %v1979_v55  ;;  %v1922_v3 = vpop.permute.xlu1 %1921 }
 0x5f3   : > { %v1904_v34 = vpop.permute.xlu0 %1903 }
 0x5f4   : > { %v1982_v51 = vsel %vm585_vm8, %v1904_v34, %v1906_v13  ;;  %v1981_v8 = vsel %vm585_vm8, %v1902_v38, %v1904_v34 }
 0x5f5   : > { %2059 = vmatprep.subr.bf16.mxu0 %v1982_v51  ;;  %v4085_v51 = vld [vmem:[%s6166_s5] ss:$12 sps:$4 sm:$0xff]  }
 0x5f6   : > { %2060 = vmatpush1.bf16.msra.mxu0 %v1981_v8  ;;  %v1920_v56 = vpop.permute.xlu1 %1919  ;;  %v4088_v8 = vld [vmem:[%s6166_s5 + $0x1c] ss:$12 sps:$4 sm:$0xff]  }
 0x5f7   : > { %v1924_v22 = vpop.permute.xlu0 %1923  ;;  %2061 = vmatprep.subr.bf16.mxu0 %v1984_v10  ;;  %v1987_v20 = vsel %vm585_vm8, %v1920_v56, %v1922_v3 }
 0x5f8   : > { %v1988_v19 = vsel %vm585_vm8, %v1922_v3, %v1924_v22 }
 0x5fa   : > { %2062 = vmatpush1.bf16.msra.mxu0 %v1983_v11  ;;  %v1934_v27 = vpop.permute.xlu1 %1933 }
 0x5fb   : > { %v1926_v24 = vpop.permute.xlu0 %1925  ;;  %2063 = vmatprep.subr.bf16.mxu0 %v1986_v23 }
 0x5fe   : > { %2064 = vmatpush1.bf16.msra.mxu0 %v1985_v6  ;;  %v1932_v37 = vpop.permute.xlu1 %1931  ;;  %v4090_v6 = vld [vmem:[%s6166_s5 + $0x18] ss:$12 sps:$4 sm:$0xff]  }
 0x5ff   : > { %v1936_v63 = vpop.permute.xlu0 %1935  ;;  %2065 = vmatprep.subr.bf16.mxu0 %v1988_v19  ;;  %v1991_v32 = vsel %vm585_vm8, %v1932_v37, %v1934_v27 }
 0x600   : > { %v1992_v35 = vsel %vm585_vm8, %v1934_v27, %v1936_v63  ;;  %v4091_v63 = vld [vmem:[%s6166_s5 + $0x8] ss:$12 sps:$4 sm:$0xff]  }
 0x602   : > { %2066 = vmatpush1.bf16.msra.mxu0 %v1987_v20  ;;  %v1930_v40 = vpop.permute.xlu1 %1929  ;;  %v4092_v20 = vld [vmem:[%s6166_s5 + $0x20] ss:$12 sps:$4 sm:$0xff]  }
 0x603   : > { %v1928_v7 = vpop.permute.xlu0 %1927 }
 0x604   : > { %v1990_v9 = vsel %vm585_vm8, %v1928_v7, %v1930_v40  ;;  %v1989_v46 = vsel %vm585_vm8, %v1926_v24, %v1928_v7 }
 0x605   : > { %2067 = vmatprep.subr.bf16.mxu0 %v1990_v9 }
 0x606   : > { %2068 = vmatpush1.bf16.msra.mxu0 %v1989_v46  ;;  %v1946_v44 = vpop.permute.xlu1 %1945 }
 0x607   : > { %v1938_v52 = vpop.permute.xlu0 %1937  ;;  %2069 = vmatprep.subr.bf16.mxu0 %v1992_v35 }
 0x60a   : > { %2070 = vmatpush1.bf16.msra.mxu0 %v1991_v32  ;;  %v1942_v0 = vpop.permute.xlu1 %1941 }
 0x60b   : > { %v1940_v54 = vpop.permute.xlu0 %1939 }
 0x60c   : > { %v1994_v60 = vsel %vm585_vm8, %v1940_v54, %v1942_v0  ;;  %v1993_v38 = vsel %vm585_vm8, %v1938_v52, %v1940_v54 }
 0x60d   : > { %2071 = vmatprep.subr.bf16.mxu0 %v1994_v60 }
 0x60e   : > { %2072 = vmatpush1.bf16.msra.mxu0 %v1993_v38  ;;  %v1944_v12 = vpop.permute.xlu1 %1943 }
 0x60f   : > { %v1948_v47 = vpop.permute.xlu0 %1947  ;;  %v1995_v15 = vsel %vm585_vm8, %v1944_v12, %v1946_v44 }
 0x610   : > { %v1996_v28 = vsel %vm585_vm8, %v1946_v44, %v1948_v47 }
 0x611   : > { %2073 = vmatprep.subr.bf16.mxu0 %v1996_v28 }
 0x612   : > { %2074 = vmatpush1.bf16.msra.mxu0 %v1995_v15  ;;  %v1954_v13 = vpop.permute.xlu1 %1953 }
 0x613   : > { %v1952_v45 = vpop.permute.xlu0 %1951 }
 0x614   : > { %v1998_v17 = vsel %vm585_vm8, %v1952_v45, %v1954_v13 }
 0x615   : > { %2075 = vmatprep.subr.bf16.mxu0 %v1998_v17 }
 0x616   : > { %v1958_v55 = vpop.permute.xlu1 %1957 }
 0x617   : > { %v1950_v3 = vpop.permute.xlu0 %1949 }
 0x618   : > { %v1997_v34 = vsel %vm585_vm8, %v1950_v3, %v1952_v45 }
 0x619   : > { %2076 = vmatpush1.bf16.msra.mxu0 %v1997_v34 }
 0x61a   : > { %v1956_v56 = vpop.permute.xlu1 %1955 }
 0x61b   : > { %v1960_v10 = vpop.permute.xlu0 %1959  ;;  %v1999_v11 = vsel %vm585_vm8, %v1956_v56, %v1958_v55 }
 0x61c   : > { %2078 = vmatmul.mubr.bf16.vlgmr.msra.gmra.mrb[8].mxu0 %v4085_v51  ;;  %v2000_v22 = vsel %vm585_vm8, %v1958_v55, %v1960_v10 }
 0x61d   : > { %2098 = vmatprep.subr.bf16.mxu0 %v2000_v22  ;;  %2087 = vmatprep.mubr.bf16.mxu0 %v4088_v8 }
 0x61e   : > { %2099 = vmatpush1.bf16.msra.mxu0 %v1999_v11  ;;  %v1966_v27 = vpop.permute.xlu1 %1965 }
 0x61f   : > { %v1964_v23 = vpop.permute.xlu0 %1963 }
 0x620   : > { %v2002_v24 = vsel %vm585_vm8, %v1964_v23, %v1966_v27 }
 0x621   : > { %2100 = vmatprep.subr.bf16.mxu0 %v2002_v24 }
 0x623   : > { %v1962_v37 = vpop.permute.xlu0 %1961 }
 0x624   : > { %v2001_v19 = vsel %vm585_vm8, %v1962_v37, %v1964_v23  ;;  %2088 = vmatmul.mubr.bf16.gmra.mrb[12].mxu0 %v4090_v6 }
 0x625   : > { %2101 = vmatpush1.bf16.msra.mxu0 %v2001_v19  ;;  %2130 = vmatprep.mubr.bf16.mxu0 %v6249_v1 }
 0x62c   : > { %3814 = vmatmul.mubr.msk.bf16.vlgmr.msra.gmra.mrb[8].mxu0 %vm1402_vm4, %v4091_v63 }
 0x62d   : > { %2140 = vmatprep.mubr.bf16.mxu0 %v6249_v1 }
 0x62f   : > { %v1806_v40 = vpop.permute.xlu1 %1805 }
 0x633   : > { %v1816_v55 = vpop.permute.xlu1 %1815 }
 0x634   : > { %3815 = vmatmul.mubr.msk.bf16.gmra.mrb[12].mxu0 %vm1402_vm4, %v4092_v20  ;;  %v1811_v44 = vpop.permute.xlu0 %1810 }
 0x638   : > { %v1821_v27 = vpop.permute.xlu0 %1820 }
 0x6ff   : > { %v2132_v7 = vpop.f32.mrb[8].mxu0 }
 0x700   : > { %v3941_v9 = vadd.f32 %v2132_v7, %v1806_v40  ;;  %v2134_v46 = vpop.f32.mrb[9].mxu0 }
 0x701   : > { %v3942_v35 = vadd.f32 %v2134_v46, %v1806_v40  ;;  %v2136_v52 = vpop.f32.mrb[10].mxu0 }
 0x702   : > { %vm2151_vm7 = vcmp.ge.f32.partialorder %v3941_v9, 0.0  ;;  %v2159_v32 = vmul.f32 0.01, %v3941_v9  ;;  %v3943_v0 = vadd.f32 %v2136_v52, %v1811_v44  ;;  %v2138_v54 = vpop.f32.mrb[11].mxu0 }
 0x703   : > { %vm2152_vm1 = vcmp.ge.f32.partialorder %v3942_v35, 0.0  ;;  %v2160_v60 = vmul.f32 0.01, %v3942_v35  ;;  %v3944_v38 = vadd.f32 %v2138_v54, %v1811_v44 }
 0x704   : > { %v5412_v12 = vsel %vm2151_vm7, %v3941_v9, %v2159_v32  ;;  %vm2153_vm2 = vcmp.ge.f32.partialorder %v3943_v0, 0.0  ;;  %v2161_v47 = vmul.f32 0.01, %v3943_v0 }
 0x705   : > { %v5414_v28 = vsel %vm2152_vm1, %v3942_v35, %v2160_v60  ;;  %vm2154_vm3 = vcmp.ge.f32.partialorder %v3944_v38, 0.0  ;;  %v2162_v15 = vmul.f32 0.01, %v3944_v38 }
 0x706   : > { %v5416_v13 = vsel %vm2153_vm2, %v3943_v0, %v2161_v47  ;;  %v5420_v45 = vadd.f32 %v5414_v28, %v5412_v12  ;;  %v2195_v17 = vmax.f32 %v5412_v12, %v5414_v28 }
 0x707   : > { %v5426_v3 = vpack.c.bf16 %v5416_v13, %v5412_v12  ;;  %v5428_v34 = vsel %vm2154_vm3, %v3944_v38, %v2162_v15  ;;  %v2142_v51 = vpop.f32.mrb[12].mxu0 }
 0x708   : > { %v5432_v8 = vpack.c.bf16 %v5428_v34, %v5414_v28  ;;  %v3945_v56 = vadd.f32 %v2142_v51, %v1816_v55  ;;  %v2144_v10 = vpop.f32.mrb[13].mxu0  ;;  %v5436_v22 = vadd.f32 %v5428_v34, %v5416_v13  ;;  %v2198_v11 = vmax.f32 %v5416_v13, %v5428_v34 }
 0x709   : > { %v3946_v23 = vadd.f32 %v2144_v10, %v1816_v55  ;;  %v2146_v24 = vpop.f32.mrb[14].mxu0  ;;  %2329 = vrot.lane.b32.xlu0 %v5426_v3, %s6244_s0  ;;  %2271 = vrot.lane.b32.xlu1 %v5426_v3, %s6245_s2  ;;  %v2228_v60 = vmul.bf16 %v5426_v3, %v4430_v29  ;;  %v2222_v38 = vmul.bf16 %v5426_v3, %v4513_v62 }
 0x70a   : > { %vm2155_vm7 = vcmp.ge.f32.partialorder %v3945_v56, 0.0  ;;  %v2163_v6 = vmul.f32 0.01, %v3945_v56  ;;  %v3947_v37 = vadd.f32 %v2146_v24, %v1821_v27  ;;  %v2148_v19 = vpop.f32.mrb[15].mxu0  ;;  %v2234_v55 = vmul.bf16 %v5426_v3, %v4447_v36 }
 0x70b   : > { %vm2156_vm1 = vcmp.ge.f32.partialorder %v3946_v23, 0.0  ;;  %v2164_v63 = vmul.f32 0.01, %v3946_v23  ;;  %v3948_v20 = vadd.f32 %v2148_v19, %v1821_v27  ;;  %v2229_v51 = vmul.bf16 %v5432_v8, %v4421_v25 }
 0x70c   : > { %vm2157_vm2 = vcmp.ge.f32.partialorder %v3947_v37, 0.0  ;;  %v2165_v40 = vmul.f32 0.01, %v3947_v37  ;;  %v5444_v7 = vsel %vm2155_vm7, %v3945_v56, %v2163_v6  ;;  %v2245_v56 = vmul.bf16 %v5426_v3, %v4434_v30 }
 0x70d   : > { %v5446_v9 = vsel %vm2156_vm1, %v3946_v23, %v2164_v63  ;;  %vm2158_vm3 = vcmp.ge.f32.partialorder %v3948_v20, 0.0  ;;  %v2166_v46 = vmul.f32 0.01, %v3948_v20  ;;  %2389 = vrot.lane.b32.xlu0 %v5426_v3, %s6240_s30  ;;  %2331 = vrot.lane.b32.xlu1 %v5432_v8, %s6244_s0  ;;  %v2235_v10 = vmul.bf16 %v5432_v8, %v4423_v26 }
 0x70e   : > { %v5452_v44 = vsel %vm2157_vm2, %v3947_v37, %v2165_v40  ;;  %v5466_v0 = vadd.f32 %v5446_v9, %v5444_v7  ;;  %v2251_v27 = vmul.bf16 %v5426_v3, %v4439_v33  ;;  %v2246_v23 = vmul.bf16 %v5432_v8, %v4464_v42 }
 0x70f   : > { %v5456_v35 = vpack.c.bf16 %v5452_v44, %v5444_v7  ;;  %v5458_v52 = vsel %vm2158_vm3, %v3948_v20, %v2166_v46  ;;  %v2257_v24 = vmul.bf16 %v5426_v3, %v4460_v41  ;;  %v2252_v6 = vmul.bf16 %v5432_v8, %v4467_v43 }
 0x710   : > { %v5462_v32 = vpack.c.bf16 %v5458_v52, %v5446_v9  ;;  %v5470_v54 = vadd.f32 %v5458_v52, %v5452_v44  ;;  %v2223_v37 = vmul.bf16 %v5432_v8, %v4483_v49  ;;  %v2258_v19 = vmul.bf16 %v5432_v8, %v4481_v48 }
 0x711   : > { %2273 = vrot.lane.b32.xlu0 %v5432_v8, %s6245_s2  ;;  %2391 = vrot.lane.b32.xlu1 %v5432_v8, %s6240_s30  ;;  %v2231_v63 = vmul.bf16 %v5456_v35, %v4430_v29  ;;  %v2225_v20 = vmul.bf16 %v5456_v35, %v4513_v62  ;;  %v2237_v40 = vmul.bf16 %v5456_v35, %v4447_v36 }
 0x712   : > { %v2232_v46 = vmul.bf16 %v5462_v32, %v4421_v25  ;;  %v2248_v29 = vmul.bf16 %v5456_v35, %v4434_v30  ;;  %v2260_v62 = vmul.bf16 %v5456_v35, %v4460_v41  ;;  %v2254_v36 = vmul.bf16 %v5456_v35, %v4439_v33 }
 0x713   : > { %v2238_v25 = vmul.bf16 %v5462_v32, %v4423_v26  ;;  %v2226_v30 = vmul.bf16 %v5462_v32, %v4483_v49  ;;  %v2261_v41 = vmul.bf16 %v5462_v32, %v4481_v48  ;;  %v2249_v33 = vmul.bf16 %v5462_v32, %v4464_v42  ;;  %v2292_v49 = vpop.permute.xlu0 %2291 }
 0x714   : > { %v2255_v26 = vmul.bf16 %v5462_v32, %v4467_v43  ;;  %v6282_v34 = vmax.f32 %v5444_v7, %v5446_v9 }
 0x715   : > { %2293 = vrot.lane.b32.xlu0 %v2228_v60, %s6236_s23  ;;  %2497 = vrot.lane.b32.xlu1 %v2222_v38, %s6248_s27  ;;  %v5566_v60 = vpop.permute.xlu1 %4062 }
 0x717   : > { %v2314_v38 = vpop.permute.xlu0 %2313 }
 0x719   : > { %2315 = vrot.lane.b32.xlu0 %v2234_v55, %s6237_s24  ;;  %2295 = vrot.lane.b32.xlu1 %v2229_v51, %s6236_s23 }
 0x71b   : > { %v5570_v55 = vpop.permute.xlu0 %2349 }
 0x71d   : > { %2345 = vrot.lane.b32.xlu0 %v2245_v56, %s6238_s15  ;;  %2317 = vrot.lane.b32.xlu1 %v2235_v10, %s6237_s24 }
 0x71f   : > { %v5574_v42 = vpop.permute.xlu0 %2371 }
 0x721   : > { %2367 = vrot.lane.b32.xlu0 %v2251_v27, %s6239_s16  ;;  %2347 = vrot.lane.b32.xlu1 %v2246_v23, %s6238_s15 }
 0x723   : > { %v5578_v56 = vpop.permute.xlu0 %4067 }
 0x725   : > { %2411 = vrot.lane.b32.xlu0 %v2257_v24, %s6241_s22  ;;  %2369 = vrot.lane.b32.xlu1 %v2252_v6, %s6239_s16 }
 0x727   : > { %v5582_v43 = vpop.permute.xlu0 %2501 }
 0x729   : > { %2499 = vrot.lane.b32.xlu0 %v2223_v37, %s6248_s27  ;;  %2413 = vrot.lane.b32.xlu1 %v2258_v19, %s6241_s22  ;;  %v4064_v37 = vunpack.i.l.bf16 %v5566_v60 }
 0x72b   : > { %v5584_v23 = vpop.permute.xlu0 %2415 }
 0x72d   : > { %2395 = vrot.lane.b32.xlu1 %v5456_v35, %s6240_s30  ;;  %2277 = vrot.lane.b32.xlu0 %v5456_v35, %s6245_s2 }
 0x731   : > { %2279 = vrot.lane.b32.xlu1 %v5462_v32, %s6245_s2  ;;  %2333 = vrot.lane.b32.xlu0 %v5456_v35, %s6244_s0 }
 0x735   : > { %2335 = vrot.lane.b32.xlu1 %v5462_v32, %s6244_s0  ;;  %2397 = vrot.lane.b32.xlu0 %v5462_v32, %s6240_s30  ;;  %s4257_s30 = smov 80  }
 0x739   : > { %2299 = vrot.lane.b32.xlu1 %v2231_v63, %s6236_s23  ;;  %2503 = vrot.lane.b32.xlu0 %v2225_v20, %s6248_s27 }
 0x73d   : > { %2321 = vrot.lane.b32.xlu1 %v2237_v40, %s6237_s24  ;;  %2301 = vrot.lane.b32.xlu0 %v2232_v46, %s6236_s23 }
 0x741   : > { %2351 = vrot.lane.b32.xlu1 %v2248_v29, %s6238_s15  ;;  %2417 = vrot.lane.b32.xlu0 %v2260_v62, %s6241_s22 }
 0x745   : > { %2373 = vrot.lane.b32.xlu1 %v2254_v36, %s6239_s16  ;;  %2323 = vrot.lane.b32.xlu0 %v2238_v25, %s6237_s24 }
 0x749   : > { %2505 = vrot.lane.b32.xlu1 %v2226_v30, %s6248_s27  ;;  %2421 = vrot.lane.b32.xlu0 %v4493_v53, %s6241_s22  ;;  %v5568_v53 = vpop.permute.xlu1 %2297 }
 0x74d   : > { %2419 = vrot.lane.b32.xlu1 %v2261_v41, %s6241_s22  ;;  %2353 = vrot.lane.b32.xlu0 %v2249_v33, %s6238_s15  ;;  %v5572_v48 = vpop.permute.xlu1 %2319  ;;  %s3710_s15 = scalar_lea.sflag [#allocation4], %s431_s21 }
 0x751   : > { %2375 = vrot.lane.b32.xlu0 %v2255_v26, %s6239_s16  ;;  %v5576_v51 = vpop.permute.xlu1 %2355 }
 0x755   : > { %v5580_v10 = vpop.permute.xlu1 %2377 }
 0x759   : > { %v2496_v27 = vpop.permute.xlu1 %2495 }
 0x77b   : > { %v2330_v24 = vpop.permute.xlu0 %2329  ;;  %v2272_v6 = vpop.permute.xlu1 %2271 }
 0x77c   : > { %2543 = vrot.lane.b32.xlu1 %v2330_v24, %s6248_s27  ;;  %v2281_v20 = vsel %vm548_vm5, %v4064_v37, %v2272_v6 }
 0x77f   : > { %v5588_v19 = vpop.permute.xlu0 %2389  ;;  %v2332_v63 = vpop.permute.xlu1 %2331 }
 0x780   : > { %2507 = vrot.lane.b32.xlu1 %v2281_v20, %s6248_s27  ;;  %v2337_v25 = vsel %vm522_vm9, %v2330_v24, %v2332_v63 }
 0x783   : > { %v2274_v40 = vpop.permute.xlu0 %2273  ;;  %v5592_v46 = vpop.permute.xlu1 %2391 }
 0x784   : > { %2511 = vrot.lane.b32.xlu0 %v2274_v40, %s6248_s27  ;;  %v2282_v29 = vsel %vm548_vm5, %v2272_v6, %v2274_v40 }
 0x785   : > { %2509 = vrot.lane.b32.xlu1 %v2282_v29, %s6248_s27 }
 0x787   : > { %v2294_v62 = vpop.permute.xlu0 %2293  ;;  %v2498_v36 = vpop.permute.xlu1 %2497 }
 0x788   : > { %2547 = vrot.lane.b32.xlu0 %v2332_v63, %s6248_s27  ;;  %v2303_v6 = vsel %vm613_vm10, %v2292_v49, %v2294_v62 }
 0x789   : > { %2545 = vrot.lane.b32.xlu1 %v2337_v25, %s6248_s27 }
 0x78b   : > { %v2316_v30 = vpop.permute.xlu0 %2315  ;;  %v2296_v41 = vpop.permute.xlu1 %2295 }
 0x78c   : > { %v2304_v40 = vsel %vm613_vm10, %v2294_v62, %v2296_v41  ;;  %v2325_v24 = vsel %vm625_vm11, %v2314_v38, %v2316_v30  ;;  %v2603_v62 = vsel %vm585_vm8, %v2496_v27, %v2498_v36 }
 0x78d   : > { %2523 = vrot.lane.b32.xlu1 %v2296_v41, %s6248_s27 }
 0x78f   : > { %v2346_v33 = vpop.permute.xlu0 %2345  ;;  %v2318_v26 = vpop.permute.xlu1 %2317 }
 0x790   : > { %2535 = vrot.lane.b32.xlu0 %v2318_v26, %s6248_s27  ;;  %v2326_v25 = vsel %vm625_vm11, %v2316_v30, %v2318_v26  ;;  %v4065_v26 = vunpack.i.h.bf16 %v5566_v60 }
 0x791   : > { %2519 = vrot.lane.b32.xlu1 %v2303_v6, %s6248_s27 }
 0x793   : > { %v5604_v37 = vpop.permute.xlu0 %2367  ;;  %v2348_v20 = vpop.permute.xlu1 %2347 }
 0x794   : > { %2521 = vrot.lane.b32.xlu0 %v2304_v40, %s6248_s27  ;;  %v2357_v47 = vsel %vm642_vm12, %v2346_v33, %v2348_v20 }
 0x795   : > { %2531 = vrot.lane.b32.xlu1 %v2325_v24, %s6248_s27 }
 0x797   : > { %v5610_v63 = vpop.permute.xlu0 %2411  ;;  %v2370_v29 = vpop.permute.xlu1 %2369 }
 0x799   : > { %2533 = vrot.lane.b32.xlu1 %v2326_v25, %s6248_s27 }
 0x79b   : > { %v2500_v49 = vpop.permute.xlu0 %2499  ;;  %v5614_v6 = vpop.permute.xlu1 %2413 }
 0x79c   : > { %v2604_v15 = vsel %vm585_vm8, %v2498_v36, %v2500_v49 }
 0x79d   : > { %2681 = vmatprep.subr.bf16.mxu1 %v2604_v15 }
 0x79e   : > { %2682 = vmatpush1.bf16.msra.mxu1 %v2603_v62 }
 0x79f   : > { %v2278_v41 = vpop.permute.xlu0 %2277  ;;  %v5618_v38 = vpop.permute.xlu1 %2395 }
 0x7a0   : > { %v2283_v15 = vsel %vm548_vm5, %v4065_v26, %v2278_v41 }
 0x7a3   : > { %v2334_v40 = vpop.permute.xlu0 %2333  ;;  %v2280_v24 = vpop.permute.xlu1 %2279 }
 0x7a4   : > { %2517 = vrot.lane.b32.xlu1 %v2280_v24, %s6248_s27  ;;  %v2284_v30 = vsel %vm548_vm5, %v2278_v41, %v2280_v24 }
 0x7a5   : > { %2515 = vrot.lane.b32.xlu0 %v2284_v30, %s6248_s27 }
 0x7a7   : > { %v5624_v25 = vpop.permute.xlu0 %2397  ;;  %v2336_v49 = vpop.permute.xlu1 %2335 }
 0x7a8   : > { %2513 = vrot.lane.b32.xlu1 %v2283_v15, %s6248_s27  ;;  %v2338_v27 = vsel %vm522_vm9, %v2334_v40, %v2336_v49 }
 0x7a9   : > { %2551 = vrot.lane.b32.xlu0 %v2338_v27, %s6248_s27 }
 0x7ab   : > { %v2504_v36 = vpop.permute.xlu0 %2503  ;;  %v2300_v62 = vpop.permute.xlu1 %2299 }
 0x7ac   : > { %2553 = vrot.lane.b32.xlu1 %v2336_v49, %s6248_s27  ;;  %v2305_v60 = vsel %vm613_vm10, %v5568_v53, %v2300_v62 }
 0x7ad   : > { %2525 = vrot.lane.b32.xlu0 %v2305_v60, %s6248_s27 }
 0x7af   : > { %v2302_v24 = vpop.permute.xlu0 %2301  ;;  %v2322_v30 = vpop.permute.xlu1 %2321 }
 0x7b0   : > { %2529 = vrot.lane.b32.xlu1 %v2302_v24, %s6248_s27  ;;  %v2327_v41 = vsel %vm625_vm11, %v5572_v48, %v2322_v30  ;;  %v2306_v27 = vsel %vm613_vm10, %v2300_v62, %v2302_v24  ;;  %v2605_v62 = vsel %vm585_vm8, %v5582_v43, %v2504_v36  ;;  %v2380_v43 = vsel %vm654_vm14, %v2370_v29, %v5574_v42 }
 0x7b1   : > { %2537 = vrot.lane.b32.xlu0 %v2327_v41, %s6248_s27 }
 0x7b3   : > { %v5638_v26 = vpop.permute.xlu0 %2417  ;;  %v2352_v15 = vpop.permute.xlu1 %2351 }
 0x7b5   : > { %2527 = vrot.lane.b32.xlu0 %v2306_v27, %s6248_s27 }
 0x7b7   : > { %v2324_v49 = vpop.permute.xlu0 %2323  ;;  %v2374_v53 = vpop.permute.xlu1 %2373 }
 0x7b8   : > { %2541 = vrot.lane.b32.xlu1 %v2324_v49, %s6248_s27  ;;  %v2328_v48 = vsel %vm625_vm11, %v2322_v30, %v2324_v49  ;;  %v2403_v49 = vsel %vm664_vm13, %v5618_v38, %v5624_v25 }
 0x7b9   : > { %2549 = vrot.lane.b32.xlu0 %v2334_v40, %s6248_s27  ;;  %v2358_v40 = vsel %vm642_vm12, %v2348_v20, %v5570_v55  ;;  %v2401_v20 = vsel %vm664_vm13, %v5588_v19, %v5592_v46 }
 0x7bb   : > { %v2506_v60 = vpop.permute.xlu1 %2505  ;;  %v2422_v24 = vpop.permute.xlu0 %2421 }
 0x7bc   : > { %2557 = vrot.lane.b32.xlu1 %v2357_v47, %s6248_s27  ;;  %v2606_v41 = vsel %vm585_vm8, %v2504_v36, %v2506_v60  ;;  %v2379_v47 = vsel %vm654_vm14, %v5604_v37, %v2370_v29  ;;  %v4095_v29 = vld [vmem:[%s6168_s7 + $0x4] ss:$12 sps:$4 sm:$0xff]  }
 0x7bd   : > { %2539 = vrot.lane.b32.xlu0 %v2328_v48, %s6248_s27  ;;  %2683 = vmatprep.subr.bf16.mxu1 %v2606_v41  ;;  %v2438_v48 = vld [vmem:[%s6169_s8 + $0x18] sm:$0xff] }
 0x7be   : > { %2684 = vmatpush1.bf16.msra.mxu1 %v2605_v62  ;;  %2713 = vmatprep.mubr.bf16.mxu1 %v4095_v29 }
 0x7bf   : > { %v2354_v30 = vpop.permute.xlu0 %2353 }
 0x7c0   : > { %2555 = vrot.lane.b32.xlu1 %v2346_v33, %s6248_s27  ;;  %v2360_v55 = vsel %vm642_vm12, %v2354_v30, %v5576_v51  ;;  %v2359_v33 = vsel %vm642_vm12, %v2352_v15, %v2354_v30 }
 0x7c1   : > { %2559 = vrot.lane.b32.xlu0 %v2358_v40, %s6248_s27 }
 0x7c3   : > { %v2376_v36 = vpop.permute.xlu0 %2375 }
 0x7c4   : > { %2569 = vrot.lane.b32.xlu1 %v2379_v47, %s6248_s27  ;;  %v2382_v42 = vsel %vm654_vm14, %v2376_v36, %v5580_v10  ;;  %v2381_v51 = vsel %vm654_vm14, %v2374_v53, %v2376_v36  ;;  %v4070_v10 = vunpack.i.h.bf16 %v5578_v56  ;;  %v4174_v36 = vld [vmem:[%s4389_s17 + $0x18] sm:$0xff] }
 0x7c5   : > { %2561 = vrot.lane.b32.xlu0 %v2352_v15, %s6248_s27 }
 0x7c6   : > { %v2404_v27 = vsel %vm664_vm13, %v5624_v25, %v4070_v10 }
 0x7c8   : > { %2567 = vrot.lane.b32.xlu1 %v5604_v37, %s6248_s27  ;;  %v4069_v37 = vunpack.i.l.bf16 %v5578_v56  ;;  %v2420_v56 = vpop.permute.xlu1 %2419 }
 0x7c9   : > { %2571 = vrot.lane.b32.xlu0 %v2380_v43, %s6248_s27  ;;  %v2426_v25 = vsel %vm676_vm15, %v2420_v56, %v2422_v24 }
 0x7ca   : > { %v2402_v15 = vsel %vm664_vm13, %v5592_v46, %v4069_v37  ;;  %v2424_v46 = vsel %vm676_vm15, %v5614_v6, %v5584_v23  ;;  %v2437_v23 = vld [vmem:[%s6169_s8 + $0x10] sm:$0xff]  ;;  %v4176_v37 = vld [vmem:[%s4389_s17 + $0x8] sm:$0xff] }
 0x7cc   : > { %2565 = vrot.lane.b32.xlu1 %v2360_v55, %s6248_s27 }
 0x7cd   : > { %2563 = vrot.lane.b32.xlu0 %v2359_v33, %s6248_s27 }
 0x7d0   : > { %2581 = vrot.lane.b32.xlu1 %v2401_v20, %s6248_s27  ;;  %v4173_v20 = vld [vmem:[%s4389_s17 + $0x10] sm:$0xff] }
 0x7d1   : > { %2573 = vrot.lane.b32.xlu0 %v2374_v53, %s6248_s27  ;;  %v2425_v53 = vsel %vm676_vm15, %v5638_v26, %v2420_v56 }
 0x7d4   : > { %2577 = vrot.lane.b32.xlu1 %v2382_v42, %s6248_s27  ;;  %v496_v42 = vadd.f32 %v4174_v36, %v4173_v20 }
 0x7d5   : > { %2575 = vrot.lane.b32.xlu0 %v2381_v51, %s6248_s27  ;;  %v4175_v51 = vld [vmem:[%s4389_s17] sm:$0xff]  ;;  %s3787_s17 = sshll.u32 %s431_s21, 3 }
 0x7d6   : > { %v493_v29 = vadd.f32 %v4176_v37, %v4175_v51  ;;  %s433_s20 = scalar_lea.vmem [#allocation3], %s3787_s17 }
 0x7d7   : > { %s3724_s1 = sshll.u32 %s433_s20, 4  ;;  %s6121_s1 = int_to_ptr.vmem [resolvable:$true] %s3724_s1 }
 0x7d8   : > { %2579 = vrot.lane.b32.xlu1 %v5588_v19, %s6248_s27  ;;  %v2423_v19 = vsel %vm676_vm15, %v5610_v63, %v5614_v6  ;;  %v2436_v6 = vld [vmem:[%s6169_s8 + $0x8] sm:$0xff]  ;;  %vm2941_vm15 = vcmask 64512   ;;  %s4177_s16 = scalar_lea.vmem %s6121_s1, 128 }
 0x7d9   : > { %2583 = vrot.lane.b32.xlu0 %v2402_v15, %s6248_s27  ;;  %p4178_p11 = scmp.ne.s32.totalorder %s6121_s1, %s4177_s16 }
 0x7db   : > { %p4179_p12 = pnand %p4178_p11, %p4369_p5 }
 0x7dc   : > { %2589 = vrot.lane.b32.xlu1 %v2404_v27, %s6248_s27  ;;  %v502_v27 = vmax.f32 %v4175_v51, %v4176_v37 }
 0x7dd   : > { %2587 = vrot.lane.b32.xlu0 %v2403_v49, %s6248_s27  ;;  %v505_v49 = vmax.f32 %v4173_v20, %v4174_v36  ;;  %v6269_v20 = vld [vmem:[#allocation19_spill] sm:$0xff]  ;;  %p4180_p13 = pneg %p4179_p12 }
 0x7e0   : > { %2593 = vrot.lane.b32.xlu1 %v2423_v19, %s6248_s27 }
 0x7e1   : > { %2585 = vrot.lane.b32.xlu0 %v5618_v38, %s6248_s27  ;;  %v2435_v38 = vld [vmem:[%s6169_s8] sm:$0xff] }
 0x7e4   : > { %2591 = vrot.lane.b32.xlu1 %v5610_v63, %s6248_s27 }
 0x7e5   : > { %2595 = vrot.lane.b32.xlu0 %v2424_v46, %s6248_s27 }
 0x7e8   : > { %2601 = vrot.lane.b32.xlu1 %v2426_v25, %s6248_s27 }
 0x7e9   : > { %2599 = vrot.lane.b32.xlu0 %v2425_v53, %s6248_s27 }
 0x7ec   : > { %2441 = vperm.xlu1 %4040, %v2435_v38  }
 0x7ed   : > { %2597 = vrot.lane.b32.xlu0 %v5638_v26, %s6248_s27  ;;  %s3857_s27 = sshll.u32 %s4352_s29, 7  ;;  %s4260_s29 = smov [#allocation3]  }
 0x7ee   : > { %v5721_v63 = vpop.permute.xlu1 %2543  ;;  %s6119_s23 = scalar_lea.hbm %s6174_s13, %s3857_s27 }
 0x7f0   : > { %2451 = vperm.xlu1 %4040, %v2437_v23  }
 0x7f1   : > { %2446 = vperm.xlu0 %4039, %v2436_v6  }
 0x7f2   : > { %v2508_v60 = vpop.permute.xlu1 %2507 }
 0x7f5   : > { %2456 = vperm.xlu0 %4039, %v2438_v48   ;;  %v6264_v48 = vmax.f32 %v4622_v14, %v4624_v16  ;;  %v6267_v14 = vmax.f32 %v4662_v61, %v4668_v2 }
 0x7f6   : > { %v2512_v26 = vpop.permute.xlu0 %2511 }
 0x7f7   : > { %v2510_v41 = vpop.permute.xlu1 %2509 }
 0x7f8   : > { %v2608_v62 = vsel %vm585_vm8, %v2510_v41, %v2512_v26  ;;  %v2607_v40 = vsel %vm585_vm8, %v2508_v60, %v2510_v41  ;;  %v6265_v26 = vmax.f32 %v4626_v18, %v4638_v31 }
 0x7f9   : > { %2685 = vmatprep.subr.bf16.mxu1 %v2608_v62 }
 0x7fa   : > { %2686 = vmatpush1.bf16.msra.mxu1 %v2607_v40  ;;  %v5733_v43 = vpop.permute.xlu0 %2547  ;;  %v6266_v40 = vmax.f32 %v4654_v58, %v4656_v59 }
 0x7fb   : > { %v5731_v24 = vpop.permute.xlu1 %2545 }
 0x7ff   : > { %v2524_v47 = vpop.permute.xlu1 %2523 }
 0x802   : > { %v2536_v33 = vpop.permute.xlu0 %2535 }
 0x803   : > { %v2520_v30 = vpop.permute.xlu1 %2519 }
 0x806   : > { %v2522_v10 = vpop.permute.xlu0 %2521 }
 0x807   : > { %v2532_v55 = vpop.permute.xlu1 %2531  ;;  %v2612_v23 = vsel %vm585_vm8, %v2522_v10, %v2524_v47  ;;  %v2611_v41 = vsel %vm585_vm8, %v2520_v30, %v2522_v10  ;;  %v4255_v47 = vmov 0.0|0.0   ;;  %v6268_v30 = vld [vmem:[#allocation18_spill] sm:$0xff]  ;;  %v2619_v10 = vsel %vm585_vm8, %v5721_v63, %v5731_v24 }
 0x808   : > { %3906 = vmatprep.subr.bf16.mxu0 %v4255_v47  ;;  %v6270_v36 = vmax.f32 %v6268_v30, %v6269_v20 }
 0x80b   : > { %v2534_v15 = vpop.permute.xlu1 %2533 }
 0x80c   : > { %v2615_v58 = vsel %vm585_vm8, %v2532_v55, %v2534_v15 }
 0x814   : > { %497 = vadd.xlane.f32.xlu0 %v496_v42  ;;  %494 = vadd.xlane.f32.xlu1 %v493_v29  ;;  %v6272_v42 = vld [vmem:[#allocation22_spill] sm:$0xff] }
 0x815   : > { %v6274_v29 = vld [vmem:[#allocation30_spill] sm:$0xff] }
 0x816   : > { %v2518_v19 = vpop.permute.xlu1 %2517 }
 0x817   : > { %v2516_v56 = vpop.permute.xlu0 %2515 }
 0x818   : > { %503 = vmax.xlane.f32.xlu0 %v502_v27  ;;  %506 = vmax.xlane.f32.xlu1 %v505_v49  ;;  %v2610_v46 = vsel %vm585_vm8, %v2516_v56, %v2518_v19 }
 0x819   : > { %2687 = vmatprep.subr.bf16.mxu1 %v2610_v46  ;;  %v6277_v46 = vld [vmem:[#allocation25_spill] sm:$0xff] }
 0x81a   : > { %v2514_v25 = vpop.permute.xlu1 %2513 }
 0x81b   : > { %v2609_v53 = vsel %vm585_vm8, %v2514_v25, %v2516_v56  ;;  %v2552_v38 = vpop.permute.xlu0 %2551  ;;  %v6276_v56 = vld [vmem:[#allocation24_spill] sm:$0xff] }
 0x81c   : > { %907 = vadd.xlane.f32.xlu0 %v4630_v21  ;;  %910 = vadd.xlane.f32.xlu1 %v4646_v39  ;;  %v6278_v25 = vmax.f32 %v6276_v56, %v6277_v46 }
 0x81d   : > { %2688 = vmatpush1.bf16.msra.mxu1 %v2609_v53  ;;  %v6280_v53 = vld [vmem:[#allocation28_spill] sm:$0xff] }
 0x81e   : > { %2689 = vmatprep.subr.bf16.mxu1 %v2612_v23  ;;  %v2554_v60 = vpop.permute.xlu1 %2553 }
 0x81f   : > { %v2526_v6 = vpop.permute.xlu0 %2525  ;;  %v2622_v49 = vsel %vm585_vm8, %v2552_v38, %v2554_v60 }
 0x820   : > { %923 = vmax.xlane.f32.xlu0 %v6264_v48  ;;  %926 = vmax.xlane.f32.xlu1 %v6265_v26 }
 0x821   : > { %2690 = vmatpush1.bf16.msra.mxu1 %v2611_v41 }
 0x822   : > { %v2530_v39 = vpop.permute.xlu1 %2529 }
 0x823   : > { %v2538_v21 = vpop.permute.xlu0 %2537 }
 0x824   : > { %913 = vadd.xlane.f32.xlu0 %v4676_v4  ;;  %916 = vadd.xlane.f32.xlu1 %v4680_v5  ;;  %v2616_v4 = vsel %vm585_vm8, %v2534_v15, %v2536_v33  ;;  %v6271_v33 = vld [vmem:[#allocation20_spill] sm:$0xff]  ;;  %v6275_v15 = vld [vmem:[#allocation31_spill] sm:$0xff] }
 0x825   : > { %v6273_v51 = vmax.f32 %v6271_v33, %v6272_v42 }
 0x827   : > { %v2528_v62 = vpop.permute.xlu0 %2527 }
 0x828   : > { %929 = vmax.xlane.f32.xlu0 %v6266_v40  ;;  %932 = vmax.xlane.f32.xlu1 %v6267_v14  ;;  %v2614_v16 = vsel %vm585_vm8, %v2528_v62, %v2530_v39  ;;  %v2613_v18 = vsel %vm585_vm8, %v2526_v6, %v2528_v62 }
 0x829   : > { %2691 = vmatprep.subr.bf16.mxu1 %v2614_v16 }
 0x82a   : > { %2692 = vmatpush1.bf16.msra.mxu1 %v2613_v18  ;;  %v2542_v31 = vpop.permute.xlu1 %2541 }
 0x82b   : > { %v2550_v5 = vpop.permute.xlu0 %2549  ;;  %2693 = vmatprep.subr.bf16.mxu1 %v2616_v4  ;;  %v4096_v4 = vld [vmem:[%s6168_s7 + $0x1c] ss:$12 sps:$4 sm:$0xff]  }
 0x82c   : > { %1544 = vadd.xlane.f32.xlu0 %v5025_v57  ;;  %1547 = vadd.xlane.f32.xlu1 %v5041_v50  ;;  %v2620_v50 = vsel %vm585_vm8, %v5731_v24, %v5733_v43  ;;  %v6279_v43 = vld [vmem:[#allocation26_spill] sm:$0xff]  ;;  %v2621_v6 = vsel %vm585_vm8, %v2550_v5, %v2552_v38 }
 0x82d   : > { %v6281_v23 = vmax.f32 %v6279_v43, %v6280_v53 }
 0x82e   : > { %2694 = vmatpush1.bf16.msra.mxu1 %v2615_v58  ;;  %v2558_v59 = vpop.permute.xlu1 %2557 }
 0x82f   : > { %v2540_v61 = vpop.permute.xlu0 %2539 }
 0x830   : > { %v2617_v2 = vsel %vm585_vm8, %v2538_v21, %v2540_v61  ;;  %1560 = vmax.xlane.f32.xlu0 %v6270_v36  ;;  %1563 = vmax.xlane.f32.xlu1 %v6273_v51  ;;  %v2618_v37 = vsel %vm585_vm8, %v2540_v61, %v2542_v31  ;;  %v4093_v31 = vld [vmem:[%s6168_s7] ss:$12 sps:$4 sm:$0xff]   ;;  %v4098_v36 = vld [vmem:[%s6168_s7 + $0x18] ss:$12 sps:$4 sm:$0xff]   ;;  %v4099_v51 = vld [vmem:[%s6168_s7 + $0x8] ss:$12 sps:$4 sm:$0xff]  }
 0x831   : > { %2695 = vmatprep.subr.bf16.mxu1 %v2618_v37  ;;  %v4100_v37 = vld [vmem:[%s6168_s7 + $0x20] ss:$12 sps:$4 sm:$0xff]  }
 0x832   : > { %2696 = vmatpush1.bf16.msra.mxu1 %v2617_v2  ;;  %v2556_v57 = vpop.permute.xlu1 %2555 }
 0x833   : > { %v2560_v55 = vpop.permute.xlu0 %2559  ;;  %2697 = vmatprep.subr.bf16.mxu1 %v2620_v50  ;;  %v2623_v60 = vsel %vm585_vm8, %v2556_v57, %v2558_v59 }
 0x834   : > { %1550 = vadd.xlane.f32.xlu0 %v6274_v29  ;;  %1553 = vadd.xlane.f32.xlu1 %v6275_v15  ;;  %v2624_v63 = vsel %vm585_vm8, %v2558_v59, %v2560_v55 }
 0x836   : > { %2698 = vmatpush1.bf16.msra.mxu1 %v2619_v10  ;;  %v2570_v27 = vpop.permute.xlu1 %2569 }
 0x837   : > { %v2562_v19 = vpop.permute.xlu0 %2561  ;;  %2699 = vmatprep.subr.bf16.mxu1 %v2622_v49 }
 0x838   : > { %1566 = vmax.xlane.f32.xlu0 %v6278_v25  ;;  %1569 = vmax.xlane.f32.xlu1 %v6281_v23 }
 0x83a   : > { %2700 = vmatpush1.bf16.msra.mxu1 %v2621_v6  ;;  %v2568_v48 = vpop.permute.xlu1 %2567 }
 0x83b   : > { %v2572_v24 = vpop.permute.xlu0 %2571  ;;  %2701 = vmatprep.subr.bf16.mxu1 %v2624_v63  ;;  %v2627_v12 = vsel %vm585_vm8, %v2568_v48, %v2570_v27 }
 0x83c   : > { %2180 = vadd.xlane.f32.xlu0 %v5420_v45  ;;  %2183 = vadd.xlane.f32.xlu1 %v5436_v22  ;;  %v2628_v22 = vsel %vm585_vm8, %v2570_v27, %v2572_v24 }
 0x83e   : > { %2702 = vmatpush1.bf16.msra.mxu1 %v2623_v60  ;;  %v2566_v26 = vpop.permute.xlu1 %2565 }
 0x83f   : > { %v2564_v41 = vpop.permute.xlu0 %2563 }
 0x840   : > { %v2625_v21 = vsel %vm585_vm8, %v2562_v19, %v2564_v41  ;;  %2196 = vmax.xlane.f32.xlu0 %v2195_v17  ;;  %2199 = vmax.xlane.f32.xlu1 %v2198_v11  ;;  %v2626_v38 = vsel %vm585_vm8, %v2564_v41, %v2566_v26  ;;  %v6283_v11 = vmax.f32 %v5452_v44, %v5458_v52 }
 0x841   : > { %2703 = vmatprep.subr.bf16.mxu1 %v2626_v38 }
 0x842   : > { %2704 = vmatpush1.bf16.msra.mxu1 %v2625_v21  ;;  %v2582_v45 = vpop.permute.xlu1 %2581 }
 0x843   : > { %v2574_v39 = vpop.permute.xlu0 %2573  ;;  %2705 = vmatprep.subr.bf16.mxu1 %v2628_v22 }
 0x844   : > { %2186 = vadd.xlane.f32.xlu0 %v5466_v0  ;;  %2189 = vadd.xlane.f32.xlu1 %v5470_v54 }
 0x846   : > { %2706 = vmatpush1.bf16.msra.mxu1 %v2627_v12  ;;  %v2578_v28 = vpop.permute.xlu1 %2577 }
 0x847   : > { %v2576_v17 = vpop.permute.xlu0 %2575 }
 0x848   : > { %v2629_v13 = vsel %vm585_vm8, %v2574_v39, %v2576_v17  ;;  %2202 = vmax.xlane.f32.xlu0 %v6282_v34  ;;  %2205 = vmax.xlane.f32.xlu1 %v6283_v11  ;;  %v2630_v62 = vsel %vm585_vm8, %v2576_v17, %v2578_v28 }
 0x849   : > { %2707 = vmatprep.subr.bf16.mxu1 %v2630_v62 }
 0x84a   : > { %2708 = vmatpush1.bf16.msra.mxu1 %v2629_v13  ;;  %v2580_v0 = vpop.permute.xlu1 %2579 }
 0x84b   : > { %v2584_v54 = vpop.permute.xlu0 %2583  ;;  %v2631_v14 = vsel %vm585_vm8, %v2580_v0, %v2582_v45 }
 0x84c   : > { %v2632_v40 = vsel %vm585_vm8, %v2582_v45, %v2584_v54 }
 0x84d   : > { %2709 = vmatprep.subr.bf16.mxu1 %v2632_v40 }
 0x84e   : > { %2710 = vmatpush1.bf16.msra.mxu1 %v2631_v14  ;;  %v2590_v16 = vpop.permute.xlu1 %2589 }
 0x84f   : > { %v2588_v18 = vpop.permute.xlu0 %2587 }
 0x850   : > { %v2634_v7 = vsel %vm585_vm8, %v2588_v18, %v2590_v16 }
 0x851   : > { %2711 = vmatprep.subr.bf16.mxu1 %v2634_v7 }
 0x852   : > { %v2594_v9 = vpop.permute.xlu1 %2593 }
 0x853   : > { %v2586_v44 = vpop.permute.xlu0 %2585 }
 0x854   : > { %v2633_v52 = vsel %vm585_vm8, %v2586_v44, %v2588_v18 }
 0x855   : > { %2712 = vmatpush1.bf16.msra.mxu1 %v2633_v52 }
 0x856   : > { %v2592_v5 = vpop.permute.xlu1 %2591 }
 0x857   : > { %v2596_v58 = vpop.permute.xlu0 %2595  ;;  %v2635_v61 = vsel %vm585_vm8, %v2592_v5, %v2594_v9 }
 0x858   : > { %2714 = vmatmul.mubr.bf16.vlgmr.msra.gmra.mrb[8].mxu1 %v4093_v31  ;;  %v2636_v59 = vsel %vm585_vm8, %v2594_v9, %v2596_v58 }
 0x859   : > { %2734 = vmatprep.subr.bf16.mxu1 %v2636_v59  ;;  %2723 = vmatprep.mubr.bf16.mxu1 %v4096_v4 }
 0x85a   : > { %2735 = vmatpush1.bf16.msra.mxu1 %v2635_v61  ;;  %v2602_v2 = vpop.permute.xlu1 %2601 }
 0x85b   : > { %v2600_v30 = vpop.permute.xlu0 %2599 }
 0x85c   : > { %v2638_v20 = vsel %vm585_vm8, %v2600_v30, %v2602_v2 }
 0x85d   : > { %2736 = vmatprep.subr.bf16.mxu1 %v2638_v20 }
 0x85f   : > { %v2598_v33 = vpop.permute.xlu0 %2597 }
 0x860   : > { %v2637_v42 = vsel %vm585_vm8, %v2598_v33, %v2600_v30  ;;  %2724 = vmatmul.mubr.bf16.gmra.mrb[12].mxu1 %v4098_v36 }
 0x861   : > { %2737 = vmatpush1.bf16.msra.mxu1 %v2637_v42  ;;  %2766 = vmatprep.mubr.bf16.mxu1 %v6249_v1 }
 0x868   : > { %3822 = vmatmul.mubr.msk.bf16.vlgmr.msra.gmra.mrb[8].mxu1 %vm1402_vm4, %v4099_v51 }
 0x869   : > { %2776 = vmatprep.mubr.bf16.mxu1 %v6249_v1 }
 0x86b   : > { %v5842_v57 = vpop.permute.xlu1 %2441 }
 0x86f   : > { %v5846_v55 = vpop.permute.xlu1 %2451 }
 0x870   : > { %3823 = vmatmul.mubr.msk.bf16.gmra.mrb[12].mxu1 %vm1402_vm4, %v4100_v37  ;;  %v5844_v50 = vpop.permute.xlu0 %2446 }
 0x871   : > { %3419 = vmatprep.mubr.bf16.mxu1 %v6249_v1 }
 0x874   : > { %v5848_v29 = vpop.permute.xlu0 %2456 }
 0x8a1   : > { %v498_v15 = vpop.xlane.xlu0 %497  ;;  %v495_v10 = vpop.xlane.xlu1 %494 }
 0x8a2   : > { %v501_v27 = vmul.f32 0.00390625, %v498_v15  ;;  %v500_v49 = vmul.f32 0.00390625, %v495_v10 }
 0x8a5   : > { %v504_v19 = vpop.xlane.xlu0 %503  ;;  %v507_v56 = vpop.xlane.xlu1 %506 }
 0x8a6   : > { %v509_v46 = vsel %vm508_vm6, %v500_v49, %v504_v19  ;;  %v510_v25 = vsel %vm508_vm6, %v501_v27, %v507_v56 }
 0x8a7   : > { %v3907_v43 = vpack.c.bf16 %v510_v25, %v509_v46 }
 0x8a9   : > { %v908_v53 = vpop.xlane.xlu0 %907  ;;  %v911_v23 = vpop.xlane.xlu1 %910  ;;  %3908 = vmatpush1.bf16.msra.mxu0 %v3907_v43 }
 0x8aa   : > { %3909 = vmatprep.subr.bf16.mxu0 %v4255_v47  ;;  %v918_v6 = vmul.f32 0.00390625, %v908_v53  ;;  %v919_v48 = vmul.f32 0.00390625, %v911_v23 }
 0x8ad   : > { %v924_v63 = vpop.xlane.xlu0 %923  ;;  %v927_v24 = vpop.xlane.xlu1 %926 }
 0x8ae   : > { %v934_v60 = vsel %vm508_vm6, %v918_v6, %v924_v63  ;;  %v935_v26 = vsel %vm508_vm6, %v919_v48, %v927_v24 }
 0x8af   : > { %v3910_v41 = vpack.c.bf16 %v935_v26, %v934_v60 }
 0x8b1   : > { %v914_v21 = vpop.xlane.xlu0 %913  ;;  %3911 = vmatpush1.bf16.msra.mxu0 %v3910_v41  ;;  %v917_v38 = vpop.xlane.xlu1 %916 }
 0x8b2   : > { %3912 = vmatprep.subr.bf16.mxu0 %v4255_v47  ;;  %v920_v45 = vmul.f32 0.00390625, %v914_v21  ;;  %v921_v22 = vmul.f32 0.00390625, %v917_v38 }
 0x8b5   : > { %v930_v39 = vpop.xlane.xlu0 %929  ;;  %v933_v12 = vpop.xlane.xlu1 %932 }
 0x8b6   : > { %v936_v28 = vsel %vm508_vm6, %v920_v45, %v930_v39  ;;  %v937_v17 = vsel %vm508_vm6, %v921_v22, %v933_v12 }
 0x8b7   : > { %v3913_v13 = vpack.c.bf16 %v937_v17, %v936_v28 }
 0x8b9   : > { %v1545_v34 = vpop.xlane.xlu0 %1544  ;;  %3914 = vmatpush1.bf16.msra.mxu0 %v3913_v13  ;;  %v1548_v11 = vpop.xlane.xlu1 %1547 }
 0x8ba   : > { %3915 = vmatprep.subr.bf16.mxu0 %v4255_v47  ;;  %v1555_v62 = vmul.f32 0.00390625, %v1545_v34  ;;  %v1556_v0 = vmul.f32 0.00390625, %v1548_v11 }
 0x8bd   : > { %v1561_v54 = vpop.xlane.xlu0 %1560  ;;  %v1564_v40 = vpop.xlane.xlu1 %1563 }
 0x8be   : > { %v1571_v14 = vsel %vm508_vm6, %v1555_v62, %v1561_v54  ;;  %v1572_v16 = vsel %vm508_vm6, %v1556_v0, %v1564_v40 }
 0x8bf   : > { %v3916_v18 = vpack.c.bf16 %v1572_v16, %v1571_v14 }
 0x8c1   : > { %v1551_v7 = vpop.xlane.xlu0 %1550  ;;  %3917 = vmatpush1.bf16.msra.mxu0 %v3916_v18  ;;  %v1554_v9 = vpop.xlane.xlu1 %1553 }
 0x8c2   : > { %3918 = vmatprep.subr.bf16.mxu0 %v4255_v47  ;;  %v1557_v44 = vmul.f32 0.00390625, %v1551_v7  ;;  %v1558_v52 = vmul.f32 0.00390625, %v1554_v9 }
 0x8c5   : > { %v1567_v31 = vpop.xlane.xlu0 %1566  ;;  %v1570_v4 = vpop.xlane.xlu1 %1569 }
 0x8c6   : > { %v1573_v5 = vsel %vm508_vm6, %v1557_v44, %v1567_v31  ;;  %v1574_v58 = vsel %vm508_vm6, %v1558_v52, %v1570_v4 }
 0x8c7   : > { %v3919_v59 = vpack.c.bf16 %v1574_v58, %v1573_v5 }
 0x8c9   : > { %v2181_v61 = vpop.xlane.xlu0 %2180  ;;  %3920 = vmatpush1.bf16.msra.mxu0 %v3919_v59  ;;  %v2184_v2 = vpop.xlane.xlu1 %2183 }
 0x8ca   : > { %3921 = vmatprep.subr.bf16.mxu0 %v4255_v47  ;;  %v2191_v30 = vmul.f32 0.00390625, %v2181_v61  ;;  %v2192_v20 = vmul.f32 0.00390625, %v2184_v2 }
 0x8cd   : > { %v2197_v36 = vpop.xlane.xlu0 %2196  ;;  %v2200_v33 = vpop.xlane.xlu1 %2199 }
 0x8ce   : > { %v2207_v42 = vsel %vm508_vm6, %v2191_v30, %v2197_v36  ;;  %v2208_v51 = vsel %vm508_vm6, %v2192_v20, %v2200_v33  ;;  %v2848_v36 = vld [vmem:[%s6170_s9 + $0x8] sm:$0xff] }
 0x8cf   : > { %v3922_v37 = vpack.c.bf16 %v2208_v51, %v2207_v42  ;;  %3824 = vmatprep.mubr.msk.f32.mxu0 %vm818_vm0, %v2848_v36 }
 0x8d1   : > { %v2187_v15 = vpop.xlane.xlu0 %2186  ;;  %3923 = vmatpush1.bf16.msra.mxu0 %v3922_v37  ;;  %v2190_v10 = vpop.xlane.xlu1 %2189 }
 0x8d2   : > { %3924 = vmatprep.subr.bf16.mxu0 %v4255_v47  ;;  %v2193_v27 = vmul.f32 0.00390625, %v2187_v15  ;;  %v2194_v49 = vmul.f32 0.00390625, %v2190_v10 }
 0x8d5   : > { %v2203_v19 = vpop.xlane.xlu0 %2202  ;;  %v2206_v56 = vpop.xlane.xlu1 %2205 }
 0x8d6   : > { %v2209_v46 = vsel %vm508_vm6, %v2193_v27, %v2203_v19  ;;  %v2210_v25 = vsel %vm508_vm6, %v2194_v49, %v2206_v56 }
 0x8d7   : > { %v3925_v43 = vpack.c.bf16 %v2210_v25, %v2209_v46 }
 0x8d9   : > { %3926 = vmatpush1.bf16.msra.mxu0 %v3925_v43 }
 0x8da   : > { %3927 = vmatprep.subr.bf16.mxu0 %v4255_v47 }
 0x93b   : > { %v2768_v53 = vpop.f32.mrb[8].mxu1 }
 0x93c   : > { %v3949_v23 = vadd.f32 %v2768_v53, %v5842_v57  ;;  %v2770_v6 = vpop.f32.mrb[9].mxu1 }
 0x93d   : > { %v3950_v48 = vadd.f32 %v2770_v6, %v5842_v57  ;;  %v2772_v63 = vpop.f32.mrb[10].mxu1 }
 0x93e   : > { %vm2787_vm5 = vcmp.ge.f32.partialorder %v3949_v23, 0.0  ;;  %v2795_v24 = vmul.f32 0.01, %v3949_v23  ;;  %v3951_v60 = vadd.f32 %v2772_v63, %v5844_v50  ;;  %v2774_v26 = vpop.f32.mrb[11].mxu1 }
 0x93f   : > { %vm2788_vm8 = vcmp.ge.f32.partialorder %v3950_v48, 0.0  ;;  %v2796_v41 = vmul.f32 0.01, %v3950_v48  ;;  %v3952_v21 = vadd.f32 %v2774_v26, %v5844_v50 }
 0x940   : > { %v5875_v38 = vsel %vm2787_vm5, %v3949_v23, %v2795_v24  ;;  %vm2789_vm9 = vcmp.ge.f32.partialorder %v3951_v60, 0.0  ;;  %v2797_v45 = vmul.f32 0.01, %v3951_v60  ;;  %v2847_v24 = vld [vmem:[%s6170_s9] sm:$0xff] }
 0x941   : > { %v5877_v22 = vsel %vm2788_vm8, %v3950_v48, %v2796_v41  ;;  %vm2790_vm10 = vcmp.ge.f32.partialorder %v3952_v21, 0.0  ;;  %v2798_v39 = vmul.f32 0.01, %v3952_v21 }
 0x942   : > { %v5879_v12 = vsel %vm2789_vm9, %v3951_v60, %v2797_v45  ;;  %v2815_v57 = vadd.f32 %v5877_v22, %v5875_v38  ;;  %v2831_v28 = vmax.f32 %v5875_v38, %v5877_v22  ;;  %v2923_v60 = vld [vmem:[%s6171_s10] sm:$0xff]  ;;  %v2925_v45 = vld [vmem:[%s6171_s10 + $0x10] sm:$0xff] }
 0x943   : > { %v5885_v17 = vsel %vm2790_vm10, %v3952_v21, %v2798_v39  ;;  %v2778_v13 = vpop.f32.mrb[12].mxu1  ;;  %v2811_v50 = vpack.c.bf16 %v5879_v12, %v5875_v38  ;;  %v2924_v21 = vld [vmem:[%s6171_s10 + $0x8] sm:$0xff]  ;;  %v2926_v39 = vld [vmem:[%s6171_s10 + $0x18] sm:$0xff] }
 0x944   : > { %v3953_v34 = vadd.f32 %v2778_v13, %v5846_v55  ;;  %v2780_v11 = vpop.f32.mrb[13].mxu1  ;;  %2816 = vadd.xlane.f32.xlu0 %v2815_v57  ;;  %v2818_v62 = vadd.f32 %v5885_v17, %v5879_v12  ;;  %v2834_v0 = vmax.f32 %v5879_v12, %v5885_v17  ;;  %v2812_v54 = vpack.c.bf16 %v5885_v17, %v5877_v22  ;;  %v2927_v57 = vld [vmem:[%s6171_s10 + $0x20] sm:$0xff]  ;;  %v2929_v13 = vld [vmem:[%s6171_s10 + $0x30] sm:$0xff] }
 0x945   : > { %v3954_v40 = vadd.f32 %v2780_v11, %v5846_v55  ;;  %v2782_v14 = vpop.f32.mrb[14].mxu1  ;;  %v2931_v11 = vld [vmem:[%s6171_s10 + $0x40] sm:$0xff] }
 0x946   : > { %vm2791_vm11 = vcmp.ge.f32.partialorder %v3953_v34, 0.0  ;;  %v2799_v16 = vmul.f32 0.01, %v3953_v34  ;;  %v3955_v18 = vadd.f32 %v2782_v14, %v5848_v29  ;;  %v2784_v7 = vpop.f32.mrb[15].mxu1  ;;  %2819 = vadd.xlane.f32.xlu1 %v2818_v62  ;;  %v2932_v62 = vld [vmem:[%s6171_s10 + $0x48] sm:$0xff]  ;;  %v2935_v14 = vld [vmem:[%s6171_s10 + $0x60] sm:$0xff] }
 0x947   : > { %vm2792_vm12 = vcmp.ge.f32.partialorder %v3954_v40, 0.0  ;;  %v2800_v9 = vmul.f32 0.01, %v3954_v40  ;;  %v3956_v44 = vadd.f32 %v2784_v7, %v5848_v29  ;;  %v2938_v7 = vld [vmem:[%s6171_s10 + $0x78] sm:$0xff] }
 0x948   : > { %v5899_v52 = vsel %vm2791_vm11, %v3953_v34, %v2799_v16  ;;  %vm2793_vm13 = vcmp.ge.f32.partialorder %v3955_v18, 0.0  ;;  %v2801_v31 = vmul.f32 0.01, %v3955_v18  ;;  %2832 = vmax.xlane.f32.xlu0 %v2831_v28  ;;  %v2928_v28 = vld [vmem:[%s6171_s10 + $0x28] sm:$0xff]  ;;  %v2930_v34 = vld [vmem:[%s6171_s10 + $0x38] sm:$0xff] }
 0x949   : > { %v5901_v4 = vsel %vm2792_vm12, %v3954_v40, %v2800_v9  ;;  %vm2794_vm14 = vcmp.ge.f32.partialorder %v3956_v44, 0.0  ;;  %v2802_v55 = vmul.f32 0.01, %v3956_v44  ;;  %v2934_v40 = vld [vmem:[%s6171_s10 + $0x58] sm:$0xff]  ;;  %v2936_v16 = vld [vmem:[%s6171_s10 + $0x68] sm:$0xff]  ;;  %v2939_v9 = vld [vmem:[%s6171_s10 + $0x80] sm:$0xff] }
 0x94a   : > { %v5903_v5 = vsel %vm2793_vm13, %v3955_v18, %v2801_v31  ;;  %2835 = vmax.xlane.f32.xlu1 %v2834_v0  ;;  %v2821_v58 = vadd.f32 %v5901_v4, %v5899_v52  ;;  %v2837_v59 = vmax.f32 %v5899_v52, %v5901_v4  ;;  %v2933_v0 = vld [vmem:[%s6171_s10 + $0x50] sm:$0xff] }
 0x94b   : > { %v5909_v61 = vsel %vm2794_vm14, %v3956_v44, %v2802_v55  ;;  %v2813_v29 = vpack.c.bf16 %v5903_v5, %v5899_v52  ;;  %v2937_v18 = vld [vmem:[%s6171_s10 + $0x70] sm:$0xff]  ;;  %v2940_v44 = vld [vmem:[%s6171_s10 + $0x88] sm:$0xff] }
 0x94c   : > { %2822 = vadd.xlane.f32.xlu0 %v2821_v58  ;;  %v2824_v2 = vadd.f32 %v5909_v61, %v5903_v5  ;;  %v2840_v30 = vmax.f32 %v5903_v5, %v5909_v61  ;;  %v2814_v20 = vpack.c.bf16 %v5909_v61, %v5901_v4 }
 0x94e   : > { %2825 = vadd.xlane.f32.xlu1 %v2824_v2 }
 0x950   : > { %2838 = vmax.xlane.f32.xlu0 %v2837_v59 }
 0x952   : > { %2841 = vmax.xlane.f32.xlu1 %v2840_v30 }
 0x9d1   : > { %v2817_v33 = vpop.xlane.xlu0 %2816 }
 0x9d2   : > { %v2827_v37 = vmul.f32 0.00390625, %v2817_v33 }
 0x9d3   : > { %v2820_v42 = vpop.xlane.xlu1 %2819 }
 0x9d4   : > { %v2828_v15 = vmul.f32 0.00390625, %v2820_v42 }
 0x9d5   : > { %v2833_v51 = vpop.xlane.xlu0 %2832 }
 0x9d6   : > { %v2843_v27 = vsel %vm508_vm6, %v2827_v37, %v2833_v51 }
 0x9d7   : > { %v2836_v10 = vpop.xlane.xlu1 %2835 }
 0x9d8   : > { %v2844_v49 = vsel %vm508_vm6, %v2828_v15, %v2836_v10 }
 0x9d9   : > { %v3928_v19 = vpack.c.bf16 %v2844_v49, %v2843_v27  ;;  %v2823_v56 = vpop.xlane.xlu0 %2822 }
 0x9da   : > { %v2829_v43 = vmul.f32 0.00390625, %v2823_v56 }
 0x9db   : > { %3929 = vmatpush1.bf16.msra.mxu0 %v3928_v19  ;;  %v2826_v46 = vpop.xlane.xlu1 %2825 }
 0x9dc   : > { %3930 = vmatprep.subr.bf16.mxu0 %v4255_v47  ;;  %v2830_v53 = vmul.f32 0.00390625, %v2826_v46 }
 0x9dd   : > { %v2839_v25 = vpop.xlane.xlu0 %2838 }
 0x9de   : > { %v2845_v6 = vsel %vm508_vm6, %v2829_v43, %v2839_v25 }
 0x9df   : > { %v2842_v23 = vpop.xlane.xlu1 %2841 }
 0x9e0   : > { %v2846_v48 = vsel %vm508_vm6, %v2830_v53, %v2842_v23 }
 0x9e1   : > { %v3931_v63 = vpack.c.bf16 %v2846_v48, %v2845_v6 }
 0x9e3   : > { %3932 = vmatpush1.bf16.msra.mxu0 %v3931_v63 }
 0x9e6   : > { %2917 = vmatmul.mubr.f32.vlgmr.msra.gmra.mrb[16].mxu0 %v2847_v24 }
 0x9e7   : > { %3879 = vmatprep.mubr.msk.f32.mxu0 %vm2941_vm15, %v2923_v60 }
 0xab9   : > { %v2918_v47 = vpop.f32.mrb[16].mxu0 }
 0xaba   : > { %v2922_v26 = vmax.f32 %v2918_v47, 0.0  ;;  %v2920_v41 = vpop.f32.mrb[17].mxu0 }
 0xabc   : > { %3877 = vmatprep.subr.mxu0 %v2922_v26 }
 0xabd   : > { %3878 = vmatpush3.msra.mxu0 %v2922_v26 }
 0xabe   : > { %3880 = vmatmul.mubr.msk.f32.vlgmr.msra.gmra.mrb[18].mxu0 %vm2941_vm15, %v2924_v21 }
 0xabf   : > { %3882 = vmatprep.mubr.msk.f32.mxu0 %vm2941_vm15, %v2925_v45 }
 0xac2   : > { %3883 = vmatmul.mubr.msk.f32.gmra.mrb[20].mxu0 %vm2941_vm15, %v2926_v39 }
 0xac3   : > { %3885 = vmatprep.mubr.msk.f32.mxu0 %vm2941_vm15, %v2927_v57 }
 0xac6   : > { %3886 = vmatmul.mubr.msk.f32.gmra.mrb[22].mxu0 %vm2941_vm15, %v2928_v28 }
 0xac7   : > { %3888 = vmatprep.mubr.msk.f32.mxu0 %vm2941_vm15, %v2929_v13 }
 0xaca   : > { %3889 = vmatmul.mubr.msk.f32.gmra.mrb[24].mxu0 %vm2941_vm15, %v2930_v34 }
 0xacb   : > { %3891 = vmatprep.mubr.msk.f32.mxu0 %vm2941_vm15, %v2931_v11 }
 0xace   : > { %3892 = vmatmul.mubr.msk.f32.gmra.mrb[26].mxu0 %vm2941_vm15, %v2932_v62 }
 0xacf   : > { %3894 = vmatprep.mubr.msk.f32.mxu0 %vm2941_vm15, %v2933_v0 }
 0xad2   : > { %3895 = vmatmul.mubr.msk.f32.gmra.mrb[28].mxu0 %vm2941_vm15, %v2934_v40 }
 0xad3   : > { %3897 = vmatprep.mubr.msk.f32.mxu0 %vm2941_vm15, %v2935_v14 }
 0xad6   : > { %3898 = vmatmul.mubr.msk.f32.gmra.mrb[30].mxu0 %vm2941_vm15, %v2936_v16 }
 0xad7   : > { %3900 = vmatprep.mubr.msk.f32.mxu0 %vm2941_vm15, %v2937_v18 }
 0xada   : > { %3901 = vmatmul.mubr.msk.f32.gmra.mrb[32].mxu0 %vm2941_vm15, %v2938_v7 }
 0xadb   : > { %3903 = vmatprep.mubr.msk.f32.mxu0 %vm2941_vm15, %v2939_v9 }
 0xade   : > { %3904 = vmatmul.mubr.msk.f32.gmra.mrb[34].mxu0 %vm2941_vm15, %v2940_v44 }
 0xadf   : > { %3534 = vmatprep.mubr.bf16.mxu0 %v6249_v1 }
 0xb91   : > { %v3881_v31 = vpop.f32.mrb[18].mxu0 }
 0xb92   : > { %3171 = vrot.lane.b32.xlu0 %v3881_v31, %s6245_s2  ;;  %v3062_v55 = vpop.f32.mrb[19].mxu0 }
 0xb93   : > { %3169 = vrot.lane.b32.xlu1 %v3062_v55, %s6245_s2 }
 0xb95   : > { %v3884_v58 = vpop.f32.mrb[20].mxu0 }
 0xb96   : > { %v3072_v59 = vpop.f32.mrb[21].mxu0 }
 0xb97   : > { %3175 = vrot.lane.b32.xlu1 %v3884_v58, %s6245_s2  ;;  %3173 = vrot.lane.b32.xlu0 %v3072_v59, %s6245_s2 }
 0xb99   : > { %v3887_v2 = vpop.f32.mrb[22].mxu0 }
 0xb9a   : > { %v3082_v30 = vpop.f32.mrb[23].mxu0 }
 0xb9b   : > { %3179 = vrot.lane.b32.xlu0 %v3887_v2, %s6245_s2  ;;  %3177 = vrot.lane.b32.xlu1 %v3082_v30, %s6245_s2 }
 0xb9d   : > { %v3890_v36 = vpop.f32.mrb[24].mxu0 }
 0xb9e   : > { %v3092_v33 = vpop.f32.mrb[25].mxu0 }
 0xb9f   : > { %3183 = vrot.lane.b32.xlu0 %v3890_v36, %s6245_s2  ;;  %3181 = vrot.lane.b32.xlu1 %v3092_v33, %s6245_s2 }
 0xba1   : > { %v3893_v42 = vpop.f32.mrb[26].mxu0 }
 0xba2   : > { %v6012_v51 = vpop.f32.mrb[27].mxu0 }
 0xba3   : > { %3187 = vrot.lane.b32.xlu0 %v3893_v42, %s6245_s2  ;;  %3185 = vrot.lane.b32.xlu1 %v6012_v51, %s6245_s2 }
 0xba5   : > { %v6017_v37 = vpop.f32.mrb[28].mxu0 }
 0xba6   : > { %v6019_v15 = vpop.f32.mrb[29].mxu0 }
 0xba7   : > { %3191 = vrot.lane.b32.xlu0 %v6017_v37, %s6245_s2  ;;  %3189 = vrot.lane.b32.xlu1 %v6019_v15, %s6245_s2 }
 0xba9   : > { %v6025_v10 = vpop.f32.mrb[30].mxu0 }
 0xbaa   : > { %v6027_v27 = vpop.f32.mrb[31].mxu0 }
 0xbab   : > { %3195 = vrot.lane.b32.xlu0 %v6025_v10, %s6245_s2  ;;  %3193 = vrot.lane.b32.xlu1 %v6027_v27, %s6245_s2 }
 0xbad   : > { %v6033_v49 = vpop.f32.mrb[32].mxu0 }
 0xbae   : > { %v6035_v19 = vpop.f32.mrb[33].mxu0 }
 0xbaf   : > { %3199 = vrot.lane.b32.xlu0 %v6033_v49, %s6245_s2  ;;  %3197 = vrot.lane.b32.xlu1 %v6035_v19, %s6245_s2 }
 0xbb1   : > { %v6041_v56 = vpop.f32.mrb[34].mxu0 }
 0xbb2   : > { %v6043_v46 = vpop.f32.mrb[35].mxu0 }
 0xbb3   : > { %3203 = vrot.lane.b32.xlu0 %v6041_v56, %s6245_s2  ;;  %3201 = vrot.lane.b32.xlu1 %v6043_v46, %s6245_s2 }
 0xc04   : > { %v3172_v25 = vpop.permute.xlu0 %3171 }
 0xc05   : > { %v3224_v43 = vadd.f32 %v3881_v31, %v3172_v25  ;;  %v3170_v53 = vpop.permute.xlu1 %3169 }
 0xc06   : > { %v3223_v23 = vadd.f32 %v3170_v53, %v3062_v55 }
 0xc07   : > { %v3242_v6 = vsub.f32 0.0, %v3224_v43 }
 0xc08   : > { %v3241_v48 = vsub.f32 0.0, %v3223_v23 }
 0xc09   : > { %v3261_v63 = vmul.f32 1.442695, %v3242_v6  ;;  %v3176_v24 = vpop.permute.xlu1 %3175  ;;  %v3174_v60 = vpop.permute.xlu0 %3173 }
 0xc0a   : > { %v3259_v47 = vmul.f32 1.442695, %v3241_v48  ;;  %v3226_v26 = vadd.f32 %v3884_v58, %v3176_v24  ;;  %v3225_v41 = vadd.f32 %v3174_v60, %v3072_v59 }
 0xc0b   : > { %4101 = vpow2.f32 %v3261_v63 }
 0xc0c   : > { %4103 = vpow2.f32 %v3259_v47  ;;  %v3244_v21 = vsub.f32 0.0, %v3226_v26  ;;  %v3243_v45 = vsub.f32 0.0, %v3225_v41 }
 0xc0d   : > { %v3180_v39 = vpop.permute.xlu0 %3179  ;;  %v3178_v57 = vpop.permute.xlu1 %3177 }
 0xc0e   : > { %v3265_v28 = vmul.f32 1.442695, %v3244_v21  ;;  %v3263_v13 = vmul.f32 1.442695, %v3243_v45  ;;  %v3228_v34 = vadd.f32 %v3887_v2, %v3180_v39  ;;  %v3227_v11 = vadd.f32 %v3178_v57, %v3082_v30 }
 0xc10   : > { %4105 = vpow2.f32 %v3265_v28  ;;  %v3246_v62 = vsub.f32 0.0, %v3228_v34  ;;  %v3245_v0 = vsub.f32 0.0, %v3227_v11 }
 0xc11   : > { %4107 = vpow2.f32 %v3263_v13  ;;  %v3184_v40 = vpop.permute.xlu0 %3183  ;;  %v3182_v14 = vpop.permute.xlu1 %3181 }
 0xc12   : > { %v3269_v16 = vmul.f32 1.442695, %v3246_v62  ;;  %v3267_v18 = vmul.f32 1.442695, %v3245_v0  ;;  %v3230_v7 = vadd.f32 %v3890_v36, %v3184_v40  ;;  %v3229_v9 = vadd.f32 %v3182_v14, %v3092_v33 }
 0xc14   : > { %4109 = vpow2.f32 %v3269_v16  ;;  %v3248_v44 = vsub.f32 0.0, %v3230_v7  ;;  %v3247_v31 = vsub.f32 0.0, %v3229_v9 }
 0xc15   : > { %v4102_v55 = vpop.eup %4101  ;;  %4111 = vpow2.f32 %v3267_v18  ;;  %v3188_v58 = vpop.permute.xlu0 %3187 }
 0xc16   : > { %v3186_v59 = vpop.permute.xlu1 %3185  ;;  %v4104_v25 = vpop.eup %4103  ;;  %v3296_v2 = vadd.f32 1.0, %v4102_v55  ;;  %v3273_v30 = vmul.f32 1.442695, %v3248_v44  ;;  %v3232_v43 = vadd.f32 %v3893_v42, %v3188_v58  ;;  %v3271_v23 = vmul.f32 1.442695, %v3247_v31 }
 0xc17   : > { %v3295_v53 = vadd.f32 1.0, %v4104_v25  ;;  %v3231_v6 = vadd.f32 %v3186_v59, %v6012_v51 }
 0xc18   : > { %4113 = vrcp.f32 %v3296_v2  ;;  %v3250_v48 = vsub.f32 0.0, %v3232_v43 }
 0xc19   : > { %4115 = vrcp.f32 %v3295_v53  ;;  %v3249_v36 = vsub.f32 0.0, %v3231_v6  ;;  %v3192_v33 = vpop.permute.xlu0 %3191 }
 0xc1a   : > { %v3190_v63 = vpop.permute.xlu1 %3189  ;;  %v4106_v24 = vpop.eup %4105  ;;  %4117 = vpow2.f32 %v3273_v30  ;;  %v3277_v60 = vmul.f32 1.442695, %v3250_v48  ;;  %v3234_v47 = vadd.f32 %v6017_v37, %v3192_v33 }
 0xc1b   : > { %v3233_v26 = vadd.f32 %v3190_v63, %v6019_v15  ;;  %v4108_v41 = vpop.eup %4107  ;;  %v3298_v21 = vadd.f32 1.0, %v4106_v24  ;;  %4119 = vpow2.f32 %v3271_v23  ;;  %v3275_v42 = vmul.f32 1.442695, %v3249_v36 }
 0xc1c   : > { %v3297_v45 = vadd.f32 1.0, %v4108_v41  ;;  %4121 = vpow2.f32 %v3277_v60  ;;  %v3252_v51 = vsub.f32 0.0, %v3234_v47 }
 0xc1d   : > { %v3251_v39 = vsub.f32 0.0, %v3233_v26  ;;  %4123 = vrcp.f32 %v3298_v21  ;;  %v3196_v57 = vpop.permute.xlu0 %3195 }
 0xc1e   : > { %v3194_v28 = vpop.permute.xlu1 %3193  ;;  %v4110_v13 = vpop.eup %4109  ;;  %4125 = vrcp.f32 %v3297_v45  ;;  %v3281_v34 = vmul.f32 1.442695, %v3252_v51  ;;  %v3236_v11 = vadd.f32 %v6025_v10, %v3196_v57 }
 0xc1f   : > { %v4112_v62 = vpop.eup %4111  ;;  %v3300_v37 = vadd.f32 1.0, %v4110_v13  ;;  %4127 = vpow2.f32 %v3275_v42  ;;  %v3279_v15 = vmul.f32 1.442695, %v3251_v39  ;;  %v3235_v0 = vadd.f32 %v3194_v28, %v6027_v27 }
 0xc20   : > { %v3299_v40 = vadd.f32 1.0, %v4112_v62  ;;  %4129 = vpow2.f32 %v3281_v34  ;;  %v3254_v14 = vsub.f32 0.0, %v3236_v11  ;;  %v4256_v34 = vmov 1983009808  }
 0xc21   : > { %4131 = vrcp.f32 %v3300_v37  ;;  %v3253_v16 = vsub.f32 0.0, %v3235_v0  ;;  %v3200_v18 = vpop.permute.xlu0 %3199  ;;  %v3376_v11 = vunpack.c.l.s4 %v4256_v34 }
 0xc22   : > { %v3198_v7 = vpop.permute.xlu1 %3197  ;;  %v6054_v9 = vpop.eup %4113  ;;  %4133 = vrcp.f32 %v3299_v40  ;;  %v3285_v44 = vmul.f32 1.442695, %v3254_v14  ;;  %v3238_v31 = vadd.f32 %v6033_v49, %v3200_v18  ;;  %v6284_v18 = vlaneseq }
 0xc23   : > { %v3237_v10 = vadd.f32 %v3198_v7, %v6035_v19  ;;  %v4116_v55 = vpop.eup %4115  ;;  %4135 = vpow2.f32 %v3279_v15  ;;  %v3283_v58 = vmul.f32 1.442695, %v3253_v16  ;;  %v3377_v16 = vunpack.c.0.s8 %v3376_v11 }
 0xc24   : > { %v4118_v59 = vpop.eup %4117  ;;  %4137 = vpow2.f32 %v3285_v44  ;;  %v3256_v27 = vsub.f32 0.0, %v3238_v31  ;;  %v3349_v2 = vpack.c.bf16 %v6054_v9, %v4116_v55  ;;  %v3379_v7 = vshrl.u32 %v6284_v18, 7 }
 0xc25   : > { %v3255_v25 = vsub.f32 0.0, %v3237_v10  ;;  %v4120_v30 = vpop.eup %4119  ;;  %v3302_v43 = vadd.f32 1.0, %v4118_v59  ;;  %4139 = vpow2.f32 %v3283_v58  ;;  %v3204_v53 = vpop.permute.xlu0 %3203 }
 0xc26   : > { %v3202_v23 = vpop.permute.xlu1 %3201  ;;  %v4122_v6 = vpop.eup %4121  ;;  %v3301_v48 = vadd.f32 1.0, %v4120_v30  ;;  %v3289_v36 = vmul.f32 1.442695, %v3256_v27  ;;  %v3240_v49 = vadd.f32 %v6041_v56, %v3204_v53  ;;  %v3380_v59 = vsub.s32 %v3377_v16, %v3379_v7  ;;  %v6065_v30 = vld [vmem:[%s6172_s11] sm:$0x3]  ;;  %v6290_v7 = vld [vmem:[#allocation21_spill] sm:$0xff] }
 0xc27   : > { %v4124_v19 = vpop.eup %4123  ;;  %4141 = vrcp.f32 %v3302_v43  ;;  %v3304_v33 = vadd.f32 1.0, %v4122_v6  ;;  %v3287_v63 = vmul.f32 1.442695, %v3255_v25  ;;  %v3239_v24 = vadd.f32 %v3202_v23, %v6043_v46 }
 0xc28   : > { %v4126_v60 = vpop.eup %4125  ;;  %4143 = vrcp.f32 %v3301_v48  ;;  %v3258_v47 = vsub.f32 0.0, %v3240_v49  ;;  %v3381_v48 = vrot.slane %v6065_v30, %v3380_v59  ;;  %v6293_v59 = vld [vmem:[#allocation29_spill] sm:$0xff] }
 0xc29   : > { %v4128_v26 = vpop.eup %4127  ;;  %4145 = vrcp.f32 %v3304_v33  ;;  %v3257_v41 = vsub.f32 0.0, %v3239_v24  ;;  %v3358_v21 = vpack.c.bf16 %v4124_v19, %v4126_v60 }
 0xc2a   : > { %v4130_v42 = vpop.eup %4129  ;;  %v3303_v45 = vadd.f32 1.0, %v4128_v26  ;;  %4147 = vpow2.f32 %v3289_v36  ;;  %v3293_v51 = vmul.f32 1.442695, %v3258_v47 }
 0xc2b   : > { %v4132_v39 = vpop.eup %4131  ;;  %v3306_v57 = vadd.f32 1.0, %v4130_v42  ;;  %4149 = vpow2.f32 %v3287_v63  ;;  %v3291_v56 = vmul.f32 1.442695, %v3257_v41  ;;  %3362 = vperm.xlu1 %4040, %v3358_v21  }
 0xc2c   : > { %v4134_v28 = vpop.eup %4133  ;;  %4151 = vrcp.f32 %v3303_v45  ;;  %v3845_v26 = vld.sshfl [vmem:[%s6172_s11] sm:$0x3 pattern:$0x76325410] }
 0xc2d   : > { %v4136_v13 = vpop.eup %4135  ;;  %4153 = vrcp.f32 %v3306_v57  ;;  %v3359_v46 = vpack.c.bf16 %v4132_v39, %v4134_v28  ;;  %v3849_v45 = vld.sshfl [vmem:[%s6172_s11] sm:$0x33 pattern:$0x76325410] }
 0xc2e   : > { %v4138_v62 = vpop.eup %4137  ;;  %v3305_v37 = vadd.f32 1.0, %v4136_v13  ;;  %4155 = vpow2.f32 %v3293_v51  ;;  %v3696_v39 = vld [vmem:[%s6173_s12] sm:$0xf]  ;;  %v3643_v57 = vcombine.high %v3849_v45, %v3849_v45 }
 0xc2f   : > { %v4140_v15 = vpop.eup %4139  ;;  %v3308_v0 = vadd.f32 1.0, %v4138_v62  ;;  %4157 = vpow2.f32 %v3291_v56  ;;  %3367 = vperm.xlu0 %4039, %v3359_v46   ;;  %v6285_v28 = vld [vmem:[#allocation14_spill] sm:$0xff]  ;;  %v6286_v46 = vld [vmem:[#allocation15_spill] sm:$0xff]  ;;  %v6287_v62 = vld [vmem:[#allocation16_spill] sm:$0xff] }
 0xc30   : > { %4159 = vrcp.f32 %v3305_v37  ;;  %v3307_v40 = vadd.f32 1.0, %v4140_v15  ;;  %v6288_v15 = vld [vmem:[#allocation17_spill] sm:$0xff] }
 0xc31   : > { %v4142_v14 = vpop.eup %4141  ;;  %4161 = vrcp.f32 %v3308_v0 }
 0xc32   : > { %v4144_v9 = vpop.eup %4143  ;;  %4163 = vrcp.f32 %v3307_v40 }
 0xc33   : > { %v4146_v44 = vpop.eup %4145  ;;  %3353 = vperm.xlu0 %4039, %v3349_v2   ;;  %v3472_v31 = vpack.c.bf16 %v4142_v14, %v4144_v9  ;;  %v6289_v14 = vld [vmem:[#allocation13_spill] sm:$0xff] }
 0xc34   : > { %v4148_v10 = vpop.eup %4147 }
 0xc35   : > { %v4150_v55 = vpop.eup %4149  ;;  %v3310_v58 = vadd.f32 1.0, %v4148_v10  ;;  %3477 = vperm.xlu1 %4040, %v3472_v31  }
 0xc36   : > { %v4152_v27 = vpop.eup %4151  ;;  %v3309_v25 = vadd.f32 1.0, %v4150_v55  ;;  %v6292_v55 = vld [vmem:[#allocation27_spill] sm:$0xff] }
 0xc37   : > { %v4154_v43 = vpop.eup %4153  ;;  %4165 = vrcp.f32 %v3310_v58  ;;  %v3473_v53 = vpack.c.bf16 %v4146_v44, %v4152_v27  ;;  %v6291_v44 = vld [vmem:[#allocation23_spill] sm:$0xff] }
 0xc38   : > { %v4156_v23 = vpop.eup %4155  ;;  %4167 = vrcp.f32 %v3309_v25  ;;  %v6294_v25 = vld [vmem:[#allocation12_spill] sm:$0xff] }
 0xc39   : > { %v4158_v6 = vpop.eup %4157  ;;  %v3312_v2 = vadd.f32 1.0, %v4156_v23  ;;  %3482 = vperm.xlu1 %4040, %v3473_v53  }
 0xc3a   : > { %v4160_v36 = vpop.eup %4159  ;;  %v3311_v49 = vadd.f32 1.0, %v4158_v6 }
 0xc3b   : > { %v4162_v19 = vpop.eup %4161  ;;  %4169 = vrcp.f32 %v3312_v2  ;;  %v3545_v33 = vpack.c.bf16 %v4154_v43, %v4160_v36 }
 0xc3c   : > { %v4164_v63 = vpop.eup %4163  ;;  %4171 = vrcp.f32 %v3311_v49 }
 0xc3d   : > { %3550 = vperm.xlu0 %4039, %v3545_v33   ;;  %3382 = vrot.lane.b32.xlu1 %v3381_v48, %s6237_s24  ;;  %v3546_v24 = vpack.c.bf16 %v4162_v19, %v4164_v63  ;;  %s4258_s24 = smov 16  }
 0xc41   : > { %v4166_v60 = vpop.eup %4165  ;;  %3555 = vperm.xlu1 %4040, %v3546_v24  }
 0xc42   : > { %v4168_v47 = vpop.eup %4167 }
 0xc43   : > { %v3618_v41 = vpack.c.bf16 %v4166_v60, %v4168_v47 }
 0xc45   : > { %v4170_v21 = vpop.eup %4169  ;;  %3623 = vperm.xlu0 %4039, %v3618_v41   ;;  %3497 = vrot.lane.b32.xlu1 %v3845_v26, %s4257_s30  ;;  %s4181_s30 = sshll.u32 %s4260_s29, 4  ;;  %s4182_s30 = int_to_ptr.vmem [resolvable:$false] %s4181_s30 }
 0xc46   : > { %v4172_v42 = vpop.eup %4171  ;;  %s4183_s22 = scalar_lea.vmem %s4182_s30, 256  ;;  %p4184_p0 = scmp.lt.s32.totalorder %s6121_s1, %s4182_s30 }
 0xc47   : > { %v3619_v51 = vpack.c.bf16 %v4170_v21, %v4172_v42  ;;  %p4185_p1 = scmp.lt.s32.totalorder %s4183_s22, %s4177_s16 }
 0xc49   : > { %3644 = vrot.lane.b32.xlu1 %v3849_v45, %s4258_s24  ;;  %3628 = vperm.xlu0 %4039, %v3619_v51   ;;  %p4186_p2 = por %p4185_p1, %p4184_p0 }
 0xc4b   : > { %p4187_p3 = pnand %p4186_p2, %p4180_p13 }
 0xc4d   : > { %3699 = vperm.xlu1 %4040, %v3696_v39   ;;  %3570 = vrot.lane.b32.xlu0 %v3845_v26, %s4259_s14 }
 0xc51   : > { %3646 = vrot.lane.b32.xlu0 %v3643_v57, %s4258_s24 }
 0xcaa   : > { %v3363_v56 = vpop.permute.xlu1 %3362 }
 0xcab   : > { %v3370_v13 = vmul.bf16 %v3363_v56, %v6285_v28  ;;  %v3371_v34 = vmul.bf16 %v3363_v56, %v6286_v46 }
 0xcad   : > { %3387 = vmatprep.subr.bf16.mxu1 %v3371_v34 }
 0xcae   : > { %v3368_v11 = vpop.permute.xlu0 %3367  ;;  %3388 = vmatpush1.bf16.msra.mxu1 %v3370_v13 }
 0xcaf   : > { %v3372_v37 = vmul.bf16 %v3368_v11, %v6287_v62  ;;  %v3373_v0 = vmul.bf16 %v3368_v11, %v6288_v15 }
 0xcb1   : > { %3389 = vmatprep.subr.bf16.mxu1 %v3373_v0 }
 0xcb2   : > { %v3354_v40 = vpop.permute.xlu0 %3353  ;;  %3390 = vmatpush1.bf16.msra.mxu1 %v3372_v37 }
 0xcb3   : > { %v3357_v16 = vmul.bf16 %v3354_v40, %v6289_v14  ;;  %v3356_v43 = vmul.bf16 %v3354_v40, %v6294_v25 }
 0xcb4   : > { %v3478_v18 = vpop.permute.xlu1 %3477 }
 0xcb5   : > { %v3485_v9 = vmul.bf16 %v3478_v18, %v6290_v7  ;;  %v3486_v31 = vmul.bf16 %v3478_v18, %v6291_v44  ;;  %3431 = vmatprep.subr.bf16.mxu1 %v3357_v16 }
 0xcb7   : > { %3502 = vmatprep.subr.bf16.mxu0 %v3486_v31 }
 0xcb8   : > { %3503 = vmatpush1.bf16.msra.mxu0 %v3485_v9  ;;  %v3483_v10 = vpop.permute.xlu1 %3482 }
 0xcb9   : > { %v3487_v58 = vmul.bf16 %v3483_v10, %v6292_v55  ;;  %v3488_v27 = vmul.bf16 %v3483_v10, %v6293_v59 }
 0xcbb   : > { %3504 = vmatprep.subr.bf16.mxu0 %v3488_v27 }
 0xcbc   : > { %v3551_v53 = vpop.permute.xlu0 %3550  ;;  %3505 = vmatpush1.bf16.msra.mxu0 %v3487_v58  ;;  %v3383_v23 = vpop.permute.xlu1 %3382 }
 0xcbd   : > { %v3559_v6 = vmul.bf16 %v3551_v53, %v5432_v8  ;;  %3843 = vmatmul.mubr.msk.bf16.vlgmr.msra.gmra.mrb[16].mxu1 %vm1402_vm4, %v3383_v23  ;;  %v3558_v48 = vmul.bf16 %v3551_v53, %v5426_v3 }
 0xcbe   : > { %3432 = vmatpush1.bf16.msra.mxu1 %v3356_v43  ;;  %3463 = vmatprep.mubr.bf16.mxu1 %v6249_v1 }
 0xcbf   : > { %3575 = vmatprep.subr.bf16.mxu1 %v3559_v6 }
 0xcc0   : > { %v3556_v2 = vpop.permute.xlu1 %3555 }
 0xcc1   : > { %v3561_v19 = vmul.bf16 %v3556_v2, %v5462_v32  ;;  %v3560_v3 = vmul.bf16 %v3556_v2, %v5456_v35 }
 0xcc4   : > { %v3624_v36 = vpop.permute.xlu0 %3623  ;;  %v3498_v49 = vpop.permute.xlu1 %3497 }
 0xcc5   : > { %v3631_v33 = vmul.bf16 %v3624_v36, %v2811_v50  ;;  %v3632_v8 = vmul.bf16 %v3624_v36, %v2812_v54  ;;  %3844 = vmatmul.mubr.msk.bf16.vlgmr.msra.gmra.mrb[20].mxu1 %vm818_vm0, %v6065_v30  ;;  %3846 = vmatmul.mubr.msk.bf16.vlgmr.msra.gmra.mrb[36].mxu0 %vm1402_vm4, %v3498_v49 }
 0xcc6   : > { %3576 = vmatpush1.bf16.msra.mxu1 %v3558_v48  ;;  %3607 = vmatprep.mubr.bf16.mxu1 %v6249_v1 }
 0xcc7   : > { %3577 = vmatprep.subr.bf16.mxu1 %v3561_v19  ;;  %3653 = vmatprep.subr.bf16.mxu0 %v3632_v8 }
 0xcc8   : > { %v3629_v32 = vpop.permute.xlu0 %3628  ;;  %3654 = vmatpush1.bf16.msra.mxu0 %v3631_v33  ;;  %3685 = vmatprep.mubr.bf16.mxu0 %v6249_v1  ;;  %v3645_v17 = vpop.permute.xlu1 %3644 }
 0xcc9   : > { %v3633_v38 = vmul.bf16 %v3629_v32, %v2813_v29  ;;  %v3634_v22 = vmul.bf16 %v3629_v32, %v2814_v20 }
 0xcca   : > { %3578 = vmatpush1.bf16.msra.mxu1 %v3560_v3 }
 0xccb   : > { %3655 = vmatprep.subr.bf16.mxu0 %v3634_v22 }
 0xccc   : > { %v3571_v12 = vpop.permute.xlu0 %3570  ;;  %3656 = vmatpush1.bf16.msra.mxu0 %v3633_v38  ;;  %v3700_v34 = vpop.permute.xlu1 %3699 }
 0xccd   : > { %3848 = vmatmul.mubr.msk.bf16.vlgmr.msra.gmra.mrb[24].mxu1 %vm1402_vm4, %v3571_v12 }
 0xcd0   : > { %v3647_v35 = vpop.permute.xlu0 %3646 }
 0xcd1   : > { %v3649_v50 = vsel %vm818_vm0, %v3645_v17, %v3647_v35 }
 0xcd2   : > { %3850 = vmatmul.mubr.msk.bf16.vlgmr.msra.gmra.mrb[40].mxu0 %vm1402_vm4, %v3649_v50 }
 0xd90   : > { %v3421_v1 = vpop.f32.mrb[16].mxu1 }
 0xd91   : > { %v3423_v54 = vpop.f32.mrb[17].mxu1 }
 0xd92   : > { %v3425_v52 = vpop.f32.mrb[18].mxu1 }
 0xd93   : > { %v3426_v5 = vpop.f32.mrb[19].mxu1 }
 0xd98   : > { %v3465_v29 = vpop.f32.mrb[20].mxu1  ;;  %v3536_v4 = vpop.f32.mrb[36].mxu0 }
 0xd99   : > { %v3466_v61 = vadd.f32 %v3465_v29, %v3421_v1  ;;  %v3467_v20 = vpop.f32.mrb[21].mxu1  ;;  %v3538_v30 = vpop.f32.mrb[37].mxu0 }
 0xd9a   : > { %v3468_v63 = vadd.f32 %v3467_v20, %v3423_v54  ;;  %v3469_v24 = vpop.f32.mrb[22].mxu1  ;;  %v3540_v60 = vpop.f32.mrb[38].mxu0 }
 0xd9b   : > { %v3543_v47 = vadd.f32 %v3536_v4, %v3466_v61  ;;  %v3470_v26 = vpop.f32.mrb[23].mxu1  ;;  %v3541_v41 = vpop.f32.mrb[39].mxu0 }
 0xd9c   : > { %v3544_v21 = vadd.f32 %v3538_v30, %v3468_v63 }
 0xda0   : > { %v3609_v42 = vpop.f32.mrb[24].mxu1 }
 0xda1   : > { %v3616_v45 = vadd.f32 %v3609_v42, %v3543_v47  ;;  %v3611_v51 = vpop.f32.mrb[25].mxu1 }
 0xda2   : > { %v3617_v39 = vadd.f32 %v3611_v51, %v3544_v21  ;;  %v3613_v57 = vpop.f32.mrb[26].mxu1 }
 0xda3   : > { %v3614_v56 = vpop.f32.mrb[27].mxu1 }
 0xda5   : > { %v3687_v28 = vpop.f32.mrb[40].mxu0 }
 0xda6   : > { %v3694_v13 = vadd.f32 %v3687_v28, %v3616_v45  ;;  %v3689_v46 = vpop.f32.mrb[41].mxu0 }
 0xda7   : > { %v3695_v11 = vadd.f32 %v3689_v46, %v3617_v39  ;;  %v3691_v62 = vpop.f32.mrb[42].mxu0 }
 0xda8   : > { %v3702_v37 = vadd.f32 %v3700_v34, %v3694_v13  ;;  %v3692_v15 = vpop.f32.mrb[43].mxu0 }
 0xda9   : > { %v3703_v0 = vadd.f32 %v3700_v34, %v3695_v11 }
 0xdab   : > { %v3706_v40 = vcombine.low %v3702_v37, %v3703_v0 }
 0xdad   : > { %3708 = vst [vmem:[%s433_s20] sm:$0xff] %v3706_v40 }
 0xdae   : > { %4190 = shalt.err (!%p4187_p3)
}
 0xdaf   : > { %s4191_s0 = scalar_lea.hbm %s6119_s23, 128  ;;  %s4195_s19 = scalar_lea.hbm %s6174_s13, 256 }
 0xdb0   : > { %p4192_p4 = scmp.ne.s32.totalorder %s6119_s23, %s4191_s0  ;;  %p4196_p9 = scmp.lt.u32.totalorder %s6119_s23, %s6174_s13 }
 0xdb1   : > { %p4197_p10 = scmp.lt.u32.totalorder %s4195_s19, %s4191_s0  ;;  %p4199_p12 = scmp.lt.u32.totalorder %s4191_s0, %s6119_s23 }
 0xdb2   : > { %p4193_p7 = pnand %p4192_p4, %p4369_p5 }
 0xdb3   : > { %p4198_p11 = por %p4197_p10, %p4196_p9 }
 0xdb4   : > { %p4194_p8 = pneg %p4193_p7 }
 0xdb5   : > { %p4200_p13 = por %p4199_p12, %p4198_p11 }
 0xdb7   : > { %p4201_p0 = pnand %p4200_p13, %p4194_p8 }
 0xdb9   : > { %4204 = shalt.err (!%p4201_p0)
}
 0xdba   : > { %3981 = dma.vmem_to_hbm [thread:$0]  (%p4369_p5), %s6121_s1, 128, %s6119_s23, %s3710_s15  }
 0xdbb PF: > { %s6295_s17 = sld [smem:[#allocation8_spill]]  ;;  %s6296_s27 = sld [smem:[#allocation6_spill]] }
 0xdc1   : > { %p3987_p1 = scmp.ge.s32.totalorder %s6295_s17, 2  ;;  %s3736_s25 = sand.u32 1, %s6296_s27  }
 0xdc2   : > { %s3737_s2 = scalar_lea.sflag [#allocation4], %s3736_s25 }
 0xdc3   : > { %p3984_p2 = pnand %p3987_p1, %p4373_p6 }
 0xdc5   : > { %4222 = dma.done.wait (!%p3984_p2), %s3737_s2, 128  }
 0xdc6   : > { %4224 = vsyncadd (!%p3984_p2), %s3737_s2, 4294967168  ;;  %s6298_s28 = sld [smem:[#allocation9_spill]]  ;;  %s6299_s16 = sld [smem:[#allocation7_spill]] }
 0xdc7   : > { %s6300_s27 = sld [smem:[#allocation10_spill]]  ;;  %s6301_s25 = smov %s4231_s26 }
 0xdcc   : > { %p23_p3 = scmp.ge.s32.totalorder %s6298_s28, 4   ;;  %s6302_s26 = smov %s6299_s16 }
 0xdce   :  { %25 = sbr.rel (!%p23_p3) target bundleno = 7 (0x7), region = 107 }
 0xdd5   :  { %3742 = vsyncpa [#allocation4], 1 }
 0xdd6   :  { %3744 = vsyncpa [#allocation4 + $0x1], 1 }

</bundles_post_ra>
